<compile_context>
chip_gen: v6e
topology: v6e:2x2x1
jax: 0.10.0
libtpu: 0.0.40
codegen_flags: <defaults>
</compile_context>

<pallas_src>
import functools
import math

import jax
import jax.numpy as jnp
from jax.experimental import pallas as pl
from jax.experimental.pallas import tpu as pltpu


def _bucket_bias_kernel(qpos_sref, kpos_ref, relb_ref, biasT_ref, out_ref, *,
                        num_buckets, max_distance, tq, k_len, ck, total_padded):
    # qpos_sref : (B, Q) int32 in SMEM (scalar prefetch)
    # kpos_ref  : (1, 1, K) int32   key positions for this batch element
    # relb_ref  : (1, TQ, K) int16  segment relative buckets (0 == same segment)
    # biasT_ref : (H, totalP) f32   transposed (and zero-padded) embedding table
    # out_ref   : (1, H, TQ*K)      flat output block (heads on sublanes)
    b = pl.program_id(0)
    qt = pl.program_id(1)

    biasT = biasT_ref[...]                        # (H, totalP) f32
    kpos = kpos_ref[0]                            # (1, K) int32
    relb = relb_ref[0].astype(jnp.int32)          # (TQ, K) int32 (one aligned unpack)

    nb = num_buckets // 2
    max_exact = nb // 2
    log_scale = (nb - max_exact) / math.log(max_distance / max_exact)
    inv_max_exact = 1.0 / float(max_exact)

    # Hoisted: the same iota is reused for every (row, chunk) one-hot build.
    t_iota = jax.lax.broadcasted_iota(jnp.int32, (total_padded, ck), 0)

    num_ck = k_len // ck
    for r in range(tq):                           # static unroll, tq <= 16
        qp = qpos_sref[b, qt * tq + r]            # scalar int32 from SMEM
        for c in range(num_ck):                   # static unroll
            cs = c * ck
            kvec = kpos[:, cs:cs + ck]            # (1, CK)
            rb = relb[r:r + 1, cs:cs + ck]        # (1, CK)

            # ---- _position_bucket ----
            rel_pos = kvec - qp                   # key_pos - query_pos
            sign_part = (rel_pos > 0).astype(jnp.int32) * nb
            rel_abs = jnp.abs(rel_pos)
            is_small = rel_abs < max_exact
            rel_f = jnp.maximum(rel_abs, 1).astype(jnp.float32)   # clamp: no log(0)
            rel_large = max_exact + (
                jnp.log(rel_f * inv_max_exact) * log_scale).astype(jnp.int32)
            rel_large = jnp.minimum(rel_large, nb - 1)
            inner = sign_part + jnp.where(is_small, rel_abs, rel_large)

            # ---- merge with segment buckets ----
            # NOTE: out-of-range rel_buckets would yield zeros (one-hot matmul),
            # mirroring neither torch error nor gather; inputs are assumed valid.
            bucket = jnp.where(rb == 0, inner, rb - 1 + num_buckets)   # (1, CK)

            # ---- embedding lookup as one fused one-hot matmul (MXU) ----
            onehot = (t_iota == bucket).astype(jnp.float32)            # (totalP, CK)
            res = jnp.dot(biasT, onehot,
                          preferred_element_type=jnp.float32)          # (H, CK)

            start = r * k_len + cs
            out_ref[0, :, start:start + ck] = res.astype(out_ref.dtype)  # dense store


def cpmbee_bucket_position_bias(query_pos, key_pos, rel_buckets, rel_attn_bias,
                                *, num_buckets, max_distance, out_dtype=None):
    """query_pos (B,Q) int, key_pos (B,K) int, rel_buckets (B,Q,K) int,
       rel_attn_bias (num_buckets+num_segment_buckets, H) float
       returns (B, H, Q, K) in `out_dtype` (default: table dtype)."""
    B, Q = query_pos.shape
    K = key_pos.shape[1]
    total, H = rel_attn_bias.shape
    if out_dtype is None:
        out_dtype = rel_attn_bias.dtype
    assert K % 128 == 0, "key length must be a multiple of 128"
    # TODO(synk): pad K (and slice the output) for non-128-multiple key lengths.

    # Q tile (grid) and K chunk (in-kernel) sizes.
    if Q % 16 == 0:
        TQ = 16
    elif Q % 8 == 0:
        TQ = 8
    else:
        TQ = Q
    CK = 128
    for cand in (1024, 512, 256, 128):
        if K % cand == 0:
            CK = cand
            break

    total_padded = 64 if total <= 64 else ((total + 7) // 8) * 8

    qpos = query_pos.astype(jnp.int32)                        # scalar-prefetch -> SMEM
    kpos3 = key_pos.astype(jnp.int32).reshape(B, 1, K)        # glue reshape
    relb16 = rel_buckets.astype(jnp.int16)                    # halve HBM stream
    biasT = jnp.zeros((H, total_padded), jnp.float32).at[:, :total].set(
        rel_attn_bias.astype(jnp.float32).T)                  # (H, totalP), padded

    kernel = functools.partial(
        _bucket_bias_kernel, num_buckets=num_buckets, max_distance=max_distance,
        tq=TQ, k_len=K, ck=CK, total_padded=total_padded)

    out_flat = pl.pallas_call(
        kernel,
        out_shape=jax.ShapeDtypeStruct((B, H, Q * K), out_dtype),
        grid_spec=pltpu.PrefetchScalarGridSpec(
            num_scalar_prefetch=1,
            grid=(B, Q // TQ),
            in_specs=[
                pl.BlockSpec((1, 1, K), lambda b, qt, qpos_s: (b, 0, 0)),
                pl.BlockSpec((1, TQ, K), lambda b, qt, qpos_s: (b, qt, 0)),
                pl.BlockSpec((H, total_padded), lambda b, qt, qpos_s: (0, 0)),
            ],
            out_specs=pl.BlockSpec((1, H, TQ * K), lambda b, qt, qpos_s: (b, 0, qt)),
        ),
        compiler_params=pltpu.CompilerParams(
            dimension_semantics=("parallel", "parallel"),
            vmem_limit_bytes=64 * 1024 * 1024),
    )(qpos, kpos3, relb16, biasT)

    # Free reshape: (B, H, Q*K) row-major is bit-identical to (B, H, Q, K).
    return out_flat.reshape(B, H, Q, K)


def _ref_forward(query_pos, key_pos, rel_buckets, bias, num_buckets, max_distance):
    """Pure-JAX reference mirroring the PyTorch forward."""
    rel_pos = key_pos[:, None, :] - query_pos[:, :, None]
    nb = num_buckets // 2
    max_exact = nb // 2
    sign_part = (rel_pos > 0).astype(jnp.int32) * nb
    rel_abs = jnp.abs(rel_pos)
    is_small = rel_abs < max_exact
    rel_large = max_exact + (
        jnp.log(jnp.maximum(rel_abs, 1).astype(jnp.float32) / max_exact)
        / math.log(max_distance / max_exact) * (nb - max_exact)
    ).astype(jnp.int32)
    rel_large = jnp.minimum(rel_large, nb - 1)
    inner = sign_part + jnp.where(is_small, rel_abs, rel_large)
    bucket = jnp.where(rel_buckets == 0, inner, rel_buckets - 1 + num_buckets)
    emb = bias[bucket]                               # (B, Q, K, H)
    return jnp.transpose(emb, (0, 3, 1, 2))          # (B, H, Q, K)


if __name__ == "__main__":
    # small, TPU-friendly config (exercises Q tiling in the grid)
    B, Q, K = 2, 32, 256
    NUM_HEADS = 8
    NUM_BUCKETS = 32
    NUM_SEGMENT_BUCKETS = 8
    MAX_DISTANCE = 128

    key = jax.random.PRNGKey(0)
    k1, k2, k3, k4 = jax.random.split(key, 4)
    query_pos = jax.random.randint(k1, (B, Q), 0, 256, dtype=jnp.int32)
    key_pos = jax.random.randint(k2, (B, K), 0, 256, dtype=jnp.int32)
    rel_buckets = jax.random.randint(k3, (B, Q, K), 0,
                                     NUM_SEGMENT_BUCKETS + 1, dtype=jnp.int32)
    # deterministic parameter init (synthetic weights, fp32)
    rel_attn_bias = 0.02 * jax.random.normal(
        k4, (NUM_BUCKETS + NUM_SEGMENT_BUCKETS, NUM_HEADS), dtype=jnp.float32)

    out = cpmbee_bucket_position_bias(
        query_pos, key_pos, rel_buckets, rel_attn_bias,
        num_buckets=NUM_BUCKETS, max_distance=MAX_DISTANCE)
    out = jax.block_until_ready(out)

    ref = _ref_forward(query_pos, key_pos, rel_buckets, rel_attn_bias,
                       NUM_BUCKETS, MAX_DISTANCE)
    assert out.shape == (B, NUM_HEADS, Q, K)
    assert jnp.allclose(out, ref, atol=1e-6), "kernel/reference mismatch"
    print("KERNEL_OK")
</pallas_src>

<mosaic_0001>
module attributes {stable_mosaic.version = 11 : i64} {
  func.func @_bucket_bias_kernel(%arg0: i32, %arg1: i32, %arg2: memref<2x32xi32, #tpu.memory_space<smem>>, %arg3: memref<1x1x256xi32, #tpu.memory_space<vmem>>, %arg4: memref<1x16x256xi16, #tpu.memory_space<vmem>>, %arg5: memref<8x64xf32, #tpu.memory_space<vmem>>, %arg6: memref<1x8x4096xf32, #tpu.memory_space<vmem>>) attributes {dimension_semantics = [#tpu.dimension_semantics<parallel>, #tpu.dimension_semantics<parallel>], iteration_bounds = array<i64: 2, 2>, scalar_prefetch = 1 : i64, scratch_operands = 0 : i64, tpu.core_type = #tpu.core_type<tc>, window_params = [{transform_indices = @transform_0, window_bounds = array<i64: 1, 1, 256>}, {transform_indices = @transform_1, window_bounds = array<i64: 1, 16, 256>}, {pipeline_mode = #tpu.pipeline_mode<synchronous>, transform_indices = @transform_2, window_bounds = array<i64: 8, 64>}, {transform_indices = @transform_3, window_bounds = array<i64: 1, 8, 4096>}]} {
    %c0 = arith.constant 0 : index
    %c0_0 = arith.constant 0 : index
    %0 = vector.load %arg5[%c0, %c0_0] : memref<8x64xf32, #tpu.memory_space<vmem>>, vector<8x64xf32>
    %c0_1 = arith.constant 0 : index
    %c0_2 = arith.constant 0 : index
    %c0_3 = arith.constant 0 : index
    %1 = vector.load %arg3[%c0_1, %c0_2, %c0_3] : memref<1x1x256xi32, #tpu.memory_space<vmem>>, vector<1x1x256xi32>
    %2 = vector.shape_cast %1 : vector<1x1x256xi32> to vector<1x256xi32>
    %c0_4 = arith.constant 0 : index
    %c0_5 = arith.constant 0 : index
    %c0_6 = arith.constant 0 : index
    %3 = vector.load %arg4[%c0_4, %c0_5, %c0_6] : memref<1x16x256xi16, #tpu.memory_space<vmem>>, vector<1x16x256xi16>
    %4 = vector.shape_cast %3 : vector<1x16x256xi16> to vector<16x256xi16>
    %5 = arith.extsi %4 : vector<16x256xi16> to vector<16x256xi32>
    %6 = tpu.iota {dimensions = array<i32: 0>} : vector<64x256xi32>
    %c16_i32 = arith.constant 16 : i32
    %7 = arith.muli %arg1, %c16_i32 : i32
    %c0_i32 = arith.constant 0 : i32
    %8 = arith.addi %7, %c0_i32 : i32
    %9 = arith.index_cast %arg0 : i32 to index
    %10 = arith.index_cast %8 : i32 to index
    %11 = memref.load %arg2[%9, %10] : memref<2x32xi32, #tpu.memory_space<smem>>
    %12 = vector.extract_strided_slice %5 {offsets = [0, 0], sizes = [1, 256], strides = [1, 1]} : vector<16x256xi32> to vector<1x256xi32>
    %13 = vector.broadcast %11 : i32 to vector<1x256xi32>
    %14 = arith.subi %2, %13 : vector<1x256xi32>
    %c0_i32_7 = arith.constant 0 : i32
    %15 = vector.broadcast %c0_i32_7 : i32 to vector<1x256xi32>
    %16 = arith.cmpi sgt, %14, %15 : vector<1x256xi32>
    %17 = arith.extui %16 : vector<1x256xi1> to vector<1x256xi32>
    %c16_i32_8 = arith.constant 16 : i32
    %18 = vector.broadcast %c16_i32_8 : i32 to vector<1x256xi32>
    %19 = arith.muli %17, %18 : vector<1x256xi32>
    %20 = math.absi %14 : vector<1x256xi32>
    %c8_i32 = arith.constant 8 : i32
    %21 = vector.broadcast %c8_i32 : i32 to vector<1x256xi32>
    %22 = arith.cmpi slt, %20, %21 : vector<1x256xi32>
    %c1_i32 = arith.constant 1 : i32
    %23 = vector.broadcast %c1_i32 : i32 to vector<1x256xi32>
    %24 = arith.maxsi %20, %23 : vector<1x256xi32>
    %25 = arith.sitofp %24 : vector<1x256xi32> to vector<1x256xf32>
    %cst = arith.constant 1.250000e-01 : f32
    %26 = vector.broadcast %cst : f32 to vector<1x256xf32>
    %27 = arith.mulf %25, %26 : vector<1x256xf32>
    %28 = math.log %27 : vector<1x256xf32>
    %cst_9 = arith.constant 2.885390e+00 : f32
    %29 = vector.broadcast %cst_9 : f32 to vector<1x256xf32>
    %30 = arith.mulf %28, %29 : vector<1x256xf32>
    %31 = arith.fptosi %30 : vector<1x256xf32> to vector<1x256xi32>
    %c8_i32_10 = arith.constant 8 : i32
    %32 = vector.broadcast %c8_i32_10 : i32 to vector<1x256xi32>
    %33 = arith.addi %32, %31 : vector<1x256xi32>
    %c15_i32 = arith.constant 15 : i32
    %34 = vector.broadcast %c15_i32 : i32 to vector<1x256xi32>
    %35 = arith.minsi %33, %34 : vector<1x256xi32>
    %36 = arith.select %22, %20, %35 : vector<1x256xi1>, vector<1x256xi32>
    %37 = arith.addi %19, %36 : vector<1x256xi32>
    %c0_i32_11 = arith.constant 0 : i32
    %38 = vector.broadcast %c0_i32_11 : i32 to vector<1x256xi32>
    %39 = arith.cmpi eq, %12, %38 : vector<1x256xi32>
    %c1_i32_12 = arith.constant 1 : i32
    %40 = vector.broadcast %c1_i32_12 : i32 to vector<1x256xi32>
    %41 = arith.subi %12, %40 : vector<1x256xi32>
    %c32_i32 = arith.constant 32 : i32
    %42 = vector.broadcast %c32_i32 : i32 to vector<1x256xi32>
    %43 = arith.addi %41, %42 : vector<1x256xi32>
    %44 = arith.select %39, %37, %43 : vector<1x256xi1>, vector<1x256xi32>
    %45 = vector.broadcast %44 : vector<1x256xi32> to vector<64x256xi32>
    %46 = arith.cmpi eq, %6, %45 : vector<64x256xi32>
    %47 = arith.extui %46 : vector<64x256xi1> to vector<64x256xi32>
    %48 = arith.sitofp %47 : vector<64x256xi32> to vector<64x256xf32>
    %cst_13 = arith.constant dense<0.000000e+00> : vector<8x256xf32>
    %49 = tpu.matmul %0, %48, %cst_13 {dimension_numbers = #tpu.dot_dimension_numbers<[1], [0], [0], [1], [0, 0, 1, 1], [], []>} : vector<8x64xf32>, vector<64x256xf32>, vector<8x256xf32> -> vector<8x256xf32>
    %c0_14 = arith.constant 0 : index
    %c0_15 = arith.constant 0 : index
    %c0_16 = arith.constant 0 : index
    %50 = vector.load %arg6[%c0_14, %c0_15, %c0_16] : memref<1x8x4096xf32, #tpu.memory_space<vmem>>, vector<1x8x256xf32>
    %51 = vector.shape_cast %50 : vector<1x8x256xf32> to vector<8x256xf32>
    %52 = vector.shape_cast %49 : vector<8x256xf32> to vector<1x8x256xf32>
    tpu.vector_store %arg6[%c0_14, %c0_15, %c0_16], %52 {strides = array<i32>} : memref<1x8x4096xf32, #tpu.memory_space<vmem>>, vector<1x8x256xf32>,
    %c16_i32_17 = arith.constant 16 : i32
    %53 = arith.muli %arg1, %c16_i32_17 : i32
    %c1_i32_18 = arith.constant 1 : i32
    %54 = arith.addi %53, %c1_i32_18 : i32
    %55 = arith.index_cast %arg0 : i32 to index
    %56 = arith.index_cast %54 : i32 to index
    %57 = memref.load %arg2[%55, %56] : memref<2x32xi32, #tpu.memory_space<smem>>
    %58 = vector.extract_strided_slice %5 {offsets = [1, 0], sizes = [1, 256], strides = [1, 1]} : vector<16x256xi32> to vector<1x256xi32>
    %59 = vector.broadcast %57 : i32 to vector<1x256xi32>
    %60 = arith.subi %2, %59 : vector<1x256xi32>
    %c0_i32_19 = arith.constant 0 : i32
    %61 = vector.broadcast %c0_i32_19 : i32 to vector<1x256xi32>
    %62 = arith.cmpi sgt, %60, %61 : vector<1x256xi32>
    %63 = arith.extui %62 : vector<1x256xi1> to vector<1x256xi32>
    %c16_i32_20 = arith.constant 16 : i32
    %64 = vector.broadcast %c16_i32_20 : i32 to vector<1x256xi32>
    %65 = arith.muli %63, %64 : vector<1x256xi32>
    %66 = math.absi %60 : vector<1x256xi32>
    %c8_i32_21 = arith.constant 8 : i32
    %67 = vector.broadcast %c8_i32_21 : i32 to vector<1x256xi32>
    %68 = arith.cmpi slt, %66, %67 : vector<1x256xi32>
    %c1_i32_22 = arith.constant 1 : i32
    %69 = vector.broadcast %c1_i32_22 : i32 to vector<1x256xi32>
    %70 = arith.maxsi %66, %69 : vector<1x256xi32>
    %71 = arith.sitofp %70 : vector<1x256xi32> to vector<1x256xf32>
    %cst_23 = arith.constant 1.250000e-01 : f32
    %72 = vector.broadcast %cst_23 : f32 to vector<1x256xf32>
    %73 = arith.mulf %71, %72 : vector<1x256xf32>
    %74 = math.log %73 : vector<1x256xf32>
    %cst_24 = arith.constant 2.885390e+00 : f32
    %75 = vector.broadcast %cst_24 : f32 to vector<1x256xf32>
    %76 = arith.mulf %74, %75 : vector<1x256xf32>
    %77 = arith.fptosi %76 : vector<1x256xf32> to vector<1x256xi32>
    %c8_i32_25 = arith.constant 8 : i32
    %78 = vector.broadcast %c8_i32_25 : i32 to vector<1x256xi32>
    %79 = arith.addi %78, %77 : vector<1x256xi32>
    %c15_i32_26 = arith.constant 15 : i32
    %80 = vector.broadcast %c15_i32_26 : i32 to vector<1x256xi32>
    %81 = arith.minsi %79, %80 : vector<1x256xi32>
    %82 = arith.select %68, %66, %81 : vector<1x256xi1>, vector<1x256xi32>
    %83 = arith.addi %65, %82 : vector<1x256xi32>
    %c0_i32_27 = arith.constant 0 : i32
    %84 = vector.broadcast %c0_i32_27 : i32 to vector<1x256xi32>
    %85 = arith.cmpi eq, %58, %84 : vector<1x256xi32>
    %c1_i32_28 = arith.constant 1 : i32
    %86 = vector.broadcast %c1_i32_28 : i32 to vector<1x256xi32>
    %87 = arith.subi %58, %86 : vector<1x256xi32>
    %c32_i32_29 = arith.constant 32 : i32
    %88 = vector.broadcast %c32_i32_29 : i32 to vector<1x256xi32>
    %89 = arith.addi %87, %88 : vector<1x256xi32>
    %90 = arith.select %85, %83, %89 : vector<1x256xi1>, vector<1x256xi32>
    %91 = vector.broadcast %90 : vector<1x256xi32> to vector<64x256xi32>
    %92 = arith.cmpi eq, %6, %91 : vector<64x256xi32>
    %93 = arith.extui %92 : vector<64x256xi1> to vector<64x256xi32>
    %94 = arith.sitofp %93 : vector<64x256xi32> to vector<64x256xf32>
    %cst_30 = arith.constant dense<0.000000e+00> : vector<8x256xf32>
    %95 = tpu.matmul %0, %94, %cst_30 {dimension_numbers = #tpu.dot_dimension_numbers<[1], [0], [0], [1], [0, 0, 1, 1], [], []>} : vector<8x64xf32>, vector<64x256xf32>, vector<8x256xf32> -> vector<8x256xf32>
    %c0_31 = arith.constant 0 : index
    %c0_32 = arith.constant 0 : index
    %c256 = arith.constant 256 : index
    %96 = vector.load %arg6[%c0_31, %c0_32, %c256] : memref<1x8x4096xf32, #tpu.memory_space<vmem>>, vector<1x8x256xf32>
    %97 = vector.shape_cast %96 : vector<1x8x256xf32> to vector<8x256xf32>
    %98 = vector.shape_cast %95 : vector<8x256xf32> to vector<1x8x256xf32>
    tpu.vector_store %arg6[%c0_31, %c0_32, %c256], %98 {strides = array<i32>} : memref<1x8x4096xf32, #tpu.memory_space<vmem>>, vector<1x8x256xf32>,
    %c16_i32_33 = arith.constant 16 : i32
    %99 = arith.muli %arg1, %c16_i32_33 : i32
    %c2_i32 = arith.constant 2 : i32
    %100 = arith.addi %99, %c2_i32 : i32
    %101 = arith.index_cast %arg0 : i32 to index
    %102 = arith.index_cast %100 : i32 to index
    %103 = memref.load %arg2[%101, %102] : memref<2x32xi32, #tpu.memory_space<smem>>
    %104 = vector.extract_strided_slice %5 {offsets = [2, 0], sizes = [1, 256], strides = [1, 1]} : vector<16x256xi32> to vector<1x256xi32>
    %105 = vector.broadcast %103 : i32 to vector<1x256xi32>
    %106 = arith.subi %2, %105 : vector<1x256xi32>
    %c0_i32_34 = arith.constant 0 : i32
    %107 = vector.broadcast %c0_i32_34 : i32 to vector<1x256xi32>
    %108 = arith.cmpi sgt, %106, %107 : vector<1x256xi32>
    %109 = arith.extui %108 : vector<1x256xi1> to vector<1x256xi32>
    %c16_i32_35 = arith.constant 16 : i32
    %110 = vector.broadcast %c16_i32_35 : i32 to vector<1x256xi32>
    %111 = arith.muli %109, %110 : vector<1x256xi32>
    %112 = math.absi %106 : vector<1x256xi32>
    %c8_i32_36 = arith.constant 8 : i32
    %113 = vector.broadcast %c8_i32_36 : i32 to vector<1x256xi32>
    %114 = arith.cmpi slt, %112, %113 : vector<1x256xi32>
    %c1_i32_37 = arith.constant 1 : i32
    %115 = vector.broadcast %c1_i32_37 : i32 to vector<1x256xi32>
    %116 = arith.maxsi %112, %115 : vector<1x256xi32>
    %117 = arith.sitofp %116 : vector<1x256xi32> to vector<1x256xf32>
    %cst_38 = arith.constant 1.250000e-01 : f32
    %118 = vector.broadcast %cst_38 : f32 to vector<1x256xf32>
    %119 = arith.mulf %117, %118 : vector<1x256xf32>
    %120 = math.log %119 : vector<1x256xf32>
    %cst_39 = arith.constant 2.885390e+00 : f32
    %121 = vector.broadcast %cst_39 : f32 to vector<1x256xf32>
    %122 = arith.mulf %120, %121 : vector<1x256xf32>
    %123 = arith.fptosi %122 : vector<1x256xf32> to vector<1x256xi32>
    %c8_i32_40 = arith.constant 8 : i32
    %124 = vector.broadcast %c8_i32_40 : i32 to vector<1x256xi32>
    %125 = arith.addi %124, %123 : vector<1x256xi32>
    %c15_i32_41 = arith.constant 15 : i32
    %126 = vector.broadcast %c15_i32_41 : i32 to vector<1x256xi32>
    %127 = arith.minsi %125, %126 : vector<1x256xi32>
    %128 = arith.select %114, %112, %127 : vector<1x256xi1>, vector<1x256xi32>
    %129 = arith.addi %111, %128 : vector<1x256xi32>
    %c0_i32_42 = arith.constant 0 : i32
    %130 = vector.broadcast %c0_i32_42 : i32 to vector<1x256xi32>
    %131 = arith.cmpi eq, %104, %130 : vector<1x256xi32>
    %c1_i32_43 = arith.constant 1 : i32
    %132 = vector.broadcast %c1_i32_43 : i32 to vector<1x256xi32>
    %133 = arith.subi %104, %132 : vector<1x256xi32>
    %c32_i32_44 = arith.constant 32 : i32
    %134 = vector.broadcast %c32_i32_44 : i32 to vector<1x256xi32>
    %135 = arith.addi %133, %134 : vector<1x256xi32>
    %136 = arith.select %131, %129, %135 : vector<1x256xi1>, vector<1x256xi32>
    %137 = vector.broadcast %136 : vector<1x256xi32> to vector<64x256xi32>
    %138 = arith.cmpi eq, %6, %137 : vector<64x256xi32>
    %139 = arith.extui %138 : vector<64x256xi1> to vector<64x256xi32>
    %140 = arith.sitofp %139 : vector<64x256xi32> to vector<64x256xf32>
    %cst_45 = arith.constant dense<0.000000e+00> : vector<8x256xf32>
    %141 = tpu.matmul %0, %140, %cst_45 {dimension_numbers = #tpu.dot_dimension_numbers<[1], [0], [0], [1], [0, 0, 1, 1], [], []>} : vector<8x64xf32>, vector<64x256xf32>, vector<8x256xf32> -> vector<8x256xf32>
    %c0_46 = arith.constant 0 : index
    %c0_47 = arith.constant 0 : index
    %c512 = arith.constant 512 : index
    %142 = vector.load %arg6[%c0_46, %c0_47, %c512] : memref<1x8x4096xf32, #tpu.memory_space<vmem>>, vector<1x8x256xf32>
    %143 = vector.shape_cast %142 : vector<1x8x256xf32> to vector<8x256xf32>
    %144 = vector.shape_cast %141 : vector<8x256xf32> to vector<1x8x256xf32>
    tpu.vector_store %arg6[%c0_46, %c0_47, %c512], %144 {strides = array<i32>} : memref<1x8x4096xf32, #tpu.memory_space<vmem>>, vector<1x8x256xf32>,
    %c16_i32_48 = arith.constant 16 : i32
    %145 = arith.muli %arg1, %c16_i32_48 : i32
    %c3_i32 = arith.constant 3 : i32
    %146 = arith.addi %145, %c3_i32 : i32
    %147 = arith.index_cast %arg0 : i32 to index
    %148 = arith.index_cast %146 : i32 to index
    %149 = memref.load %arg2[%147, %148] : memref<2x32xi32, #tpu.memory_space<smem>>
    %150 = vector.extract_strided_slice %5 {offsets = [3, 0], sizes = [1, 256], strides = [1, 1]} : vector<16x256xi32> to vector<1x256xi32>
    %151 = vector.broadcast %149 : i32 to vector<1x256xi32>
    %152 = arith.subi %2, %151 : vector<1x256xi32>
    %c0_i32_49 = arith.constant 0 : i32
    %153 = vector.broadcast %c0_i32_49 : i32 to vector<1x256xi32>
    %154 = arith.cmpi sgt, %152, %153 : vector<1x256xi32>
    %155 = arith.extui %154 : vector<1x256xi1> to vector<1x256xi32>
    %c16_i32_50 = arith.constant 16 : i32
    %156 = vector.broadcast %c16_i32_50 : i32 to vector<1x256xi32>
    %157 = arith.muli %155, %156 : vector<1x256xi32>
    %158 = math.absi %152 : vector<1x256xi32>
    %c8_i32_51 = arith.constant 8 : i32
    %159 = vector.broadcast %c8_i32_51 : i32 to vector<1x256xi32>
    %160 = arith.cmpi slt, %158, %159 : vector<1x256xi32>
    %c1_i32_52 = arith.constant 1 : i32
    %161 = vector.broadcast %c1_i32_52 : i32 to vector<1x256xi32>
    %162 = arith.maxsi %158, %161 : vector<1x256xi32>
    %163 = arith.sitofp %162 : vector<1x256xi32> to vector<1x256xf32>
    %cst_53 = arith.constant 1.250000e-01 : f32
    %164 = vector.broadcast %cst_53 : f32 to vector<1x256xf32>
    %165 = arith.mulf %163, %164 : vector<1x256xf32>
    %166 = math.log %165 : vector<1x256xf32>
    %cst_54 = arith.constant 2.885390e+00 : f32
    %167 = vector.broadcast %cst_54 : f32 to vector<1x256xf32>
    %168 = arith.mulf %166, %167 : vector<1x256xf32>
    %169 = arith.fptosi %168 : vector<1x256xf32> to vector<1x256xi32>
    %c8_i32_55 = arith.constant 8 : i32
    %170 = vector.broadcast %c8_i32_55 : i32 to vector<1x256xi32>
    %171 = arith.addi %170, %169 : vector<1x256xi32>
    %c15_i32_56 = arith.constant 15 : i32
    %172 = vector.broadcast %c15_i32_56 : i32 to vector<1x256xi32>
    %173 = arith.minsi %171, %172 : vector<1x256xi32>
    %174 = arith.select %160, %158, %173 : vector<1x256xi1>, vector<1x256xi32>
    %175 = arith.addi %157, %174 : vector<1x256xi32>
    %c0_i32_57 = arith.constant 0 : i32
    %176 = vector.broadcast %c0_i32_57 : i32 to vector<1x256xi32>
    %177 = arith.cmpi eq, %150, %176 : vector<1x256xi32>
    %c1_i32_58 = arith.constant 1 : i32
    %178 = vector.broadcast %c1_i32_58 : i32 to vector<1x256xi32>
    %179 = arith.subi %150, %178 : vector<1x256xi32>
    %c32_i32_59 = arith.constant 32 : i32
    %180 = vector.broadcast %c32_i32_59 : i32 to vector<1x256xi32>
    %181 = arith.addi %179, %180 : vector<1x256xi32>
    %182 = arith.select %177, %175, %181 : vector<1x256xi1>, vector<1x256xi32>
    %183 = vector.broadcast %182 : vector<1x256xi32> to vector<64x256xi32>
    %184 = arith.cmpi eq, %6, %183 : vector<64x256xi32>
    %185 = arith.extui %184 : vector<64x256xi1> to vector<64x256xi32>
    %186 = arith.sitofp %185 : vector<64x256xi32> to vector<64x256xf32>
    %cst_60 = arith.constant dense<0.000000e+00> : vector<8x256xf32>
    %187 = tpu.matmul %0, %186, %cst_60 {dimension_numbers = #tpu.dot_dimension_numbers<[1], [0], [0], [1], [0, 0, 1, 1], [], []>} : vector<8x64xf32>, vector<64x256xf32>, vector<8x256xf32> -> vector<8x256xf32>
    %c0_61 = arith.constant 0 : index
    %c0_62 = arith.constant 0 : index
    %c768 = arith.constant 768 : index
    %188 = vector.load %arg6[%c0_61, %c0_62, %c768] : memref<1x8x4096xf32, #tpu.memory_space<vmem>>, vector<1x8x256xf32>
    %189 = vector.shape_cast %188 : vector<1x8x256xf32> to vector<8x256xf32>
    %190 = vector.shape_cast %187 : vector<8x256xf32> to vector<1x8x256xf32>
    tpu.vector_store %arg6[%c0_61, %c0_62, %c768], %190 {strides = array<i32>} : memref<1x8x4096xf32, #tpu.memory_space<vmem>>, vector<1x8x256xf32>,
    %c16_i32_63 = arith.constant 16 : i32
    %191 = arith.muli %arg1, %c16_i32_63 : i32
    %c4_i32 = arith.constant 4 : i32
    %192 = arith.addi %191, %c4_i32 : i32
    %193 = arith.index_cast %arg0 : i32 to index
    %194 = arith.index_cast %192 : i32 to index
    %195 = memref.load %arg2[%193, %194] : memref<2x32xi32, #tpu.memory_space<smem>>
    %196 = vector.extract_strided_slice %5 {offsets = [4, 0], sizes = [1, 256], strides = [1, 1]} : vector<16x256xi32> to vector<1x256xi32>
    %197 = vector.broadcast %195 : i32 to vector<1x256xi32>
    %198 = arith.subi %2, %197 : vector<1x256xi32>
    %c0_i32_64 = arith.constant 0 : i32
    %199 = vector.broadcast %c0_i32_64 : i32 to vector<1x256xi32>
    %200 = arith.cmpi sgt, %198, %199 : vector<1x256xi32>
    %201 = arith.extui %200 : vector<1x256xi1> to vector<1x256xi32>
    %c16_i32_65 = arith.constant 16 : i32
    %202 = vector.broadcast %c16_i32_65 : i32 to vector<1x256xi32>
    %203 = arith.muli %201, %202 : vector<1x256xi32>
    %204 = math.absi %198 : vector<1x256xi32>
    %c8_i32_66 = arith.constant 8 : i32
    %205 = vector.broadcast %c8_i32_66 : i32 to vector<1x256xi32>
    %206 = arith.cmpi slt, %204, %205 : vector<1x256xi32>
    %c1_i32_67 = arith.constant 1 : i32
    %207 = vector.broadcast %c1_i32_67 : i32 to vector<1x256xi32>
    %208 = arith.maxsi %204, %207 : vector<1x256xi32>
    %209 = arith.sitofp %208 : vector<1x256xi32> to vector<1x256xf32>
    %cst_68 = arith.constant 1.250000e-01 : f32
    %210 = vector.broadcast %cst_68 : f32 to vector<1x256xf32>
    %211 = arith.mulf %209, %210 : vector<1x256xf32>
    %212 = math.log %211 : vector<1x256xf32>
    %cst_69 = arith.constant 2.885390e+00 : f32
    %213 = vector.broadcast %cst_69 : f32 to vector<1x256xf32>
    %214 = arith.mulf %212, %213 : vector<1x256xf32>
    %215 = arith.fptosi %214 : vector<1x256xf32> to vector<1x256xi32>
    %c8_i32_70 = arith.constant 8 : i32
    %216 = vector.broadcast %c8_i32_70 : i32 to vector<1x256xi32>
    %217 = arith.addi %216, %215 : vector<1x256xi32>
    %c15_i32_71 = arith.constant 15 : i32
    %218 = vector.broadcast %c15_i32_71 : i32 to vector<1x256xi32>
    %219 = arith.minsi %217, %218 : vector<1x256xi32>
    %220 = arith.select %206, %204, %219 : vector<1x256xi1>, vector<1x256xi32>
    %221 = arith.addi %203, %220 : vector<1x256xi32>
    %c0_i32_72 = arith.constant 0 : i32
    %222 = vector.broadcast %c0_i32_72 : i32 to vector<1x256xi32>
    %223 = arith.cmpi eq, %196, %222 : vector<1x256xi32>
    %c1_i32_73 = arith.constant 1 : i32
    %224 = vector.broadcast %c1_i32_73 : i32 to vector<1x256xi32>
    %225 = arith.subi %196, %224 : vector<1x256xi32>
    %c32_i32_74 = arith.constant 32 : i32
    %226 = vector.broadcast %c32_i32_74 : i32 to vector<1x256xi32>
    %227 = arith.addi %225, %226 : vector<1x256xi32>
    %228 = arith.select %223, %221, %227 : vector<1x256xi1>, vector<1x256xi32>
    %229 = vector.broadcast %228 : vector<1x256xi32> to vector<64x256xi32>
    %230 = arith.cmpi eq, %6, %229 : vector<64x256xi32>
    %231 = arith.extui %230 : vector<64x256xi1> to vector<64x256xi32>
    %232 = arith.sitofp %231 : vector<64x256xi32> to vector<64x256xf32>
    %cst_75 = arith.constant dense<0.000000e+00> : vector<8x256xf32>
    %233 = tpu.matmul %0, %232, %cst_75 {dimension_numbers = #tpu.dot_dimension_numbers<[1], [0], [0], [1], [0, 0, 1, 1], [], []>} : vector<8x64xf32>, vector<64x256xf32>, vector<8x256xf32> -> vector<8x256xf32>
    %c0_76 = arith.constant 0 : index
    %c0_77 = arith.constant 0 : index
    %c1024 = arith.constant 1024 : index
    %234 = vector.load %arg6[%c0_76, %c0_77, %c1024] : memref<1x8x4096xf32, #tpu.memory_space<vmem>>, vector<1x8x256xf32>
    %235 = vector.shape_cast %234 : vector<1x8x256xf32> to vector<8x256xf32>
    %236 = vector.shape_cast %233 : vector<8x256xf32> to vector<1x8x256xf32>
    tpu.vector_store %arg6[%c0_76, %c0_77, %c1024], %236 {strides = array<i32>} : memref<1x8x4096xf32, #tpu.memory_space<vmem>>, vector<1x8x256xf32>,
    %c16_i32_78 = arith.constant 16 : i32
    %237 = arith.muli %arg1, %c16_i32_78 : i32
    %c5_i32 = arith.constant 5 : i32
    %238 = arith.addi %237, %c5_i32 : i32
    %239 = arith.index_cast %arg0 : i32 to index
    %240 = arith.index_cast %238 : i32 to index
    %241 = memref.load %arg2[%239, %240] : memref<2x32xi32, #tpu.memory_space<smem>>
    %242 = vector.extract_strided_slice %5 {offsets = [5, 0], sizes = [1, 256], strides = [1, 1]} : vector<16x256xi32> to vector<1x256xi32>
    %243 = vector.broadcast %241 : i32 to vector<1x256xi32>
    %244 = arith.subi %2, %243 : vector<1x256xi32>
    %c0_i32_79 = arith.constant 0 : i32
    %245 = vector.broadcast %c0_i32_79 : i32 to vector<1x256xi32>
    %246 = arith.cmpi sgt, %244, %245 : vector<1x256xi32>
    %247 = arith.extui %246 : vector<1x256xi1> to vector<1x256xi32>
    %c16_i32_80 = arith.constant 16 : i32
    %248 = vector.broadcast %c16_i32_80 : i32 to vector<1x256xi32>
    %249 = arith.muli %247, %248 : vector<1x256xi32>
    %250 = math.absi %244 : vector<1x256xi32>
    %c8_i32_81 = arith.constant 8 : i32
    %251 = vector.broadcast %c8_i32_81 : i32 to vector<1x256xi32>
    %252 = arith.cmpi slt, %250, %251 : vector<1x256xi32>
    %c1_i32_82 = arith.constant 1 : i32
    %253 = vector.broadcast %c1_i32_82 : i32 to vector<1x256xi32>
    %254 = arith.maxsi %250, %253 : vector<1x256xi32>
    %255 = arith.sitofp %254 : vector<1x256xi32> to vector<1x256xf32>
    %cst_83 = arith.constant 1.250000e-01 : f32
    %256 = vector.broadcast %cst_83 : f32 to vector<1x256xf32>
    %257 = arith.mulf %255, %256 : vector<1x256xf32>
    %258 = math.log %257 : vector<1x256xf32>
    %cst_84 = arith.constant 2.885390e+00 : f32
    %259 = vector.broadcast %cst_84 : f32 to vector<1x256xf32>
    %260 = arith.mulf %258, %259 : vector<1x256xf32>
    %261 = arith.fptosi %260 : vector<1x256xf32> to vector<1x256xi32>
    %c8_i32_85 = arith.constant 8 : i32
    %262 = vector.broadcast %c8_i32_85 : i32 to vector<1x256xi32>
    %263 = arith.addi %262, %261 : vector<1x256xi32>
    %c15_i32_86 = arith.constant 15 : i32
    %264 = vector.broadcast %c15_i32_86 : i32 to vector<1x256xi32>
    %265 = arith.minsi %263, %264 : vector<1x256xi32>
    %266 = arith.select %252, %250, %265 : vector<1x256xi1>, vector<1x256xi32>
    %267 = arith.addi %249, %266 : vector<1x256xi32>
    %c0_i32_87 = arith.constant 0 : i32
    %268 = vector.broadcast %c0_i32_87 : i32 to vector<1x256xi32>
    %269 = arith.cmpi eq, %242, %268 : vector<1x256xi32>
    %c1_i32_88 = arith.constant 1 : i32
    %270 = vector.broadcast %c1_i32_88 : i32 to vector<1x256xi32>
    %271 = arith.subi %242, %270 : vector<1x256xi32>
    %c32_i32_89 = arith.constant 32 : i32
    %272 = vector.broadcast %c32_i32_89 : i32 to vector<1x256xi32>
    %273 = arith.addi %271, %272 : vector<1x256xi32>
    %274 = arith.select %269, %267, %273 : vector<1x256xi1>, vector<1x256xi32>
    %275 = vector.broadcast %274 : vector<1x256xi32> to vector<64x256xi32>
    %276 = arith.cmpi eq, %6, %275 : vector<64x256xi32>
    %277 = arith.extui %276 : vector<64x256xi1> to vector<64x256xi32>
    %278 = arith.sitofp %277 : vector<64x256xi32> to vector<64x256xf32>
    %cst_90 = arith.constant dense<0.000000e+00> : vector<8x256xf32>
    %279 = tpu.matmul %0, %278, %cst_90 {dimension_numbers = #tpu.dot_dimension_numbers<[1], [0], [0], [1], [0, 0, 1, 1], [], []>} : vector<8x64xf32>, vector<64x256xf32>, vector<8x256xf32> -> vector<8x256xf32>
    %c0_91 = arith.constant 0 : index
    %c0_92 = arith.constant 0 : index
    %c1280 = arith.constant 1280 : index
    %280 = vector.load %arg6[%c0_91, %c0_92, %c1280] : memref<1x8x4096xf32, #tpu.memory_space<vmem>>, vector<1x8x256xf32>
    %281 = vector.shape_cast %280 : vector<1x8x256xf32> to vector<8x256xf32>
    %282 = vector.shape_cast %279 : vector<8x256xf32> to vector<1x8x256xf32>
    tpu.vector_store %arg6[%c0_91, %c0_92, %c1280], %282 {strides = array<i32>} : memref<1x8x4096xf32, #tpu.memory_space<vmem>>, vector<1x8x256xf32>,
    %c16_i32_93 = arith.constant 16 : i32
    %283 = arith.muli %arg1, %c16_i32_93 : i32
    %c6_i32 = arith.constant 6 : i32
    %284 = arith.addi %283, %c6_i32 : i32
    %285 = arith.index_cast %arg0 : i32 to index
    %286 = arith.index_cast %284 : i32 to index
    %287 = memref.load %arg2[%285, %286] : memref<2x32xi32, #tpu.memory_space<smem>>
    %288 = vector.extract_strided_slice %5 {offsets = [6, 0], sizes = [1, 256], strides = [1, 1]} : vector<16x256xi32> to vector<1x256xi32>
    %289 = vector.broadcast %287 : i32 to vector<1x256xi32>
    %290 = arith.subi %2, %289 : vector<1x256xi32>
    %c0_i32_94 = arith.constant 0 : i32
    %291 = vector.broadcast %c0_i32_94 : i32 to vector<1x256xi32>
    %292 = arith.cmpi sgt, %290, %291 : vector<1x256xi32>
    %293 = arith.extui %292 : vector<1x256xi1> to vector<1x256xi32>
    %c16_i32_95 = arith.constant 16 : i32
    %294 = vector.broadcast %c16_i32_95 : i32 to vector<1x256xi32>
    %295 = arith.muli %293, %294 : vector<1x256xi32>
    %296 = math.absi %290 : vector<1x256xi32>
    %c8_i32_96 = arith.constant 8 : i32
    %297 = vector.broadcast %c8_i32_96 : i32 to vector<1x256xi32>
    %298 = arith.cmpi slt, %296, %297 : vector<1x256xi32>
    %c1_i32_97 = arith.constant 1 : i32
    %299 = vector.broadcast %c1_i32_97 : i32 to vector<1x256xi32>
    %300 = arith.maxsi %296, %299 : vector<1x256xi32>
    %301 = arith.sitofp %300 : vector<1x256xi32> to vector<1x256xf32>
    %cst_98 = arith.constant 1.250000e-01 : f32
    %302 = vector.broadcast %cst_98 : f32 to vector<1x256xf32>
    %303 = arith.mulf %301, %302 : vector<1x256xf32>
    %304 = math.log %303 : vector<1x256xf32>
    %cst_99 = arith.constant 2.885390e+00 : f32
    %305 = vector.broadcast %cst_99 : f32 to vector<1x256xf32>
    %306 = arith.mulf %304, %305 : vector<1x256xf32>
    %307 = arith.fptosi %306 : vector<1x256xf32> to vector<1x256xi32>
    %c8_i32_100 = arith.constant 8 : i32
    %308 = vector.broadcast %c8_i32_100 : i32 to vector<1x256xi32>
    %309 = arith.addi %308, %307 : vector<1x256xi32>
    %c15_i32_101 = arith.constant 15 : i32
    %310 = vector.broadcast %c15_i32_101 : i32 to vector<1x256xi32>
    %311 = arith.minsi %309, %310 : vector<1x256xi32>
    %312 = arith.select %298, %296, %311 : vector<1x256xi1>, vector<1x256xi32>
    %313 = arith.addi %295, %312 : vector<1x256xi32>
    %c0_i32_102 = arith.constant 0 : i32
    %314 = vector.broadcast %c0_i32_102 : i32 to vector<1x256xi32>
    %315 = arith.cmpi eq, %288, %314 : vector<1x256xi32>
    %c1_i32_103 = arith.constant 1 : i32
    %316 = vector.broadcast %c1_i32_103 : i32 to vector<1x256xi32>
    %317 = arith.subi %288, %316 : vector<1x256xi32>
    %c32_i32_104 = arith.constant 32 : i32
    %318 = vector.broadcast %c32_i32_104 : i32 to vector<1x256xi32>
    %319 = arith.addi %317, %318 : vector<1x256xi32>
    %320 = arith.select %315, %313, %319 : vector<1x256xi1>, vector<1x256xi32>
    %321 = vector.broadcast %320 : vector<1x256xi32> to vector<64x256xi32>
    %322 = arith.cmpi eq, %6, %321 : vector<64x256xi32>
    %323 = arith.extui %322 : vector<64x256xi1> to vector<64x256xi32>
    %324 = arith.sitofp %323 : vector<64x256xi32> to vector<64x256xf32>
    %cst_105 = arith.constant dense<0.000000e+00> : vector<8x256xf32>
    %325 = tpu.matmul %0, %324, %cst_105 {dimension_numbers = #tpu.dot_dimension_numbers<[1], [0], [0], [1], [0, 0, 1, 1], [], []>} : vector<8x64xf32>, vector<64x256xf32>, vector<8x256xf32> -> vector<8x256xf32>
    %c0_106 = arith.constant 0 : index
    %c0_107 = arith.constant 0 : index
    %c1536 = arith.constant 1536 : index
    %326 = vector.load %arg6[%c0_106, %c0_107, %c1536] : memref<1x8x4096xf32, #tpu.memory_space<vmem>>, vector<1x8x256xf32>
    %327 = vector.shape_cast %326 : vector<1x8x256xf32> to vector<8x256xf32>
    %328 = vector.shape_cast %325 : vector<8x256xf32> to vector<1x8x256xf32>
    tpu.vector_store %arg6[%c0_106, %c0_107, %c1536], %328 {strides = array<i32>} : memref<1x8x4096xf32, #tpu.memory_space<vmem>>, vector<1x8x256xf32>,
    %c16_i32_108 = arith.constant 16 : i32
    %329 = arith.muli %arg1, %c16_i32_108 : i32
    %c7_i32 = arith.constant 7 : i32
    %330 = arith.addi %329, %c7_i32 : i32
    %331 = arith.index_cast %arg0 : i32 to index
    %332 = arith.index_cast %330 : i32 to index
    %333 = memref.load %arg2[%331, %332] : memref<2x32xi32, #tpu.memory_space<smem>>
    %334 = vector.extract_strided_slice %5 {offsets = [7, 0], sizes = [1, 256], strides = [1, 1]} : vector<16x256xi32> to vector<1x256xi32>
    %335 = vector.broadcast %333 : i32 to vector<1x256xi32>
    %336 = arith.subi %2, %335 : vector<1x256xi32>
    %c0_i32_109 = arith.constant 0 : i32
    %337 = vector.broadcast %c0_i32_109 : i32 to vector<1x256xi32>
    %338 = arith.cmpi sgt, %336, %337 : vector<1x256xi32>
    %339 = arith.extui %338 : vector<1x256xi1> to vector<1x256xi32>
    %c16_i32_110 = arith.constant 16 : i32
    %340 = vector.broadcast %c16_i32_110 : i32 to vector<1x256xi32>
    %341 = arith.muli %339, %340 : vector<1x256xi32>
    %342 = math.absi %336 : vector<1x256xi32>
    %c8_i32_111 = arith.constant 8 : i32
    %343 = vector.broadcast %c8_i32_111 : i32 to vector<1x256xi32>
    %344 = arith.cmpi slt, %342, %343 : vector<1x256xi32>
    %c1_i32_112 = arith.constant 1 : i32
    %345 = vector.broadcast %c1_i32_112 : i32 to vector<1x256xi32>
    %346 = arith.maxsi %342, %345 : vector<1x256xi32>
    %347 = arith.sitofp %346 : vector<1x256xi32> to vector<1x256xf32>
    %cst_113 = arith.constant 1.250000e-01 : f32
    %348 = vector.broadcast %cst_113 : f32 to vector<1x256xf32>
    %349 = arith.mulf %347, %348 : vector<1x256xf32>
    %350 = math.log %349 : vector<1x256xf32>
    %cst_114 = arith.constant 2.885390e+00 : f32
    %351 = vector.broadcast %cst_114 : f32 to vector<1x256xf32>
    %352 = arith.mulf %350, %351 : vector<1x256xf32>
    %353 = arith.fptosi %352 : vector<1x256xf32> to vector<1x256xi32>
    %c8_i32_115 = arith.constant 8 : i32
    %354 = vector.broadcast %c8_i32_115 : i32 to vector<1x256xi32>
    %355 = arith.addi %354, %353 : vector<1x256xi32>
    %c15_i32_116 = arith.constant 15 : i32
    %356 = vector.broadcast %c15_i32_116 : i32 to vector<1x256xi32>
    %357 = arith.minsi %355, %356 : vector<1x256xi32>
    %358 = arith.select %344, %342, %357 : vector<1x256xi1>, vector<1x256xi32>
    %359 = arith.addi %341, %358 : vector<1x256xi32>
    %c0_i32_117 = arith.constant 0 : i32
    %360 = vector.broadcast %c0_i32_117 : i32 to vector<1x256xi32>
    %361 = arith.cmpi eq, %334, %360 : vector<1x256xi32>
    %c1_i32_118 = arith.constant 1 : i32
    %362 = vector.broadcast %c1_i32_118 : i32 to vector<1x256xi32>
    %363 = arith.subi %334, %362 : vector<1x256xi32>
    %c32_i32_119 = arith.constant 32 : i32
    %364 = vector.broadcast %c32_i32_119 : i32 to vector<1x256xi32>
    %365 = arith.addi %363, %364 : vector<1x256xi32>
    %366 = arith.select %361, %359, %365 : vector<1x256xi1>, vector<1x256xi32>
    %367 = vector.broadcast %366 : vector<1x256xi32> to vector<64x256xi32>
    %368 = arith.cmpi eq, %6, %367 : vector<64x256xi32>
    %369 = arith.extui %368 : vector<64x256xi1> to vector<64x256xi32>
    %370 = arith.sitofp %369 : vector<64x256xi32> to vector<64x256xf32>
    %cst_120 = arith.constant dense<0.000000e+00> : vector<8x256xf32>
    %371 = tpu.matmul %0, %370, %cst_120 {dimension_numbers = #tpu.dot_dimension_numbers<[1], [0], [0], [1], [0, 0, 1, 1], [], []>} : vector<8x64xf32>, vector<64x256xf32>, vector<8x256xf32> -> vector<8x256xf32>
    %c0_121 = arith.constant 0 : index
    %c0_122 = arith.constant 0 : index
    %c1792 = arith.constant 1792 : index
    %372 = vector.load %arg6[%c0_121, %c0_122, %c1792] : memref<1x8x4096xf32, #tpu.memory_space<vmem>>, vector<1x8x256xf32>
    %373 = vector.shape_cast %372 : vector<1x8x256xf32> to vector<8x256xf32>
    %374 = vector.shape_cast %371 : vector<8x256xf32> to vector<1x8x256xf32>
    tpu.vector_store %arg6[%c0_121, %c0_122, %c1792], %374 {strides = array<i32>} : memref<1x8x4096xf32, #tpu.memory_space<vmem>>, vector<1x8x256xf32>,
    %c16_i32_123 = arith.constant 16 : i32
    %375 = arith.muli %arg1, %c16_i32_123 : i32
    %c8_i32_124 = arith.constant 8 : i32
    %376 = arith.addi %375, %c8_i32_124 : i32
    %377 = arith.index_cast %arg0 : i32 to index
    %378 = arith.index_cast %376 : i32 to index
    %379 = memref.load %arg2[%377, %378] : memref<2x32xi32, #tpu.memory_space<smem>>
    %380 = vector.extract_strided_slice %5 {offsets = [8, 0], sizes = [1, 256], strides = [1, 1]} : vector<16x256xi32> to vector<1x256xi32>
    %381 = vector.broadcast %379 : i32 to vector<1x256xi32>
    %382 = arith.subi %2, %381 : vector<1x256xi32>
    %c0_i32_125 = arith.constant 0 : i32
    %383 = vector.broadcast %c0_i32_125 : i32 to vector<1x256xi32>
    %384 = arith.cmpi sgt, %382, %383 : vector<1x256xi32>
    %385 = arith.extui %384 : vector<1x256xi1> to vector<1x256xi32>
    %c16_i32_126 = arith.constant 16 : i32
    %386 = vector.broadcast %c16_i32_126 : i32 to vector<1x256xi32>
    %387 = arith.muli %385, %386 : vector<1x256xi32>
    %388 = math.absi %382 : vector<1x256xi32>
    %c8_i32_127 = arith.constant 8 : i32
    %389 = vector.broadcast %c8_i32_127 : i32 to vector<1x256xi32>
    %390 = arith.cmpi slt, %388, %389 : vector<1x256xi32>
    %c1_i32_128 = arith.constant 1 : i32
    %391 = vector.broadcast %c1_i32_128 : i32 to vector<1x256xi32>
    %392 = arith.maxsi %388, %391 : vector<1x256xi32>
    %393 = arith.sitofp %392 : vector<1x256xi32> to vector<1x256xf32>
    %cst_129 = arith.constant 1.250000e-01 : f32
    %394 = vector.broadcast %cst_129 : f32 to vector<1x256xf32>
    %395 = arith.mulf %393, %394 : vector<1x256xf32>
    %396 = math.log %395 : vector<1x256xf32>
    %cst_130 = arith.constant 2.885390e+00 : f32
    %397 = vector.broadcast %cst_130 : f32 to vector<1x256xf32>
    %398 = arith.mulf %396, %397 : vector<1x256xf32>
    %399 = arith.fptosi %398 : vector<1x256xf32> to vector<1x256xi32>
    %c8_i32_131 = arith.constant 8 : i32
    %400 = vector.broadcast %c8_i32_131 : i32 to vector<1x256xi32>
    %401 = arith.addi %400, %399 : vector<1x256xi32>
    %c15_i32_132 = arith.constant 15 : i32
    %402 = vector.broadcast %c15_i32_132 : i32 to vector<1x256xi32>
    %403 = arith.minsi %401, %402 : vector<1x256xi32>
    %404 = arith.select %390, %388, %403 : vector<1x256xi1>, vector<1x256xi32>
    %405 = arith.addi %387, %404 : vector<1x256xi32>
    %c0_i32_133 = arith.constant 0 : i32
    %406 = vector.broadcast %c0_i32_133 : i32 to vector<1x256xi32>
    %407 = arith.cmpi eq, %380, %406 : vector<1x256xi32>
    %c1_i32_134 = arith.constant 1 : i32
    %408 = vector.broadcast %c1_i32_134 : i32 to vector<1x256xi32>
    %409 = arith.subi %380, %408 : vector<1x256xi32>
    %c32_i32_135 = arith.constant 32 : i32
    %410 = vector.broadcast %c32_i32_135 : i32 to vector<1x256xi32>
    %411 = arith.addi %409, %410 : vector<1x256xi32>
    %412 = arith.select %407, %405, %411 : vector<1x256xi1>, vector<1x256xi32>
    %413 = vector.broadcast %412 : vector<1x256xi32> to vector<64x256xi32>
    %414 = arith.cmpi eq, %6, %413 : vector<64x256xi32>
    %415 = arith.extui %414 : vector<64x256xi1> to vector<64x256xi32>
    %416 = arith.sitofp %415 : vector<64x256xi32> to vector<64x256xf32>
    %cst_136 = arith.constant dense<0.000000e+00> : vector<8x256xf32>
    %417 = tpu.matmul %0, %416, %cst_136 {dimension_numbers = #tpu.dot_dimension_numbers<[1], [0], [0], [1], [0, 0, 1, 1], [], []>} : vector<8x64xf32>, vector<64x256xf32>, vector<8x256xf32> -> vector<8x256xf32>
    %c0_137 = arith.constant 0 : index
    %c0_138 = arith.constant 0 : index
    %c2048 = arith.constant 2048 : index
    %418 = vector.load %arg6[%c0_137, %c0_138, %c2048] : memref<1x8x4096xf32, #tpu.memory_space<vmem>>, vector<1x8x256xf32>
    %419 = vector.shape_cast %418 : vector<1x8x256xf32> to vector<8x256xf32>
    %420 = vector.shape_cast %417 : vector<8x256xf32> to vector<1x8x256xf32>
    tpu.vector_store %arg6[%c0_137, %c0_138, %c2048], %420 {strides = array<i32>} : memref<1x8x4096xf32, #tpu.memory_space<vmem>>, vector<1x8x256xf32>,
    %c16_i32_139 = arith.constant 16 : i32
    %421 = arith.muli %arg1, %c16_i32_139 : i32
    %c9_i32 = arith.constant 9 : i32
    %422 = arith.addi %421, %c9_i32 : i32
    %423 = arith.index_cast %arg0 : i32 to index
    %424 = arith.index_cast %422 : i32 to index
    %425 = memref.load %arg2[%423, %424] : memref<2x32xi32, #tpu.memory_space<smem>>
    %426 = vector.extract_strided_slice %5 {offsets = [9, 0], sizes = [1, 256], strides = [1, 1]} : vector<16x256xi32> to vector<1x256xi32>
    %427 = vector.broadcast %425 : i32 to vector<1x256xi32>
    %428 = arith.subi %2, %427 : vector<1x256xi32>
    %c0_i32_140 = arith.constant 0 : i32
    %429 = vector.broadcast %c0_i32_140 : i32 to vector<1x256xi32>
    %430 = arith.cmpi sgt, %428, %429 : vector<1x256xi32>
    %431 = arith.extui %430 : vector<1x256xi1> to vector<1x256xi32>
    %c16_i32_141 = arith.constant 16 : i32
    %432 = vector.broadcast %c16_i32_141 : i32 to vector<1x256xi32>
    %433 = arith.muli %431, %432 : vector<1x256xi32>
    %434 = math.absi %428 : vector<1x256xi32>
    %c8_i32_142 = arith.constant 8 : i32
    %435 = vector.broadcast %c8_i32_142 : i32 to vector<1x256xi32>
    %436 = arith.cmpi slt, %434, %435 : vector<1x256xi32>
    %c1_i32_143 = arith.constant 1 : i32
    %437 = vector.broadcast %c1_i32_143 : i32 to vector<1x256xi32>
    %438 = arith.maxsi %434, %437 : vector<1x256xi32>
    %439 = arith.sitofp %438 : vector<1x256xi32> to vector<1x256xf32>
    %cst_144 = arith.constant 1.250000e-01 : f32
    %440 = vector.broadcast %cst_144 : f32 to vector<1x256xf32>
    %441 = arith.mulf %439, %440 : vector<1x256xf32>
    %442 = math.log %441 : vector<1x256xf32>
    %cst_145 = arith.constant 2.885390e+00 : f32
    %443 = vector.broadcast %cst_145 : f32 to vector<1x256xf32>
    %444 = arith.mulf %442, %443 : vector<1x256xf32>
    %445 = arith.fptosi %444 : vector<1x256xf32> to vector<1x256xi32>
    %c8_i32_146 = arith.constant 8 : i32
    %446 = vector.broadcast %c8_i32_146 : i32 to vector<1x256xi32>
    %447 = arith.addi %446, %445 : vector<1x256xi32>
    %c15_i32_147 = arith.constant 15 : i32
    %448 = vector.broadcast %c15_i32_147 : i32 to vector<1x256xi32>
    %449 = arith.minsi %447, %448 : vector<1x256xi32>
    %450 = arith.select %436, %434, %449 : vector<1x256xi1>, vector<1x256xi32>
    %451 = arith.addi %433, %450 : vector<1x256xi32>
    %c0_i32_148 = arith.constant 0 : i32
    %452 = vector.broadcast %c0_i32_148 : i32 to vector<1x256xi32>
    %453 = arith.cmpi eq, %426, %452 : vector<1x256xi32>
    %c1_i32_149 = arith.constant 1 : i32
    %454 = vector.broadcast %c1_i32_149 : i32 to vector<1x256xi32>
    %455 = arith.subi %426, %454 : vector<1x256xi32>
    %c32_i32_150 = arith.constant 32 : i32
    %456 = vector.broadcast %c32_i32_150 : i32 to vector<1x256xi32>
    %457 = arith.addi %455, %456 : vector<1x256xi32>
    %458 = arith.select %453, %451, %457 : vector<1x256xi1>, vector<1x256xi32>
    %459 = vector.broadcast %458 : vector<1x256xi32> to vector<64x256xi32>
    %460 = arith.cmpi eq, %6, %459 : vector<64x256xi32>
    %461 = arith.extui %460 : vector<64x256xi1> to vector<64x256xi32>
    %462 = arith.sitofp %461 : vector<64x256xi32> to vector<64x256xf32>
    %cst_151 = arith.constant dense<0.000000e+00> : vector<8x256xf32>
    %463 = tpu.matmul %0, %462, %cst_151 {dimension_numbers = #tpu.dot_dimension_numbers<[1], [0], [0], [1], [0, 0, 1, 1], [], []>} : vector<8x64xf32>, vector<64x256xf32>, vector<8x256xf32> -> vector<8x256xf32>
    %c0_152 = arith.constant 0 : index
    %c0_153 = arith.constant 0 : index
    %c2304 = arith.constant 2304 : index
    %464 = vector.load %arg6[%c0_152, %c0_153, %c2304] : memref<1x8x4096xf32, #tpu.memory_space<vmem>>, vector<1x8x256xf32>
    %465 = vector.shape_cast %464 : vector<1x8x256xf32> to vector<8x256xf32>
    %466 = vector.shape_cast %463 : vector<8x256xf32> to vector<1x8x256xf32>
    tpu.vector_store %arg6[%c0_152, %c0_153, %c2304], %466 {strides = array<i32>} : memref<1x8x4096xf32, #tpu.memory_space<vmem>>, vector<1x8x256xf32>,
    %c16_i32_154 = arith.constant 16 : i32
    %467 = arith.muli %arg1, %c16_i32_154 : i32
    %c10_i32 = arith.constant 10 : i32
    %468 = arith.addi %467, %c10_i32 : i32
    %469 = arith.index_cast %arg0 : i32 to index
    %470 = arith.index_cast %468 : i32 to index
    %471 = memref.load %arg2[%469, %470] : memref<2x32xi32, #tpu.memory_space<smem>>
    %472 = vector.extract_strided_slice %5 {offsets = [10, 0], sizes = [1, 256], strides = [1, 1]} : vector<16x256xi32> to vector<1x256xi32>
    %473 = vector.broadcast %471 : i32 to vector<1x256xi32>
    %474 = arith.subi %2, %473 : vector<1x256xi32>
    %c0_i32_155 = arith.constant 0 : i32
    %475 = vector.broadcast %c0_i32_155 : i32 to vector<1x256xi32>
    %476 = arith.cmpi sgt, %474, %475 : vector<1x256xi32>
    %477 = arith.extui %476 : vector<1x256xi1> to vector<1x256xi32>
    %c16_i32_156 = arith.constant 16 : i32
    %478 = vector.broadcast %c16_i32_156 : i32 to vector<1x256xi32>
    %479 = arith.muli %477, %478 : vector<1x256xi32>
    %480 = math.absi %474 : vector<1x256xi32>
    %c8_i32_157 = arith.constant 8 : i32
    %481 = vector.broadcast %c8_i32_157 : i32 to vector<1x256xi32>
    %482 = arith.cmpi slt, %480, %481 : vector<1x256xi32>
    %c1_i32_158 = arith.constant 1 : i32
    %483 = vector.broadcast %c1_i32_158 : i32 to vector<1x256xi32>
    %484 = arith.maxsi %480, %483 : vector<1x256xi32>
    %485 = arith.sitofp %484 : vector<1x256xi32> to vector<1x256xf32>
    %cst_159 = arith.constant 1.250000e-01 : f32
    %486 = vector.broadcast %cst_159 : f32 to vector<1x256xf32>
    %487 = arith.mulf %485, %486 : vector<1x256xf32>
    %488 = math.log %487 : vector<1x256xf32>
    %cst_160 = arith.constant 2.885390e+00 : f32
    %489 = vector.broadcast %cst_160 : f32 to vector<1x256xf32>
    %490 = arith.mulf %488, %489 : vector<1x256xf32>
    %491 = arith.fptosi %490 : vector<1x256xf32> to vector<1x256xi32>
    %c8_i32_161 = arith.constant 8 : i32
    %492 = vector.broadcast %c8_i32_161 : i32 to vector<1x256xi32>
    %493 = arith.addi %492, %491 : vector<1x256xi32>
    %c15_i32_162 = arith.constant 15 : i32
    %494 = vector.broadcast %c15_i32_162 : i32 to vector<1x256xi32>
    %495 = arith.minsi %493, %494 : vector<1x256xi32>
    %496 = arith.select %482, %480, %495 : vector<1x256xi1>, vector<1x256xi32>
    %497 = arith.addi %479, %496 : vector<1x256xi32>
    %c0_i32_163 = arith.constant 0 : i32
    %498 = vector.broadcast %c0_i32_163 : i32 to vector<1x256xi32>
    %499 = arith.cmpi eq, %472, %498 : vector<1x256xi32>
    %c1_i32_164 = arith.constant 1 : i32
    %500 = vector.broadcast %c1_i32_164 : i32 to vector<1x256xi32>
    %501 = arith.subi %472, %500 : vector<1x256xi32>
    %c32_i32_165 = arith.constant 32 : i32
    %502 = vector.broadcast %c32_i32_165 : i32 to vector<1x256xi32>
    %503 = arith.addi %501, %502 : vector<1x256xi32>
    %504 = arith.select %499, %497, %503 : vector<1x256xi1>, vector<1x256xi32>
    %505 = vector.broadcast %504 : vector<1x256xi32> to vector<64x256xi32>
    %506 = arith.cmpi eq, %6, %505 : vector<64x256xi32>
    %507 = arith.extui %506 : vector<64x256xi1> to vector<64x256xi32>
    %508 = arith.sitofp %507 : vector<64x256xi32> to vector<64x256xf32>
    %cst_166 = arith.constant dense<0.000000e+00> : vector<8x256xf32>
    %509 = tpu.matmul %0, %508, %cst_166 {dimension_numbers = #tpu.dot_dimension_numbers<[1], [0], [0], [1], [0, 0, 1, 1], [], []>} : vector<8x64xf32>, vector<64x256xf32>, vector<8x256xf32> -> vector<8x256xf32>
    %c0_167 = arith.constant 0 : index
    %c0_168 = arith.constant 0 : index
    %c2560 = arith.constant 2560 : index
    %510 = vector.load %arg6[%c0_167, %c0_168, %c2560] : memref<1x8x4096xf32, #tpu.memory_space<vmem>>, vector<1x8x256xf32>
    %511 = vector.shape_cast %510 : vector<1x8x256xf32> to vector<8x256xf32>
    %512 = vector.shape_cast %509 : vector<8x256xf32> to vector<1x8x256xf32>
    tpu.vector_store %arg6[%c0_167, %c0_168, %c2560], %512 {strides = array<i32>} : memref<1x8x4096xf32, #tpu.memory_space<vmem>>, vector<1x8x256xf32>,
    %c16_i32_169 = arith.constant 16 : i32
    %513 = arith.muli %arg1, %c16_i32_169 : i32
    %c11_i32 = arith.constant 11 : i32
    %514 = arith.addi %513, %c11_i32 : i32
    %515 = arith.index_cast %arg0 : i32 to index
    %516 = arith.index_cast %514 : i32 to index
    %517 = memref.load %arg2[%515, %516] : memref<2x32xi32, #tpu.memory_space<smem>>
    %518 = vector.extract_strided_slice %5 {offsets = [11, 0], sizes = [1, 256], strides = [1, 1]} : vector<16x256xi32> to vector<1x256xi32>
    %519 = vector.broadcast %517 : i32 to vector<1x256xi32>
    %520 = arith.subi %2, %519 : vector<1x256xi32>
    %c0_i32_170 = arith.constant 0 : i32
    %521 = vector.broadcast %c0_i32_170 : i32 to vector<1x256xi32>
    %522 = arith.cmpi sgt, %520, %521 : vector<1x256xi32>
    %523 = arith.extui %522 : vector<1x256xi1> to vector<1x256xi32>
    %c16_i32_171 = arith.constant 16 : i32
    %524 = vector.broadcast %c16_i32_171 : i32 to vector<1x256xi32>
    %525 = arith.muli %523, %524 : vector<1x256xi32>
    %526 = math.absi %520 : vector<1x256xi32>
    %c8_i32_172 = arith.constant 8 : i32
    %527 = vector.broadcast %c8_i32_172 : i32 to vector<1x256xi32>
    %528 = arith.cmpi slt, %526, %527 : vector<1x256xi32>
    %c1_i32_173 = arith.constant 1 : i32
    %529 = vector.broadcast %c1_i32_173 : i32 to vector<1x256xi32>
    %530 = arith.maxsi %526, %529 : vector<1x256xi32>
    %531 = arith.sitofp %530 : vector<1x256xi32> to vector<1x256xf32>
    %cst_174 = arith.constant 1.250000e-01 : f32
    %532 = vector.broadcast %cst_174 : f32 to vector<1x256xf32>
    %533 = arith.mulf %531, %532 : vector<1x256xf32>
    %534 = math.log %533 : vector<1x256xf32>
    %cst_175 = arith.constant 2.885390e+00 : f32
    %535 = vector.broadcast %cst_175 : f32 to vector<1x256xf32>
    %536 = arith.mulf %534, %535 : vector<1x256xf32>
    %537 = arith.fptosi %536 : vector<1x256xf32> to vector<1x256xi32>
    %c8_i32_176 = arith.constant 8 : i32
    %538 = vector.broadcast %c8_i32_176 : i32 to vector<1x256xi32>
    %539 = arith.addi %538, %537 : vector<1x256xi32>
    %c15_i32_177 = arith.constant 15 : i32
    %540 = vector.broadcast %c15_i32_177 : i32 to vector<1x256xi32>
    %541 = arith.minsi %539, %540 : vector<1x256xi32>
    %542 = arith.select %528, %526, %541 : vector<1x256xi1>, vector<1x256xi32>
    %543 = arith.addi %525, %542 : vector<1x256xi32>
    %c0_i32_178 = arith.constant 0 : i32
    %544 = vector.broadcast %c0_i32_178 : i32 to vector<1x256xi32>
    %545 = arith.cmpi eq, %518, %544 : vector<1x256xi32>
    %c1_i32_179 = arith.constant 1 : i32
    %546 = vector.broadcast %c1_i32_179 : i32 to vector<1x256xi32>
    %547 = arith.subi %518, %546 : vector<1x256xi32>
    %c32_i32_180 = arith.constant 32 : i32
    %548 = vector.broadcast %c32_i32_180 : i32 to vector<1x256xi32>
    %549 = arith.addi %547, %548 : vector<1x256xi32>
    %550 = arith.select %545, %543, %549 : vector<1x256xi1>, vector<1x256xi32>
    %551 = vector.broadcast %550 : vector<1x256xi32> to vector<64x256xi32>
    %552 = arith.cmpi eq, %6, %551 : vector<64x256xi32>
    %553 = arith.extui %552 : vector<64x256xi1> to vector<64x256xi32>
    %554 = arith.sitofp %553 : vector<64x256xi32> to vector<64x256xf32>
    %cst_181 = arith.constant dense<0.000000e+00> : vector<8x256xf32>
    %555 = tpu.matmul %0, %554, %cst_181 {dimension_numbers = #tpu.dot_dimension_numbers<[1], [0], [0], [1], [0, 0, 1, 1], [], []>} : vector<8x64xf32>, vector<64x256xf32>, vector<8x256xf32> -> vector<8x256xf32>
    %c0_182 = arith.constant 0 : index
    %c0_183 = arith.constant 0 : index
    %c2816 = arith.constant 2816 : index
    %556 = vector.load %arg6[%c0_182, %c0_183, %c2816] : memref<1x8x4096xf32, #tpu.memory_space<vmem>>, vector<1x8x256xf32>
    %557 = vector.shape_cast %556 : vector<1x8x256xf32> to vector<8x256xf32>
    %558 = vector.shape_cast %555 : vector<8x256xf32> to vector<1x8x256xf32>
    tpu.vector_store %arg6[%c0_182, %c0_183, %c2816], %558 {strides = array<i32>} : memref<1x8x4096xf32, #tpu.memory_space<vmem>>, vector<1x8x256xf32>,
    %c16_i32_184 = arith.constant 16 : i32
    %559 = arith.muli %arg1, %c16_i32_184 : i32
    %c12_i32 = arith.constant 12 : i32
    %560 = arith.addi %559, %c12_i32 : i32
    %561 = arith.index_cast %arg0 : i32 to index
    %562 = arith.index_cast %560 : i32 to index
    %563 = memref.load %arg2[%561, %562] : memref<2x32xi32, #tpu.memory_space<smem>>
    %564 = vector.extract_strided_slice %5 {offsets = [12, 0], sizes = [1, 256], strides = [1, 1]} : vector<16x256xi32> to vector<1x256xi32>
    %565 = vector.broadcast %563 : i32 to vector<1x256xi32>
    %566 = arith.subi %2, %565 : vector<1x256xi32>
    %c0_i32_185 = arith.constant 0 : i32
    %567 = vector.broadcast %c0_i32_185 : i32 to vector<1x256xi32>
    %568 = arith.cmpi sgt, %566, %567 : vector<1x256xi32>
    %569 = arith.extui %568 : vector<1x256xi1> to vector<1x256xi32>
    %c16_i32_186 = arith.constant 16 : i32
    %570 = vector.broadcast %c16_i32_186 : i32 to vector<1x256xi32>
    %571 = arith.muli %569, %570 : vector<1x256xi32>
    %572 = math.absi %566 : vector<1x256xi32>
    %c8_i32_187 = arith.constant 8 : i32
    %573 = vector.broadcast %c8_i32_187 : i32 to vector<1x256xi32>
    %574 = arith.cmpi slt, %572, %573 : vector<1x256xi32>
    %c1_i32_188 = arith.constant 1 : i32
    %575 = vector.broadcast %c1_i32_188 : i32 to vector<1x256xi32>
    %576 = arith.maxsi %572, %575 : vector<1x256xi32>
    %577 = arith.sitofp %576 : vector<1x256xi32> to vector<1x256xf32>
    %cst_189 = arith.constant 1.250000e-01 : f32
    %578 = vector.broadcast %cst_189 : f32 to vector<1x256xf32>
    %579 = arith.mulf %577, %578 : vector<1x256xf32>
    %580 = math.log %579 : vector<1x256xf32>
    %cst_190 = arith.constant 2.885390e+00 : f32
    %581 = vector.broadcast %cst_190 : f32 to vector<1x256xf32>
    %582 = arith.mulf %580, %581 : vector<1x256xf32>
    %583 = arith.fptosi %582 : vector<1x256xf32> to vector<1x256xi32>
    %c8_i32_191 = arith.constant 8 : i32
    %584 = vector.broadcast %c8_i32_191 : i32 to vector<1x256xi32>
    %585 = arith.addi %584, %583 : vector<1x256xi32>
    %c15_i32_192 = arith.constant 15 : i32
    %586 = vector.broadcast %c15_i32_192 : i32 to vector<1x256xi32>
    %587 = arith.minsi %585, %586 : vector<1x256xi32>
    %588 = arith.select %574, %572, %587 : vector<1x256xi1>, vector<1x256xi32>
    %589 = arith.addi %571, %588 : vector<1x256xi32>
    %c0_i32_193 = arith.constant 0 : i32
    %590 = vector.broadcast %c0_i32_193 : i32 to vector<1x256xi32>
    %591 = arith.cmpi eq, %564, %590 : vector<1x256xi32>
    %c1_i32_194 = arith.constant 1 : i32
    %592 = vector.broadcast %c1_i32_194 : i32 to vector<1x256xi32>
    %593 = arith.subi %564, %592 : vector<1x256xi32>
    %c32_i32_195 = arith.constant 32 : i32
    %594 = vector.broadcast %c32_i32_195 : i32 to vector<1x256xi32>
    %595 = arith.addi %593, %594 : vector<1x256xi32>
    %596 = arith.select %591, %589, %595 : vector<1x256xi1>, vector<1x256xi32>
    %597 = vector.broadcast %596 : vector<1x256xi32> to vector<64x256xi32>
    %598 = arith.cmpi eq, %6, %597 : vector<64x256xi32>
    %599 = arith.extui %598 : vector<64x256xi1> to vector<64x256xi32>
    %600 = arith.sitofp %599 : vector<64x256xi32> to vector<64x256xf32>
    %cst_196 = arith.constant dense<0.000000e+00> : vector<8x256xf32>
    %601 = tpu.matmul %0, %600, %cst_196 {dimension_numbers = #tpu.dot_dimension_numbers<[1], [0], [0], [1], [0, 0, 1, 1], [], []>} : vector<8x64xf32>, vector<64x256xf32>, vector<8x256xf32> -> vector<8x256xf32>
    %c0_197 = arith.constant 0 : index
    %c0_198 = arith.constant 0 : index
    %c3072 = arith.constant 3072 : index
    %602 = vector.load %arg6[%c0_197, %c0_198, %c3072] : memref<1x8x4096xf32, #tpu.memory_space<vmem>>, vector<1x8x256xf32>
    %603 = vector.shape_cast %602 : vector<1x8x256xf32> to vector<8x256xf32>
    %604 = vector.shape_cast %601 : vector<8x256xf32> to vector<1x8x256xf32>
    tpu.vector_store %arg6[%c0_197, %c0_198, %c3072], %604 {strides = array<i32>} : memref<1x8x4096xf32, #tpu.memory_space<vmem>>, vector<1x8x256xf32>,
    %c16_i32_199 = arith.constant 16 : i32
    %605 = arith.muli %arg1, %c16_i32_199 : i32
    %c13_i32 = arith.constant 13 : i32
    %606 = arith.addi %605, %c13_i32 : i32
    %607 = arith.index_cast %arg0 : i32 to index
    %608 = arith.index_cast %606 : i32 to index
    %609 = memref.load %arg2[%607, %608] : memref<2x32xi32, #tpu.memory_space<smem>>
    %610 = vector.extract_strided_slice %5 {offsets = [13, 0], sizes = [1, 256], strides = [1, 1]} : vector<16x256xi32> to vector<1x256xi32>
    %611 = vector.broadcast %609 : i32 to vector<1x256xi32>
    %612 = arith.subi %2, %611 : vector<1x256xi32>
    %c0_i32_200 = arith.constant 0 : i32
    %613 = vector.broadcast %c0_i32_200 : i32 to vector<1x256xi32>
    %614 = arith.cmpi sgt, %612, %613 : vector<1x256xi32>
    %615 = arith.extui %614 : vector<1x256xi1> to vector<1x256xi32>
    %c16_i32_201 = arith.constant 16 : i32
    %616 = vector.broadcast %c16_i32_201 : i32 to vector<1x256xi32>
    %617 = arith.muli %615, %616 : vector<1x256xi32>
    %618 = math.absi %612 : vector<1x256xi32>
    %c8_i32_202 = arith.constant 8 : i32
    %619 = vector.broadcast %c8_i32_202 : i32 to vector<1x256xi32>
    %620 = arith.cmpi slt, %618, %619 : vector<1x256xi32>
    %c1_i32_203 = arith.constant 1 : i32
    %621 = vector.broadcast %c1_i32_203 : i32 to vector<1x256xi32>
    %622 = arith.maxsi %618, %621 : vector<1x256xi32>
    %623 = arith.sitofp %622 : vector<1x256xi32> to vector<1x256xf32>
    %cst_204 = arith.constant 1.250000e-01 : f32
    %624 = vector.broadcast %cst_204 : f32 to vector<1x256xf32>
    %625 = arith.mulf %623, %624 : vector<1x256xf32>
    %626 = math.log %625 : vector<1x256xf32>
    %cst_205 = arith.constant 2.885390e+00 : f32
    %627 = vector.broadcast %cst_205 : f32 to vector<1x256xf32>
    %628 = arith.mulf %626, %627 : vector<1x256xf32>
    %629 = arith.fptosi %628 : vector<1x256xf32> to vector<1x256xi32>
    %c8_i32_206 = arith.constant 8 : i32
    %630 = vector.broadcast %c8_i32_206 : i32 to vector<1x256xi32>
    %631 = arith.addi %630, %629 : vector<1x256xi32>
    %c15_i32_207 = arith.constant 15 : i32
    %632 = vector.broadcast %c15_i32_207 : i32 to vector<1x256xi32>
    %633 = arith.minsi %631, %632 : vector<1x256xi32>
    %634 = arith.select %620, %618, %633 : vector<1x256xi1>, vector<1x256xi32>
    %635 = arith.addi %617, %634 : vector<1x256xi32>
    %c0_i32_208 = arith.constant 0 : i32
    %636 = vector.broadcast %c0_i32_208 : i32 to vector<1x256xi32>
    %637 = arith.cmpi eq, %610, %636 : vector<1x256xi32>
    %c1_i32_209 = arith.constant 1 : i32
    %638 = vector.broadcast %c1_i32_209 : i32 to vector<1x256xi32>
    %639 = arith.subi %610, %638 : vector<1x256xi32>
    %c32_i32_210 = arith.constant 32 : i32
    %640 = vector.broadcast %c32_i32_210 : i32 to vector<1x256xi32>
    %641 = arith.addi %639, %640 : vector<1x256xi32>
    %642 = arith.select %637, %635, %641 : vector<1x256xi1>, vector<1x256xi32>
    %643 = vector.broadcast %642 : vector<1x256xi32> to vector<64x256xi32>
    %644 = arith.cmpi eq, %6, %643 : vector<64x256xi32>
    %645 = arith.extui %644 : vector<64x256xi1> to vector<64x256xi32>
    %646 = arith.sitofp %645 : vector<64x256xi32> to vector<64x256xf32>
    %cst_211 = arith.constant dense<0.000000e+00> : vector<8x256xf32>
    %647 = tpu.matmul %0, %646, %cst_211 {dimension_numbers = #tpu.dot_dimension_numbers<[1], [0], [0], [1], [0, 0, 1, 1], [], []>} : vector<8x64xf32>, vector<64x256xf32>, vector<8x256xf32> -> vector<8x256xf32>
    %c0_212 = arith.constant 0 : index
    %c0_213 = arith.constant 0 : index
    %c3328 = arith.constant 3328 : index
    %648 = vector.load %arg6[%c0_212, %c0_213, %c3328] : memref<1x8x4096xf32, #tpu.memory_space<vmem>>, vector<1x8x256xf32>
    %649 = vector.shape_cast %648 : vector<1x8x256xf32> to vector<8x256xf32>
    %650 = vector.shape_cast %647 : vector<8x256xf32> to vector<1x8x256xf32>
    tpu.vector_store %arg6[%c0_212, %c0_213, %c3328], %650 {strides = array<i32>} : memref<1x8x4096xf32, #tpu.memory_space<vmem>>, vector<1x8x256xf32>,
    %c16_i32_214 = arith.constant 16 : i32
    %651 = arith.muli %arg1, %c16_i32_214 : i32
    %c14_i32 = arith.constant 14 : i32
    %652 = arith.addi %651, %c14_i32 : i32
    %653 = arith.index_cast %arg0 : i32 to index
    %654 = arith.index_cast %652 : i32 to index
    %655 = memref.load %arg2[%653, %654] : memref<2x32xi32, #tpu.memory_space<smem>>
    %656 = vector.extract_strided_slice %5 {offsets = [14, 0], sizes = [1, 256], strides = [1, 1]} : vector<16x256xi32> to vector<1x256xi32>
    %657 = vector.broadcast %655 : i32 to vector<1x256xi32>
    %658 = arith.subi %2, %657 : vector<1x256xi32>
    %c0_i32_215 = arith.constant 0 : i32
    %659 = vector.broadcast %c0_i32_215 : i32 to vector<1x256xi32>
    %660 = arith.cmpi sgt, %658, %659 : vector<1x256xi32>
    %661 = arith.extui %660 : vector<1x256xi1> to vector<1x256xi32>
    %c16_i32_216 = arith.constant 16 : i32
    %662 = vector.broadcast %c16_i32_216 : i32 to vector<1x256xi32>
    %663 = arith.muli %661, %662 : vector<1x256xi32>
    %664 = math.absi %658 : vector<1x256xi32>
    %c8_i32_217 = arith.constant 8 : i32
    %665 = vector.broadcast %c8_i32_217 : i32 to vector<1x256xi32>
    %666 = arith.cmpi slt, %664, %665 : vector<1x256xi32>
    %c1_i32_218 = arith.constant 1 : i32
    %667 = vector.broadcast %c1_i32_218 : i32 to vector<1x256xi32>
    %668 = arith.maxsi %664, %667 : vector<1x256xi32>
    %669 = arith.sitofp %668 : vector<1x256xi32> to vector<1x256xf32>
    %cst_219 = arith.constant 1.250000e-01 : f32
    %670 = vector.broadcast %cst_219 : f32 to vector<1x256xf32>
    %671 = arith.mulf %669, %670 : vector<1x256xf32>
    %672 = math.log %671 : vector<1x256xf32>
    %cst_220 = arith.constant 2.885390e+00 : f32
    %673 = vector.broadcast %cst_220 : f32 to vector<1x256xf32>
    %674 = arith.mulf %672, %673 : vector<1x256xf32>
    %675 = arith.fptosi %674 : vector<1x256xf32> to vector<1x256xi32>
    %c8_i32_221 = arith.constant 8 : i32
    %676 = vector.broadcast %c8_i32_221 : i32 to vector<1x256xi32>
    %677 = arith.addi %676, %675 : vector<1x256xi32>
    %c15_i32_222 = arith.constant 15 : i32
    %678 = vector.broadcast %c15_i32_222 : i32 to vector<1x256xi32>
    %679 = arith.minsi %677, %678 : vector<1x256xi32>
    %680 = arith.select %666, %664, %679 : vector<1x256xi1>, vector<1x256xi32>
    %681 = arith.addi %663, %680 : vector<1x256xi32>
    %c0_i32_223 = arith.constant 0 : i32
    %682 = vector.broadcast %c0_i32_223 : i32 to vector<1x256xi32>
    %683 = arith.cmpi eq, %656, %682 : vector<1x256xi32>
    %c1_i32_224 = arith.constant 1 : i32
    %684 = vector.broadcast %c1_i32_224 : i32 to vector<1x256xi32>
    %685 = arith.subi %656, %684 : vector<1x256xi32>
    %c32_i32_225 = arith.constant 32 : i32
    %686 = vector.broadcast %c32_i32_225 : i32 to vector<1x256xi32>
    %687 = arith.addi %685, %686 : vector<1x256xi32>
    %688 = arith.select %683, %681, %687 : vector<1x256xi1>, vector<1x256xi32>
    %689 = vector.broadcast %688 : vector<1x256xi32> to vector<64x256xi32>
    %690 = arith.cmpi eq, %6, %689 : vector<64x256xi32>
    %691 = arith.extui %690 : vector<64x256xi1> to vector<64x256xi32>
    %692 = arith.sitofp %691 : vector<64x256xi32> to vector<64x256xf32>
    %cst_226 = arith.constant dense<0.000000e+00> : vector<8x256xf32>
    %693 = tpu.matmul %0, %692, %cst_226 {dimension_numbers = #tpu.dot_dimension_numbers<[1], [0], [0], [1], [0, 0, 1, 1], [], []>} : vector<8x64xf32>, vector<64x256xf32>, vector<8x256xf32> -> vector<8x256xf32>
    %c0_227 = arith.constant 0 : index
    %c0_228 = arith.constant 0 : index
    %c3584 = arith.constant 3584 : index
    %694 = vector.load %arg6[%c0_227, %c0_228, %c3584] : memref<1x8x4096xf32, #tpu.memory_space<vmem>>, vector<1x8x256xf32>
    %695 = vector.shape_cast %694 : vector<1x8x256xf32> to vector<8x256xf32>
    %696 = vector.shape_cast %693 : vector<8x256xf32> to vector<1x8x256xf32>
    tpu.vector_store %arg6[%c0_227, %c0_228, %c3584], %696 {strides = array<i32>} : memref<1x8x4096xf32, #tpu.memory_space<vmem>>, vector<1x8x256xf32>,
    %c16_i32_229 = arith.constant 16 : i32
    %697 = arith.muli %arg1, %c16_i32_229 : i32
    %c15_i32_230 = arith.constant 15 : i32
    %698 = arith.addi %697, %c15_i32_230 : i32
    %699 = arith.index_cast %arg0 : i32 to index
    %700 = arith.index_cast %698 : i32 to index
    %701 = memref.load %arg2[%699, %700] : memref<2x32xi32, #tpu.memory_space<smem>>
    %702 = vector.extract_strided_slice %5 {offsets = [15, 0], sizes = [1, 256], strides = [1, 1]} : vector<16x256xi32> to vector<1x256xi32>
    %703 = vector.broadcast %701 : i32 to vector<1x256xi32>
    %704 = arith.subi %2, %703 : vector<1x256xi32>
    %c0_i32_231 = arith.constant 0 : i32
    %705 = vector.broadcast %c0_i32_231 : i32 to vector<1x256xi32>
    %706 = arith.cmpi sgt, %704, %705 : vector<1x256xi32>
    %707 = arith.extui %706 : vector<1x256xi1> to vector<1x256xi32>
    %c16_i32_232 = arith.constant 16 : i32
    %708 = vector.broadcast %c16_i32_232 : i32 to vector<1x256xi32>
    %709 = arith.muli %707, %708 : vector<1x256xi32>
    %710 = math.absi %704 : vector<1x256xi32>
    %c8_i32_233 = arith.constant 8 : i32
    %711 = vector.broadcast %c8_i32_233 : i32 to vector<1x256xi32>
    %712 = arith.cmpi slt, %710, %711 : vector<1x256xi32>
    %c1_i32_234 = arith.constant 1 : i32
    %713 = vector.broadcast %c1_i32_234 : i32 to vector<1x256xi32>
    %714 = arith.maxsi %710, %713 : vector<1x256xi32>
    %715 = arith.sitofp %714 : vector<1x256xi32> to vector<1x256xf32>
    %cst_235 = arith.constant 1.250000e-01 : f32
    %716 = vector.broadcast %cst_235 : f32 to vector<1x256xf32>
    %717 = arith.mulf %715, %716 : vector<1x256xf32>
    %718 = math.log %717 : vector<1x256xf32>
    %cst_236 = arith.constant 2.885390e+00 : f32
    %719 = vector.broadcast %cst_236 : f32 to vector<1x256xf32>
    %720 = arith.mulf %718, %719 : vector<1x256xf32>
    %721 = arith.fptosi %720 : vector<1x256xf32> to vector<1x256xi32>
    %c8_i32_237 = arith.constant 8 : i32
    %722 = vector.broadcast %c8_i32_237 : i32 to vector<1x256xi32>
    %723 = arith.addi %722, %721 : vector<1x256xi32>
    %c15_i32_238 = arith.constant 15 : i32
    %724 = vector.broadcast %c15_i32_238 : i32 to vector<1x256xi32>
    %725 = arith.minsi %723, %724 : vector<1x256xi32>
    %726 = arith.select %712, %710, %725 : vector<1x256xi1>, vector<1x256xi32>
    %727 = arith.addi %709, %726 : vector<1x256xi32>
    %c0_i32_239 = arith.constant 0 : i32
    %728 = vector.broadcast %c0_i32_239 : i32 to vector<1x256xi32>
    %729 = arith.cmpi eq, %702, %728 : vector<1x256xi32>
    %c1_i32_240 = arith.constant 1 : i32
    %730 = vector.broadcast %c1_i32_240 : i32 to vector<1x256xi32>
    %731 = arith.subi %702, %730 : vector<1x256xi32>
    %c32_i32_241 = arith.constant 32 : i32
    %732 = vector.broadcast %c32_i32_241 : i32 to vector<1x256xi32>
    %733 = arith.addi %731, %732 : vector<1x256xi32>
    %734 = arith.select %729, %727, %733 : vector<1x256xi1>, vector<1x256xi32>
    %735 = vector.broadcast %734 : vector<1x256xi32> to vector<64x256xi32>
    %736 = arith.cmpi eq, %6, %735 : vector<64x256xi32>
    %737 = arith.extui %736 : vector<64x256xi1> to vector<64x256xi32>
    %738 = arith.sitofp %737 : vector<64x256xi32> to vector<64x256xf32>
    %cst_242 = arith.constant dense<0.000000e+00> : vector<8x256xf32>
    %739 = tpu.matmul %0, %738, %cst_242 {dimension_numbers = #tpu.dot_dimension_numbers<[1], [0], [0], [1], [0, 0, 1, 1], [], []>} : vector<8x64xf32>, vector<64x256xf32>, vector<8x256xf32> -> vector<8x256xf32>
    %c0_243 = arith.constant 0 : index
    %c0_244 = arith.constant 0 : index
    %c3840 = arith.constant 3840 : index
    %740 = vector.load %arg6[%c0_243, %c0_244, %c3840] : memref<1x8x4096xf32, #tpu.memory_space<vmem>>, vector<1x8x256xf32>
    %741 = vector.shape_cast %740 : vector<1x8x256xf32> to vector<8x256xf32>
    %742 = vector.shape_cast %739 : vector<8x256xf32> to vector<1x8x256xf32>
    tpu.vector_store %arg6[%c0_243, %c0_244, %c3840], %742 {strides = array<i32>} : memref<1x8x4096xf32, #tpu.memory_space<vmem>>, vector<1x8x256xf32>,
    return
  }
  func.func @transform_0(%arg0: i32, %arg1: i32, %arg2: memref<2x32xi32, #tpu.memory_space<smem>>) -> (i32, i32, i32) {
    %c0_i32 = arith.constant 0 : i32
    %c0_i32_0 = arith.constant 0 : i32
    %c0_i32_1 = arith.constant 0 : i32
    return %arg0, %c0_i32, %c0_i32_0 : i32, i32, i32
  }
  func.func @transform_1(%arg0: i32, %arg1: i32, %arg2: memref<2x32xi32, #tpu.memory_space<smem>>) -> (i32, i32, i32) {
    %c0_i32 = arith.constant 0 : i32
    %c0_i32_0 = arith.constant 0 : i32
    return %arg0, %arg1, %c0_i32 : i32, i32, i32
  }
  func.func @transform_2(%arg0: i32, %arg1: i32, %arg2: memref<2x32xi32, #tpu.memory_space<smem>>) -> (i32, i32) {
    %c0_i32 = arith.constant 0 : i32
    %c0_i32_0 = arith.constant 0 : i32
    %c0_i32_1 = arith.constant 0 : i32
    return %c0_i32, %c0_i32_0 : i32, i32
  }
  func.func @transform_3(%arg0: i32, %arg1: i32, %arg2: memref<2x32xi32, #tpu.memory_space<smem>>) -> (i32, i32, i32) {
    %c0_i32 = arith.constant 0 : i32
    %c0_i32_0 = arith.constant 0 : i32
    return %arg0, %c0_i32, %arg1 : i32, i32, i32
  }
}

</mosaic_0001>

<bundles_post_ra>
// kernel: tpu_custom_call.1
= control target key start
LH: loop header
LB: loop body
LE: loop exit
PB: predicated region body
PF: predicated region fallthrough
CT: control target
= control target key end

     0   :  { %s4157_s15 = smov [#allocation3]   ;;  %s6590_s0 = inlined_call_operand.hbm [shape: s32[2,32], index: 0, kind: input, shape index: {}]   ;;  %s6591_s1 = inlined_call_operand.hbm [shape: s32[2,1,256], index: 1, kind: input, shape index: {}]   ;;  %s6592_s2 = inlined_call_operand.hbm [shape: s16[2,32,256], index: 2, kind: input, shape index: {}]   ;;  %s6593_s3 = inlined_call_operand.hbm [shape: f32[8,64], index: 3, kind: input, shape index: {}]   ;;  %s6594_s4 = inlined_call_operand.hbm [shape: f32[2,8,8192], index: 4, kind: output, shape index: {}]  }
   0x1   :  { %6610 = sst [smem:[#allocation26_spill]] %s6591_s1 }
   0x2   :  { %6611 = sst [smem:[#allocation27_spill]] %s6592_s2 }
   0x3   :  { %6612 = sst [smem:[#allocation28_spill]] %s6593_s3 }
   0x4   :  { %6613 = sst [smem:[#allocation29_spill]] %s6594_s4 }
   0x5   :  { %10 = dma.hbm_to_smem %s6590_s0, 32, %s4157_s15, [#allocation2] }
   0x6   :  { %4095 = dma.done.wait [#allocation2], 32 }
   0x7   :  { %4096 = vsyncadd [#allocation2], 4294967264 }
   0x8   :  { %12 = sfence }
   0x9   :  { %13 = vsyncpa [#allocation5], 0 }
   0xa   :  { %15 = vsyncpa [#allocation5 + $0x1], 0 }
   0xb   :  { %16 = vsyncpa [#allocation8], 0 }
   0xc   :  { %18 = vsyncpa [#allocation8 + $0x1], 0 }
   0xd   :  { %19 = vsyncpa [#allocation6], 0 }
   0xe   :  { %21 = vsyncpa [#allocation6 + $0x1], 0  ;;  %s4195_s18 = smov 0   ;;  %s4197_s19 = smov 0  }
   0xf   :  { %s4199_s20 = smov 0   ;;  %s4201_s21 = smov 0  }
  0x10   :  { %s4203_s22 = smov 0   ;;  %s4205_s0 = smov 0  }
  0x11   :  { %s4207_s23 = smov 0   ;;  %s4209_s24 = smov 0  }
  0x12   :  { %s4211_s25 = smov 0   ;;  %s4213_s26 = smov 0  }
  0x13   :  { %s4215_s27 = smov 0  }
  0x14 LB: > { %6614 = sst [smem:[#allocation16_spill]] %s4115_s18  ;;  %s4249_s28 = sadd.s32 4294967295, %s4155_s27   ;;  %s4155_s27 = sphi %s4215_s27, %s27_s27   ;;  %s4151_s26 = sphi %s4213_s26, %s6686_s26   ;;  %s4147_s25 = sphi %s4211_s25, %s6685_s25   ;;  %s4143_s24 = sphi %s4209_s24, %s6684_s24   ;;  %s4139_s23 = sphi %s4207_s23, %s6683_s23   ;;  %s4135_s0 = sphi %s4205_s0, %s6692_s0   ;;  %s4131_s22 = sphi %s4203_s22, %s6691_s22   ;;  %s4127_s21 = sphi %s4201_s21, %s6690_s21   ;;  %s4123_s20 = sphi %s4199_s20, %s6689_s20   ;;  %s4119_s19 = sphi %s4197_s19, %s6688_s19   ;;  %s4115_s18 = sphi %s4195_s18, %s6687_s18  }
  0x15   : > { %6615 = sst [smem:[#allocation17_spill]] %s4139_s23  ;;  %s3155_s29 = sadd.s32 4294967294, %s4155_s27  }
  0x16   : > { %6616 = sst [smem:[#allocation18_spill]] %s4143_s24  ;;  %p59_p0 = scmp.ne.s32.totalorder %s4131_s22, %s4127_s21 }
  0x17   : > { %6617 = sst [smem:[#allocation19_spill]] %s4147_s25  ;;  %p6607_p1 = scmp.eq.s32.totalorder %s4249_s28, 0 }
  0x18   : > { %6618 = sst [smem:[#allocation20_spill]] %s4151_s26  ;;  %p6595_p2 = scmp.ne.s32.totalorder %s4123_s20, %s4119_s19 }
  0x19   : > { %p4259_p3 = por %p6607_p1, %p59_p0  ;;  %p87_p4 = scmp.ne.s32.totalorder %s4119_s19, %s4115_s18 }
  0x1a   : > { %p134_p5 = scmp.eq.s32.totalorder %s4249_s28, 3  ;;  %p140_p6 = scmp.eq.s32.totalorder %s3155_s29, 3 }
  0x1b   : > { %p4268_p7 = por %p87_p4, %p6607_p1  ;;  %p3156_p8 = scmp.ge.s32.totalorder %s4155_s27, 1 }
  0x1c   : > { %p4276_p9 = por %p134_p5, %p6595_p2  ;;  %p4280_p10 = por %p140_p6, %p87_p4 }
  0x1d   : > { %s6620_s6 = scalar_select %p4268_p7, 1, 0 }
  0x1e   : > { %s6621_s7 = scalar_select %p4276_p9, 1, 0 }
  0x1f   : > { %s6623_s8 = scalar_select %p4280_p10, 1, 0 }
  0x20   : > { %6622 = sst [smem:[#allocation21_spill]] %s6621_s7  ;;  %p147_p11 = scmp.lt.s32.totalorder %s4155_s27, 5 }
  0x21   : > { %6624 = sst [smem:[#allocation22_spill]] %s6623_s8  ;;  %s4158_s10 = smov [#allocation9]  }
  0x22   : > { %p4285_p12 = pnand %p3156_p8, %p147_p11  ;;  %s160_s11 = sshll.u32 %s4158_s10, 4  ;;  %s161_s11 = int_to_ptr.vmem [resolvable:$true] %s160_s11 }
  0x23   : > { %s36_s12 = sadd.s32 1, %s4147_s25  ;;  %s3954_s14 = scalar_lea.vmem %s161_s11, 128 }
  0x24   : > { %p3787_p13 = pneg %p4285_p12  ;;  %p4294_p5 = scmp.ge.s32.totalorder %s36_s12, 2 }
  0x25   : > { %p3955_p6 = scmp.ne.s32.totalorder %s161_s11, %s3954_s14  ;;  %p3962_p2 = scmp.lt.s32.totalorder %s161_s11, %s161_s11 }
  0x26   : > { %p3788_p0 = pnand %p3787_p13, %p6607_p1  ;;  %p3963_p10 = scmp.lt.s32.totalorder %s3954_s14, %s3954_s14 }
  0x28   : > { %p3945_p4 = pneg %p3788_p0  ;;  %p3964_p9 = por %p3963_p10, %p3962_p2 }
  0x2a   : > { %p3957_p8 = pnand %p3955_p6, %p3945_p4 }
  0x2c   : > { %p3958_p11 = pneg %p3957_p8 }
  0x2e   : > { %p3965_p7 = pnand %p3964_p9, %p3958_p11 }
  0x30   : > { %3968 = shalt.err (!%p3965_p7)
}
  0x31   : > { %s6627_s3 = sld [smem:[#allocation28_spill]]  ;;  %s6694_s12 = smov (%p4294_p5, %s36_s12), 0 }
  0x32   : > { %6628 = sst [smem:[#allocation23_spill]] %s6694_s12  ;;  %s39_s17 = sadd.s32 1, %s4151_s26 }
  0x33   : > { %s46_s21 = sadd.s32 1, %s4135_s0  ;;  %s6696_s17 = smov (!%p4294_p5, %s39_s17), %s4151_s26 }
  0x34   : > { %p53_p2 = scmp.ne.s32.totalorder %s4135_s0, %s4131_s22  ;;  %p54_p7 = scmp.eq.s32.totalorder %s4155_s27, 0 }
  0x35   : > { %p41_p9 = scmp.ge.s32.totalorder %s6696_s17, 2  ;;  %s70_s29 = ssub.s32 %s4147_s25, %s6694_s12 }
  0x36   : > { %p4315_p10 = por %p54_p7, %p53_p2  ;;  %p6630_p13 = scmp.ne.s32.totalorder %s4123_s20, %s4119_s19 }
  0x37   : > { %3790 = dma.hbm_to_vmem [thread:$0]  (!%p3788_p0), %s6627_s3, 128, %s161_s11, [#allocation8]  }
  0x38   : > { %p4322_p0 = por %p6630_p13, %p54_p7  ;;  %s6698_s17 = smov (%p41_p9, %s6696_s17), 0 }
  0x39   : > { %6632 = sst [smem:[#allocation24_spill]] %s6698_s17  ;;  %p3803_p5 = scmp.lt.s32.totalorder %s4155_s27, 4 }
  0x3a   : > { %s171_s13 = sand.u32 1, %s4135_s0   ;;  %s43_s14 = ssub.s32 %s4151_s26, %s6698_s17 }
  0x3b   : > { %p44_p4 = scmp.eq.s32.totalorder %s43_s14, 0  ;;  %s71_s15 = sor.u32 %s70_s29, %s43_s14 }
  0x3c   : > { %p72_p6 = scmp.eq.s32.totalorder %s71_s15, 0  ;;  %s3159_s16 = sshll.u32 %s171_s13, 1 }
  0x3d   : > { %s4333_s30 = scalar_select %p44_p4, %s4135_s0, %s46_s21  }
  0x3e   : > { %s6634_s3 = sadd.s32 1, %s4123_s20  ;;  %s3743_s8 = sshll.u32 %s4151_s26, 5 }
  0x3f   : > { %6633 = sst [smem:[#allocation25_spill]] %s4333_s30  ;;  %s175_s24 = scalar_lea.vmem [#allocation4], %s3159_s16 }
  0x40   : > { %s4338_s12 = scalar_select %p72_p6, %s4123_s20, %s6634_s3  }
  0x41   : > { %s6635_s1 = sld [smem:[#allocation26_spill]]  ;;  %s183_s23 = sshll.u32 %s175_s24, 4  ;;  %s184_s23 = int_to_ptr.vmem [resolvable:$true] %s183_s23 }
  0x42   : > { %p4348_p8 = pnand %p3803_p5, %p4315_p10  ;;  %p4356_p11 = pnand %p3803_p5, %p4322_p0 }
  0x43   : > { %s190_s21 = sand.u32 1, %s4155_s27   ;;  %s172_s29 = scalar_lea.sflag [#allocation5], %s171_s13 }
  0x44   : > { %p3971_p2 = pneg %p4348_p8  ;;  %s3982_s4 = scalar_lea.vmem %s184_s23, 32 }
  0x45   : > { %p3983_p7 = scmp.ne.s32.totalorder %s184_s23, %s3982_s4  ;;  %s4159_s18 = smov [#allocation4]  }
  0x46   : > { %s3987_s24 = sshll.u32 %s4159_s18, 4  ;;  %s3988_s24 = int_to_ptr.vmem [resolvable:$false] %s3987_s24 }
  0x47   : > { %s181_s7 = scalar_lea.hbm %s6635_s1, %s3743_s8  ;;  %p3985_p9 = pnand %p3983_p7, %p3971_p2 }
  0x48   : > { %s3989_s8 = scalar_lea.vmem %s3988_s24, 64  ;;  %p3990_p10 = scmp.lt.s32.totalorder %s184_s23, %s3988_s24 }
  0x49   : > { %p3986_p13 = pneg %p3985_p9  ;;  %p3991_p4 = scmp.lt.s32.totalorder %s3989_s8, %s3982_s4 }
  0x4b   : > { %p3992_p6 = por %p3991_p4, %p3990_p10 }
  0x4d   : > { %p3993_p1 = pnand %p3992_p6, %p3986_p13 }
  0x4f   : > { %3996 = shalt.err (!%p3993_p1)
}
  0x50   : > { %3794 = dma.hbm_to_vmem [thread:$0]  (!%p4348_p8), %s181_s7, 32, %s184_s23, %s172_s29  }
  0x51   : > { %s192_s10 = sand.u32 1, %s4123_s20   ;;  %s3744_s13 = sshll.u32 %s4147_s25, 2 }
  0x52   : > { %s3162_s11 = sshll.u32 %s192_s10, 4  ;;  %s3165_s14 = sshll.u32 %s4151_s26, 3 }
  0x53   : > { %s201_s15 = sadd.s32 %s3744_s13, %s3165_s14  ;;  %s194_s16 = scalar_lea.vmem [#allocation7], %s3162_s11 }
  0x54   : > { %s204_s18 = sshll.u32 %s194_s16, 4  ;;  %s3166_s1 = sshll.u32 %s201_s15, 6  ;;  %s205_s18 = int_to_ptr.vmem [resolvable:$true] %s204_s18 }
  0x55   : > { %s6638_s2 = sld [smem:[#allocation27_spill]]  ;;  %s191_s30 = scalar_lea.sflag [#allocation8], %s190_s21 }
  0x56   : > { %p3999_p1 = pneg %p4356_p11  ;;  %s4010_s17 = scalar_lea.vmem %s205_s18, 256 }
  0x57   : > { %p4011_p0 = scmp.ne.s32.totalorder %s205_s18, %s4010_s17  ;;  %s4160_s23 = smov [#allocation7]  }
  0x58   : > { %s4015_s7 = sshll.u32 %s4160_s23, 4  ;;  %s4016_s7 = int_to_ptr.vmem [resolvable:$false] %s4015_s7 }
  0x59   : > { %p4013_p5 = pnand %p4011_p0, %p3999_p1  ;;  %s4017_s29 = scalar_lea.vmem %s4016_s7, 512 }
  0x5a   : > { %p4018_p2 = scmp.lt.s32.totalorder %s205_s18, %s4016_s7  ;;  %p4019_p7 = scmp.lt.s32.totalorder %s4017_s29, %s4010_s17 }
  0x5b   : > { %s203_s8 = scalar_lea.hbm %s6638_s2, %s3166_s1  ;;  %p4014_p8 = pneg %p4013_p5 }
  0x5c   : > { %p4020_p9 = por %p4019_p7, %p4018_p2 }
  0x5e   : > { %p4021_p13 = pnand %p4020_p9, %p4014_p8 }
  0x60   : > { %4024 = shalt.err (!%p4021_p13)
}
  0x61   : > { %s4161_s10 = smov 128   ;;  %s4162_s11 = smov 8  }
  0x62   : > { %3797 = dma.hbm_to_vmem [thread:$0]  (!%p4356_p11), %s203_s8, 256, %s205_s18, %s191_s30, %s4161_s10, %s4161_s10, %s4162_s11  }
  0x63   : > { %216 = sbr.rel (%p4285_p12) target bundleno = 547 (0x223), region = 32  ;;  %s218_s1 = sand.u32 (!%p4285_p12), 1, %s4131_s22  }
  0x64   : > { %s4378_s21 = sshll.u32 (!%p4285_p12), %s218_s1, 1  ;;  %s219_s13 = scalar_lea.sflag (!%p4285_p12), [#allocation5], %s218_s1 }
  0x68   : > { %4098 = dma.done.wait (%p4259_p3), %s219_s13, 32  }
  0x69   : > { %4100 = vsyncadd (%p4259_p3), %s219_s13, 4294967264  ;;  %s227_s30 = sand.u32 1, %s4249_s28   ;;  %s4387_s3 = sand.u32 1, %s4119_s19  }
  0x6a   : > { %s3169_s9 = sshll.u32 %s4387_s3, 4  ;;  %s228_s15 = scalar_lea.sflag [#allocation8], %s227_s30 }
  0x6b   : > { %s4390_s16 = scalar_lea.vmem [#allocation7], %s3169_s9  ;;  %p6639_p12 = scmp.ne.s32.totalorder %s6620_s6, 0 }
  0x6d   : > { %4102 = dma.done.wait (%p6639_p12), %s228_s15, 256  }
  0x6e   : > { %4104 = vsyncadd (%p6639_p12), %s228_s15, 4294967040  ;;  %p6640_p11 = scmp.eq.s32.totalorder %s4249_s28, 0 }
  0x70   : > { %4106 = dma.done.wait (%p6640_p11), [#allocation8], 128   ;;  %p6641_p3 = pmov %p6640_p11 }
  0x71   : > { %s6642_s5 = sld [smem:[#allocation17_spill]]  ;;  %v4163_v0 = vmov 0.0   ;;  %s6644_s2 = scalar_lea.vmem [#allocation4], %s4378_s21  ;;  %v273_v10 = vlaneseq  ;;  %v4482_v32 = vld [vmem:[%s4390_s16] sm:$0xff] }
  0x72   : > { %4108 = vsyncadd (%p6641_p3), [#allocation8], 4294967168  ;;  %s6643_s18 = sld [smem:[#allocation18_spill]]  ;;  %453 = vmatprep.mubr.f32.mxu0 %v4163_v0  ;;  %623 = vmatprep.mubr.f32.mxu1 %v4163_v0  ;;  %v4414_v1 = vld [vmem:[%s6644_s2] sm:$0x3]  ;;  %v270_v43 = vunpack.c.h.b16 %v4482_v32  ;;  %v269_v46 = vunpack.c.l.b16 %v4482_v32 }
  0x73   : > { %v4449_v17 = vshrl.u32 %v273_v10, 7 }
  0x74   : > { %v3176_v57 = vadd.s32 4294967295, %v270_v43  ;;  %v3175_v60 = vadd.s32 4294967295, %v269_v46  ;;  %vm4587_vm13 = vcmp.eq.s32.totalorder %v270_v43, 0  ;;  %vm4591_vm14 = vcmp.eq.s32.totalorder %v269_v46, 0 }
  0x75   : > { %v4465_v24 = vadd.s32 56, %v4449_v17  ;;  %v4472_v28 = vsub.s32 0, %v4449_v17  ;;  %v4475_v29 = vsub.s32 1, %v4449_v17  ;;  %v4485_v33 = vadd.s32 48, %v4449_v17 }
  0x76   : > { %v4488_v34 = vadd.s32 40, %v4449_v17  ;;  %v4495_v36 = vadd.s32 32, %v4449_v17  ;;  %v4500_v40 = vadd.s32 24, %v4449_v17  ;;  %v4503_v41 = vadd.s32 16, %v4449_v17 }
  0x77   : > { %s4401_s4 = sshll.u32 %s6642_s5, 4  ;;  %v4521_v50 = vadd.s32 8, %v4449_v17  ;;  %v4524_v51 = vsub.s32 2, %v4449_v17  ;;  %v4531_v54 = vsub.s32 3, %v4449_v17  ;;  %v4544_v61 = vsub.s32 4, %v4449_v17 }
  0x78   : > { %s283_s24 = sshra.s32 %s4401_s4, 7  ;;  %s288_s8 = sand.u32 127, %s4401_s4 }
  0x79   : > { %s285_s28 = sadd.s32 %s6643_s18, %s283_s24  ;;  %s462_s6 = sadd.s32 1, %s4401_s4 }
  0x7a   : > { %s3173_s17 = sshll.u32 %s285_s28, 7  ;;  %s463_s23 = sshra.s32 %s462_s6, 7 }
  0x7b   : > { %s289_s7 = sadd.s32 %s3173_s17, %s288_s8  ;;  %s465_s29 = sadd.s32 %s6643_s18, %s463_s23 }
  0x7c   : > { %s290_s10 = sld [smem:[#allocation3 + %s289_s7]]  ;;  %s3210_s11 = sshll.u32 %s465_s29, 7 }
  0x7d   : > { %s468_s1 = sand.u32 127, %s462_s6  ;;  %s632_s13 = sadd.s32 2, %s4401_s4 }
  0x7e   : > { %s469_s30 = sadd.s32 %s3210_s11, %s468_s1  ;;  %s633_s9 = sshra.s32 %s632_s13, 7 }
  0x7f   : > { %s470_s15 = sld [smem:[#allocation3 + %s469_s30]]  ;;  %s635_s14 = sadd.s32 %s6643_s18, %s633_s9 }
  0x80   : > { %s3245_s24 = sshll.u32 %s635_s14, 7  ;;  %s638_s26 = sand.u32 127, %s632_s13 }
  0x81   : > { %s639_s28 = sadd.s32 %s3245_s24, %s638_s26  ;;  %s802_s25 = sadd.s32 3, %s4401_s4 }
  0x82   : > { %v291_v2 = vstv %s290_s10  ;;  %s640_s8 = sld [smem:[#allocation3 + %s639_s28]]  ;;  %s803_s17 = sshra.s32 %s802_s25, 7 }
  0x83   : > { %v4418_v3 = vsub.s32 %v4414_v1, %v291_v2  ;;  %s805_s6 = sadd.s32 %s6643_s18, %s803_s17  ;;  %s808_s23 = sand.u32 127, %s802_s25 }
  0x84   : > { %s3280_s7 = sshll.u32 %s805_s6, 7  ;;  %s972_s29 = sadd.s32 4, %s4401_s4 }
  0x85   : > { %v297_v4 = vsub.s32 0, %v4418_v3  ;;  %v471_v5 = vstv %s470_s15  ;;  %s809_s2 = sadd.s32 %s3280_s7, %s808_s23  ;;  %s973_s14 = sshra.s32 %s972_s29, 7  ;;  %vm293_vm5 = vcmp.gt.s32.totalorder %v4418_v3, 0 }
  0x86   : > { %v4424_v6 = vsub.s32 %v4414_v1, %v471_v5  ;;  %s4426_s26 = sld [smem:[#allocation3 + %s809_s2]]  ;;  %s975_s10 = sadd.s32 %s6643_s18, %s973_s14 }
  0x87   : > { %v4430_v7 = vmin.u32 %v297_v4, %v4418_v3  ;;  %s3315_s11 = sshll.u32 %s975_s10, 7  ;;  %s978_s25 = sand.u32 127, %s972_s29  ;;  %v4164_v4 = vmov 0  }
  0x88   : > { %v477_v8 = vsub.s32 0, %v4424_v6  ;;  %v641_v9 = vstv %s640_s8  ;;  %s979_s1 = sadd.s32 %s3315_s11, %s978_s25  ;;  %s1142_s13 = sadd.s32 5, %s4401_s4  ;;  %vm473_vm7 = vcmp.gt.s32.totalorder %v4424_v6, 0  ;;  %v4553_v5 = vsel %vm293_vm5, 1, %v4164_v4 }
  0x89   : > { %vm300_vm0 = vcmp.gt.s32.totalorder %v4430_v7, 1  ;;  %v4436_v11 = vsub.s32 %v4414_v1, %v641_v9  ;;  %s4438_s30 = sld [smem:[#allocation3 + %s979_s1]]  ;;  %s1143_s9 = sshra.s32 %s1142_s13, 7  ;;  %v4556_v9 = vsub.s32 5, %v4449_v17  ;;  %vm299_vm10 = vcmp.lt.s32.totalorder %v4430_v7, 8 }
  0x8a   : > { %v301_v12 = vsel %vm300_vm0, %v4430_v7, 1  ;;  %v4442_v13 = vmin.u32 %v477_v8, %v4424_v6  ;;  %s1145_s15 = sadd.s32 %s6643_s18, %s1143_s9  ;;  %s1148_s24 = sand.u32 127, %s1142_s13  ;;  %v4562_v6 = vadd.s32 32, %v3175_v60 }
  0x8b   : > { %v302_v14 = vcvt.s32.f32 %v301_v12  ;;  %v647_v15 = vsub.s32 0, %v4436_v11  ;;  %s3350_s28 = sshll.u32 %s1145_s15, 7  ;;  %s1312_s8 = sadd.s32 6, %s4401_s4  ;;  %vm643_vm9 = vcmp.gt.s32.totalorder %v4436_v11, 0 }
  0x8c   : > { %vm480_vm1 = vcmp.gt.s32.totalorder %v4442_v13, 1  ;;  %v811_v16 = vstv %s4426_s26  ;;  %s1149_s17 = sadd.s32 %s3350_s28, %s1148_s24  ;;  %s1313_s6 = sshra.s32 %s1312_s8, 7  ;;  %vm479_vm12 = vcmp.lt.s32.totalorder %v4442_v13, 8 }
  0x8d   : > { %v303_v18 = vmul.f32 0.125, %v302_v14  ;;  %v481_v19 = vsel %vm480_vm1, %v4442_v13, 1  ;;  %v4453_v20 = vmin.u32 %v647_v15, %v4436_v11  ;;  %s4455_s23 = sld [smem:[#allocation3 + %s1149_s17]]  ;;  %s1315_s7 = sadd.s32 %s6643_s18, %s1313_s6  ;;  %v4459_v22 = vsub.s32 %v4414_v1, %v811_v16 }
  0x8e   : > { %v482_v21 = vcvt.s32.f32 %v481_v19  ;;  %s3385_s29 = sshll.u32 %s1315_s7, 7  ;;  %s1318_s2 = sand.u32 127, %s1312_s8  ;;  %v4559_v14 = vadd.s32 32, %v3176_v57  ;;  %v4565_v15 = vsel %vm473_vm7, 1, %v4164_v4  ;;  %v295_v19 = vmul.u32 16, %v4553_v5 }
  0x8f   : > { %3901 = vlog2.f32 %v303_v18  ;;  %vm650_vm2 = vcmp.gt.s32.totalorder %v4453_v20, 1  ;;  %v981_v23 = vstv %s4438_s30  ;;  %s1319_s14 = sadd.s32 %s3385_s29, %s1318_s2  ;;  %s1482_s26 = sadd.s32 7, %s4401_s4  ;;  %v817_v27 = vsub.s32 0, %v4459_v22 }
  0x90   : > { %v483_v25 = vmul.f32 0.125, %v482_v21  ;;  %v651_v26 = vsel %vm650_vm2, %v4453_v20, 1  ;;  %s4469_s10 = sld [smem:[#allocation3 + %s1319_s14]]  ;;  %s1483_s11 = sshra.s32 %s1482_s26, 7  ;;  %v4478_v31 = vsub.s32 %v4414_v1, %v981_v23  ;;  %v4578_v11 = vsel %vm643_vm9, 1, %v4164_v4 }
  0x91   : > { %v652_v30 = vcvt.s32.f32 %v651_v26  ;;  %s1485_s25 = sadd.s32 %s6643_s18, %s1483_s11  ;;  %s1488_s1 = sand.u32 127, %s1482_s26  ;;  %v4491_v35 = vmin.u32 %v817_v27, %v4459_v22  ;;  %vm813_vm11 = vcmp.gt.s32.totalorder %v4459_v22, 0 }
  0x92   : > { %3903 = vlog2.f32 %v483_v25  ;;  %s3420_s13 = sshll.u32 %s1485_s25, 7  ;;  %s1652_s30 = sadd.s32 8, %s4401_s4  ;;  %v987_v38 = vsub.s32 0, %v4478_v31  ;;  %v4600_v60 = vsel %vm813_vm11, 1, %v4164_v4  ;;  %vm983_vm0 = vcmp.gt.s32.totalorder %v4478_v31, 0 }
  0x93   : > { %v653_v37 = vmul.f32 0.125, %v652_v30  ;;  %v1151_v39 = vstv %s4455_s23  ;;  %s1489_s9 = sadd.s32 %s3420_s13, %s1488_s1  ;;  %s1653_s15 = sshra.s32 %s1652_s30, 7  ;;  %vm820_vm3 = vcmp.gt.s32.totalorder %v4491_v35, 1 }
  0x94   : > { %v4507_v42 = vsub.s32 %v4414_v1, %v1151_v39  ;;  %s4509_s24 = sld [smem:[#allocation3 + %s1489_s9]]  ;;  %s1655_s28 = sadd.s32 %s6643_s18, %s1653_s15  ;;  %v821_v44 = vsel %vm820_vm3, %v4491_v35, 1  ;;  %v4515_v45 = vmin.u32 %v987_v38, %v4478_v31  ;;  %v475_v38 = vmul.u32 16, %v4565_v15 }
  0x95   : > { %3905 = vlog2.f32 %v653_v37  ;;  %s3455_s8 = sshll.u32 %s1655_s28, 7  ;;  %s1658_s17 = sand.u32 127, %s1652_s30  ;;  %v822_v47 = vcvt.s32.f32 %v821_v44  ;;  %vm649_vm3 = vcmp.lt.s32.totalorder %v4453_v20, 8  ;;  %v4610_v31 = vsel %vm983_vm0, 1, %v4164_v4 }
  0x96   : > { %v1157_v48 = vsub.s32 0, %v4507_v42  ;;  %v1321_v49 = vstv %s4469_s10  ;;  %s1659_s6 = sadd.s32 %s3455_s8, %s1658_s17  ;;  %vm990_vm4 = vcmp.gt.s32.totalorder %v4515_v45, 1  ;;  %vm1153_vm1 = vcmp.gt.s32.totalorder %v4507_v42, 0  ;;  %s1828_s7 = sadd.s32 9, %s4401_s4 }
  0x97   : > { %v4528_v52 = vsub.s32 %v4414_v1, %v1321_v49  ;;  %v823_v53 = vmul.f32 0.125, %v822_v47  ;;  %v991_v55 = vsel %vm990_vm4, %v4515_v45, 1  ;;  %s4537_s23 = sld [smem:[#allocation3 + %s1659_s6]]  ;;  %s4813_s29 = sshra.s32 %s1828_s7, 7 }
  0x98   : > { %v4535_v56 = vmin.u32 %v1157_v48, %v4507_v42  ;;  %v992_v58 = vcvt.s32.f32 %v991_v55  ;;  %s1831_s2 = sadd.s32 %s6643_s18, %s4813_s29  ;;  %s4911_s26 = sand.u32 127, %s1828_s7 }
  0x99   : > { %v1327_v59 = vsub.s32 0, %v4528_v52  ;;  %3907 = vlog2.f32 %v823_v53  ;;  %s4907_s14 = sshll.u32 %s1831_s2, 7  ;;  %s1998_s25 = sadd.s32 10, %s4401_s4 }
  0x9a   : > { %vm1160_vm6 = vcmp.gt.s32.totalorder %v4535_v56, 1  ;;  %v993_v62 = vmul.f32 0.125, %v992_v58  ;;  %v1491_v10 = vstv %s4509_s24  ;;  %s1835_s10 = sadd.s32 %s4907_s14, %s4911_s26  ;;  %s5050_s1 = sshra.s32 %s1998_s25, 7 }
  0x9b   : > { %v1161_v63 = vsel %vm1160_vm6, %v4535_v56, 1  ;;  %v4550_v2 = vmin.u32 %v1327_v59, %v4528_v52  ;;  %v4569_v16 = vsub.s32 %v4414_v1, %v1491_v10  ;;  %v645_v59 = vmul.u32 16, %v4578_v11  ;;  %s4988_s11 = sld [smem:[#allocation3 + %s1835_s10]]  ;;  %s2168_s13 = sadd.s32 11, %s4401_s4 }
  0x9c   : > { %v3902_v3 = vpop.eup %3901  ;;  %v1162_v8 = vcvt.s32.f32 %v1161_v63  ;;  %3909 = vlog2.f32 %v993_v62  ;;  %v815_v10 = vmul.u32 16, %v4600_v60  ;;  %s2001_s30 = sadd.s32 %s6643_s18, %s5050_s1  ;;  %s5139_s9 = sshra.s32 %s2168_s13, 7 }
  0x9d   : > { %v305_v12 = vmul.f32 0.6931472, %v3902_v3  ;;  %vm1330_vm8 = vcmp.gt.s32.totalorder %v4550_v2, 1  ;;  %v1497_v27 = vsub.s32 0, %v4569_v16  ;;  %v1661_v30 = vstv %s4537_s23  ;;  %s5154_s15 = sshll.u32 %s2001_s30, 7  ;;  %s5171_s24 = sand.u32 127, %s1998_s25 }
  0x9e   : > { %v1163_v23 = vmul.f32 0.125, %v1162_v8  ;;  %v1331_v25 = vsel %vm1330_vm8, %v4550_v2, 1  ;;  %v4596_v57 = vsub.s32 %v4414_v1, %v1661_v30  ;;  %s2338_s28 = sadd.s32 12, %s4401_s4  ;;  %s2171_s8 = sadd.s32 %s6643_s18, %s5139_s9 }
  0x9f   : > { %v3904_v18 = vpop.eup %3903  ;;  %v306_v21 = vmul.f32 2.88539, %v305_v12  ;;  %v1332_v47 = vcvt.s32.f32 %v1331_v25  ;;  %v4583_v48 = vmin.u32 %v1497_v27, %v4569_v16  ;;  %v4616_v25 = vsel %vm1153_vm1, 1, %v4164_v4  ;;  %s2005_s17 = sadd.s32 %s5154_s15, %s5171_s24  ;;  %s5214_s6 = sshra.s32 %s2338_s28, 7 }
  0xa0   : > { %v485_v26 = vmul.f32 0.6931472, %v3904_v18  ;;  %3911 = vlog2.f32 %v1163_v23  ;;  %v1667_v12 = vsub.s32 0, %v4596_v57  ;;  %s5233_s23 = sshll.u32 %s2171_s8, 7  ;;  %s5237_s7 = sand.u32 127, %s2168_s13 }
  0xa1   : > { %v3745_v37 = vtrunc.f32 %v306_v21  ;;  %vm1500_vm15 = vcmp.gt.s32.totalorder %v4583_v48, 1  ;;  %v1333_v63 = vmul.f32 0.125, %v1332_v47  ;;  %s5271_s29 = sld [smem:[#allocation3 + %s2005_s17]]  ;;  %s2341_s2 = sadd.s32 %s6643_s18, %s5214_s6 }
  0xa2   : > { %v3906_v39 = vpop.eup %3905  ;;  %v486_v44 = vmul.f32 2.88539, %v485_v26  ;;  %v1501_v46 = vsel %vm1500_vm15, %v4583_v48, 1  ;;  %s2508_s14 = sadd.s32 13, %s4401_s4  ;;  %s5324_s26 = sshll.u32 %s2341_s2, 7 }
  0xa3   : > { %v3746_v49 = vcvt.f32.s32 %v3745_v37  ;;  %v655_v22 = vmul.f32 0.6931472, %v3906_v39  ;;  %v1502_v3 = vcvt.s32.f32 %v1501_v46  ;;  %3913 = vlog2.f32 %v1333_v63  ;;  %s5328_s10 = sand.u32 127, %s2338_s28  ;;  %s5350_s25 = sshra.s32 %s2508_s14, 7 }
  0xa4   : > { %v3747_v58 = vtrunc.f32 %v486_v44  ;;  %s2345_s1 = sadd.s32 %s5324_s26, %s5328_s10  ;;  %s2511_s13 = sadd.s32 %s6643_s18, %s5350_s25 }
  0xa5   : > { %v308_v32 = vadd.s32 8, %v3746_v49  ;;  %v656_v43 = vmul.f32 2.88539, %v655_v22  ;;  %v1503_v26 = vmul.f32 0.125, %v1502_v3  ;;  %v4619_v49 = vmin.u32 %v1667_v12, %v4596_v57  ;;  %s2678_s30 = sadd.s32 14, %s4401_s4  ;;  %s5440_s9 = sld [smem:[#allocation3 + %s2345_s1]] }
  0xa6   : > { %v3748_v62 = vcvt.f32.s32 %v3747_v58  ;;  %v3908_v5 = vpop.eup %3907  ;;  %s2848_s15 = sadd.s32 15, %s4401_s4  ;;  %s5459_s24 = sshll.u32 %s2511_s13, 7 }
  0xa7   : > { %vm309_vm2 = vcmp.lt.s32.totalorder %v308_v32, 15  ;;  %v3749_v8 = vtrunc.f32 %v656_v43  ;;  %v825_v21 = vmul.f32 0.6931472, %v3908_v5  ;;  %3915 = vlog2.f32 %v1503_v26  ;;  %s5463_s28 = sand.u32 127, %s2508_s14  ;;  %s6658_s8 = scalar_lea.vmem [#allocation4], %s4378_s21 }
  0xa8   : > { %v310_v15 = vsel %vm309_vm2, %v308_v32, 15  ;;  %v488_v18 = vadd.s32 8, %v3748_v62  ;;  %vm1670_vm6 = vcmp.gt.s32.totalorder %v4619_v49, 1  ;;  %s5483_s17 = sshra.s32 %s2678_s30, 7  ;;  %s5498_s21 = sshra.s32 %s2848_s15, 7 }
  0xa9   : > { %v311_v42 = vsel %vm299_vm10, %v4430_v7, %v310_v15  ;;  %v3750_v23 = vcvt.f32.s32 %v3749_v8  ;;  %v3910_v27 = vpop.eup %3909  ;;  %v826_v37 = vmul.f32 2.88539, %v825_v21  ;;  %v1155_v21 = vmul.u32 16, %v4616_v25  ;;  %s2515_s6 = sadd.s32 %s5459_s24, %s5463_s28  ;;  %s5610_s26 = sand.u32 127, %s2848_s15 }
  0xaa   : > { %v312_v30 = vadd.s32 %v311_v42, %v295_v19  ;;  %vm489_vm4 = vcmp.lt.s32.totalorder %v488_v18, 15  ;;  %v995_v47 = vmul.f32 0.6931472, %v3910_v27  ;;  %vm819_vm10 = vcmp.lt.s32.totalorder %v4491_v35, 8  ;;  %s3171_s1 = sshll.u32 %s4387_s3, 8  ;;  %s6676_s24 = sld [smem:[#allocation21_spill]] }
  0xab   : > { %v490_v39 = vsel %vm489_vm4, %v488_v18, 15  ;;  %v658_v44 = vadd.s32 8, %v3750_v23  ;;  %v3751_v32 = vtrunc.f32 %v826_v37  ;;  %v985_v18 = vmul.u32 16, %v4610_v31  ;;  %s6494_s13 = scalar_lea.vmem [#allocation10], %s3171_s1 }
  0xac   : > { %v326_v22 = vrot.slane %v312_v30, %v4475_v29  ;;  %v322_v7 = vrot.slane %v312_v30, %v4472_v28  ;;  %v491_v58 = vsel %vm479_vm12, %v4442_v13, %v490_v39  ;;  %v996_v19 = vmul.f32 2.88539, %v995_v47 }
  0xad   : > { %v492_v43 = vadd.s32 %v491_v58, %v475_v38  ;;  %vm659_vm5 = vcmp.lt.s32.totalorder %v658_v44, 15  ;;  %v3752_v3 = vcvt.f32.s32 %v3751_v32  ;;  %v3912_v12 = vpop.eup %3911  ;;  %v4165_v23 = vmov 1.0  }
  0xae   : > { %v328_v46 = vsel %vm4587_vm13, %v326_v22, %v4559_v14  ;;  %v327_v62 = vsel %vm4591_vm14, %v322_v7, %v4562_v6  ;;  %v660_v63 = vsel %vm659_vm5, %v658_v44, 15  ;;  %v3753_v39 = vtrunc.f32 %v996_v19 }
  0xaf   : > { %v4633_v5 = vrot.slane %v328_v46, %v4472_v28  ;;  %v4636_v13 = vrot.slane %v327_v62, %v4472_v28  ;;  %v500_v38 = vrot.slane %v492_v43, %v4475_v29  ;;  %v496_v8 = vrot.slane %v492_v43, %v4472_v28 }
  0xb0   : > { %v828_v15 = vadd.s32 8, %v3752_v3  ;;  %v661_v30 = vsel %vm649_vm3, %v4453_v20, %v660_v63  ;;  %v1165_v44 = vmul.f32 0.6931472, %v3912_v12  ;;  %v4699_v20 = vsel %vm1670_vm6, %v4619_v49, 1  ;;  %v3914_v47 = vpop.eup %3913  ;;  %p6678_p4 = scmp.ne.s32.totalorder %s6676_s24, 0 }
  0xb1   : > { %vm352_vm7 = vcmp.eq.s32.totalorder %v4465_v24, %v4633_v5  ;;  %vm351_vm8 = vcmp.eq.s32.totalorder %v4465_v24, %v4636_v13  ;;  %v502_v42 = vsel %vm4587_vm13, %v500_v38, %v4559_v14  ;;  %vm350_vm9 = vcmp.eq.s32.totalorder %v4485_v33, %v4633_v5 }
  0xb2   : > { %3193 = vmatprep.subr.msk.mxu0 %vm352_vm7, %v4165_v23  ;;  %v4655_v26 = vrot.slane %v502_v42, %v4475_v29  ;;  %v501_v27 = vsel %vm4591_vm14, %v496_v8, %v4562_v6  ;;  %vm349_vm11 = vcmp.eq.s32.totalorder %v4485_v33, %v4636_v13  ;;  %vm348_vm12 = vcmp.eq.s32.totalorder %v4488_v34, %v4633_v5 }
  0xb3   : > { %3194 = vmatpush1.msk.msra.mxu0 %vm351_vm8, %v4165_v23  ;;  %v4667_v37 = vrot.slane %v501_v27, %v4475_v29  ;;  %vm347_vm1 = vcmp.eq.s32.totalorder %v4488_v34, %v4636_v13  ;;  %vm346_vm2 = vcmp.eq.s32.totalorder %v4495_v36, %v4633_v5  ;;  %vm345_vm5 = vcmp.eq.s32.totalorder %v4495_v36, %v4636_v13 }
  0xb4   : > { %vm526_vm15 = vcmp.eq.s32.totalorder %v4465_v24, %v4655_v26  ;;  %3195 = vmatprep.subr.msk.mxu0 %vm350_vm9, %v4165_v23  ;;  %vm524_vm0 = vcmp.eq.s32.totalorder %v4485_v33, %v4655_v26  ;;  %vm829_vm7 = vcmp.lt.s32.totalorder %v828_v15, 15  ;;  %vm522_vm8 = vcmp.eq.s32.totalorder %v4488_v34, %v4655_v26  ;;  %v3916_v43 = vpop.eup %3915 }
  0xb5   : > { %3228 = vmatprep.subr.msk.mxu1 %vm526_vm15, %v4165_v23  ;;  %vm525_vm3 = vcmp.eq.s32.totalorder %v4465_v24, %v4667_v37  ;;  %3196 = vmatpush1.msk.msra.mxu0 %vm349_vm11, %v4165_v23  ;;  %vm523_vm4 = vcmp.eq.s32.totalorder %v4485_v33, %v4667_v37  ;;  %vm521_vm9 = vcmp.eq.s32.totalorder %v4488_v34, %v4667_v37  ;;  %v3754_v22 = vcvt.f32.s32 %v3753_v39 }
  0xb6   : > { %3229 = vmatpush1.msk.msra.mxu1 %vm525_vm3, %v4165_v23  ;;  %3197 = vmatprep.subr.msk.mxu0 %vm348_vm12, %v4165_v23  ;;  %vm520_vm11 = vcmp.eq.s32.totalorder %v4495_v36, %v4655_v26  ;;  %vm344_vm12 = vcmp.eq.s32.totalorder %v4500_v40, %v4633_v5  ;;  %vm519_vm15 = vcmp.eq.s32.totalorder %v4495_v36, %v4667_v37  ;;  %v830_v7 = vsel %vm829_vm7, %v828_v15, 15 }
  0xb7   : > { %3230 = vmatprep.subr.msk.mxu1 %vm524_vm0, %v4165_v23  ;;  %3198 = vmatpush1.msk.msra.mxu0 %vm347_vm1, %v4165_v23  ;;  %vm343_vm6 = vcmp.eq.s32.totalorder %v4500_v40, %v4636_v13  ;;  %vm518_vm0 = vcmp.eq.s32.totalorder %v4500_v40, %v4655_v26  ;;  %vm342_vm1 = vcmp.eq.s32.totalorder %v4503_v41, %v4633_v5  ;;  %v1166_v58 = vmul.f32 2.88539, %v1165_v44 }
  0xb8   : > { %3231 = vmatpush1.msk.msra.mxu1 %vm523_vm4, %v4165_v23  ;;  %3199 = vmatprep.subr.msk.mxu0 %vm346_vm2, %v4165_v23  ;;  %vm517_vm2 = vcmp.eq.s32.totalorder %v4500_v40, %v4667_v37  ;;  %vm341_vm4 = vcmp.eq.s32.totalorder %v4503_v41, %v4636_v13  ;;  %vm516_vm7 = vcmp.eq.s32.totalorder %v4503_v41, %v4655_v26  ;;  %v998_v32 = vadd.s32 8, %v3754_v22 }
  0xb9   : > { %3232 = vmatprep.subr.msk.mxu1 %vm522_vm8, %v4165_v23  ;;  %3200 = vmatpush1.msk.msra.mxu0 %vm345_vm5, %v4165_v23  ;;  %vm340_vm5 = vcmp.eq.s32.totalorder %v4521_v50, %v4633_v5  ;;  %vm515_vm8 = vcmp.eq.s32.totalorder %v4503_v41, %v4667_v37  ;;  %vm339_vm3 = vcmp.eq.s32.totalorder %v4521_v50, %v4636_v13  ;;  %v3755_v19 = vtrunc.f32 %v1166_v58 }
  0xba   : > { %3233 = vmatpush1.msk.msra.mxu1 %vm521_vm9, %v4165_v23  ;;  %3201 = vmatprep.subr.msk.mxu0 %vm344_vm12, %v4165_v23  ;;  %vm514_vm9 = vcmp.eq.s32.totalorder %v4521_v50, %v4655_v26  ;;  %vm338_vm12 = vcmp.eq.s32.totalorder %v4449_v17, %v4633_v5  ;;  %v662_v46 = vadd.s32 %v661_v30, %v645_v59  ;;  %v1672_v62 = vcvt.s32.f32 %v4699_v20 }
  0xbb   : > { %3234 = vmatprep.subr.msk.mxu1 %vm520_vm11, %v4165_v23  ;;  %3202 = vmatpush1.msk.msra.mxu0 %vm343_vm6, %v4165_v23  ;;  %v831_v63 = vsel %vm819_vm10, %v4491_v35, %v830_v7  ;;  %vm999_vm11 = vcmp.lt.s32.totalorder %v998_v32, 15  ;;  %v3756_v11 = vcvt.f32.s32 %v3755_v19  ;;  %v1335_v59 = vmul.f32 0.6931472, %v3914_v47 }
  0xbc   : > { %3235 = vmatpush1.msk.msra.mxu1 %vm519_vm15, %v4165_v23  ;;  %3203 = vmatprep.subr.msk.mxu0 %vm342_vm1, %v4165_v23  ;;  %v670_v3 = vrot.slane %v662_v46, %v4475_v29  ;;  %v666_v38 = vrot.slane %v662_v46, %v4472_v28  ;;  %v832_v35 = vadd.s32 %v831_v63, %v815_v10  ;;  %v1505_v8 = vmul.f32 0.6931472, %v3916_v43  ;;  %v4823_v10 = vld [vmem:[#allocation9] sm:$0xff] }
  0xbd   : > { %3236 = vmatprep.subr.msk.mxu1 %vm518_vm0, %v4165_v23  ;;  %3204 = vmatpush1.msk.msra.mxu0 %vm341_vm4, %v4165_v23  ;;  %vm513_vm10 = vcmp.eq.s32.totalorder %v4521_v50, %v4667_v37  ;;  %vm337_vm15 = vcmp.eq.s32.totalorder %v4449_v17, %v4636_v13  ;;  %vm512_vm6 = vcmp.eq.s32.totalorder %v4449_v17, %v4655_v26  ;;  %v1336_v60 = vmul.f32 2.88539, %v1335_v59 }
  0xbe   : > { %3237 = vmatpush1.msk.msra.mxu1 %vm517_vm2, %v4165_v23  ;;  %3205 = vmatprep.subr.msk.mxu0 %vm340_vm5, %v4165_v23  ;;  %v672_v12 = vsel %vm4587_vm13, %v670_v3, %v4559_v14  ;;  %v671_v15 = vsel %vm4591_vm14, %v666_v38, %v4562_v6  ;;  %v840_v42 = vrot.slane %v832_v35, %v4475_v29  ;;  %v1506_v27 = vmul.f32 2.88539, %v1505_v8 }
  0xbf   : > { %3238 = vmatprep.subr.msk.mxu1 %vm516_vm7, %v4165_v23  ;;  %3206 = vmatpush1.msk.msra.mxu0 %vm339_vm3, %v4165_v23  ;;  %v4841_v30 = vrot.slane %v672_v12, %v4524_v51  ;;  %v4844_v39 = vrot.slane %v671_v15, %v4524_v51  ;;  %v836_v44 = vrot.slane %v832_v35, %v4472_v28  ;;  %v1000_v47 = vsel %vm999_vm11, %v998_v32, 15 }
  0xc0   : > { %3239 = vmatpush1.msk.msra.mxu1 %vm515_vm8, %v4165_v23  ;;  %3207 = vmatprep.subr.msk.mxu0 %vm338_vm12, %v4165_v23  ;;  %vm511_vm3 = vcmp.eq.s32.totalorder %v4449_v17, %v4667_v37  ;;  %v842_v5 = vsel %vm4587_vm13, %v840_v42, %v4559_v14  ;;  %v1168_v22 = vadd.s32 8, %v3756_v11  ;;  %v3757_v7 = vtrunc.f32 %v1336_v60 }
  0xc1   : > { %3240 = vmatprep.subr.msk.mxu1 %vm514_vm9, %v4165_v23  ;;  %3208 = vmatpush1.msk.msra.mxu0 %vm337_vm15, %v4165_v23  ;;  %vm6649_vm0 = vcmask 523264   ;;  %vm696_vm1 = vcmp.eq.s32.totalorder %v4465_v24, %v4841_v30  ;;  %vm695_vm2 = vcmp.eq.s32.totalorder %v4465_v24, %v4844_v39  ;;  %v4874_v13 = vrot.slane %v842_v5, %v4531_v54 }
  0xc2   : > { %3241 = vmatpush1.msk.msra.mxu1 %vm513_vm10, %v4165_v23  ;;  %3209 = vmatmul.mubr.msk.f32.vlgmr.msra.gmra.mxu0 %vm6649_vm0, %v4823_v10  ;;  %v3759_v58 = vtrunc.f32 %v1506_v27  ;;  %vm694_vm4 = vcmp.eq.s32.totalorder %v4485_v33, %v4841_v30  ;;  %v841_v32 = vsel %vm4591_vm14, %v836_v44, %v4562_v6  ;;  %vm6650_vm7 = vcmp.lt.s32.totalorder %v4515_v45, 8  ;;  %vm6652_vm11 = vmmov %vm6649_vm0 }
  0xc3   : > { %3242 = vmatprep.subr.msk.mxu1 %vm512_vm6, %v4165_v23  ;;  %3263 = vmatprep.subr.msk.mxu0 %vm696_vm1, %v4165_v23  ;;  %v1001_v43 = vsel %vm6650_vm7, %v4515_v45, %v1000_v47  ;;  %vm1159_vm5 = vcmp.lt.s32.totalorder %v4535_v56, 8  ;;  %v3758_v19 = vcvt.f32.s32 %v3757_v7  ;;  %vm866_vm8 = vcmp.eq.s32.totalorder %v4465_v24, %v4874_v13 }
  0xc4   : > { %3243 = vmatpush1.msk.msra.mxu1 %vm511_vm3, %v4165_v23  ;;  %3264 = vmatpush1.msk.msra.mxu0 %vm695_vm2, %v4165_v23  ;;  %v4898_v26 = vrot.slane %v841_v32, %v4531_v54  ;;  %vm693_vm9 = vcmp.eq.s32.totalorder %v4485_v33, %v4844_v39  ;;  %vm6651_vm12 = vcmp.gt.s32.totalorder %v4528_v52, 0  ;;  %vm864_vm10 = vcmp.eq.s32.totalorder %v4485_v33, %v4874_v13  ;;  %v5268_v32 = vld [vmem:[%s4390_s16 + $0x8] sm:$0xff]  ;;  %s2175_s16 = sadd.s32 %s5233_s23, %s5237_s7  ;;  %s2681_s23 = sadd.s32 %s6643_s18, %s5483_s17 }
  0xc5   : > { %v4905_v45 = vsel %vm6651_vm12, 1, %v4164_v4  ;;  %3244 = vmatmul.mubr.msk.f32.vlgmr.msra.gmra.mxu1 %vm6652_vm11, %v4823_v10  ;;  %3298 = vmatprep.subr.msk.mxu1 %vm866_vm8, %v4165_v23  ;;  %vm692_vm15 = vcmp.eq.s32.totalorder %v4488_v34, %v4841_v30  ;;  %vm1169_vm6 = vcmp.lt.s32.totalorder %v1168_v22, 15  ;;  %v3760_v52 = vcvt.f32.s32 %v3759_v58  ;;  %s2851_s7 = sadd.s32 %s6643_s18, %s5498_s21  ;;  %s5580_s2 = sshll.u32 %s2681_s23, 7 }
  0xc6   : > { %3265 = vmatprep.subr.msk.mxu0 %vm694_vm4, %v4165_v23  ;;  %vm865_vm3 = vcmp.eq.s32.totalorder %v4465_v24, %v4898_v26  ;;  %vm863_vm0 = vcmp.eq.s32.totalorder %v4485_v33, %v4898_v26  ;;  %vm691_vm1 = vcmp.eq.s32.totalorder %v4488_v34, %v4844_v39  ;;  %v1673_v37 = vmul.f32 0.125, %v1672_v62  ;;  %793 = vmatprep.mubr.f32.mxu0 %v4163_v0  ;;  %s5606_s14 = sshll.u32 %s2851_s7, 7  ;;  %s4166_s7 = smov [#allocation10]  }
  0xc7   : > { %3299 = vmatpush1.msk.msra.mxu1 %vm865_vm3, %v4165_v23  ;;  %3266 = vmatpush1.msk.msra.mxu0 %vm693_vm9, %v4165_v23  ;;  %vm862_vm2 = vcmp.eq.s32.totalorder %v4488_v34, %v4874_v13  ;;  %vm690_vm4 = vcmp.eq.s32.totalorder %v4495_v36, %v4841_v30  ;;  %v1338_v46 = vadd.s32 8, %v3758_v19  ;;  %vm861_vm9 = vcmp.eq.s32.totalorder %v4488_v34, %v4898_v26  ;;  %s2855_s10 = sadd.s32 %s5606_s14, %s5610_s26 }
  0xc8   : > { %3300 = vmatprep.subr.msk.mxu1 %vm864_vm10, %v4165_v23  ;;  %3267 = vmatprep.subr.msk.mxu0 %vm692_vm15, %v4165_v23  ;;  %vm689_vm12 = vcmp.eq.s32.totalorder %v4495_v36, %v4844_v39  ;;  %v1002_v20 = vadd.s32 %v1001_v43, %v985_v18  ;;  %v1170_v62 = vsel %vm1169_vm6, %v1168_v22, 15  ;;  %vm860_vm11 = vcmp.eq.s32.totalorder %v4495_v36, %v4874_v13  ;;  %s5715_s25 = sld [smem:[#allocation3 + %s2855_s10]] }
  0xc9   : > { %3301 = vmatpush1.msk.msra.mxu1 %vm863_vm0, %v4165_v23  ;;  %3268 = vmatpush1.msk.msra.mxu0 %vm691_vm1, %v4165_v23  ;;  %vm688_vm10 = vcmp.eq.s32.totalorder %v4500_v40, %v4841_v30  ;;  %vm859_vm15 = vcmp.eq.s32.totalorder %v4495_v36, %v4898_v26  ;;  %v1508_v31 = vadd.s32 8, %v3760_v52  ;;  %vm687_vm6 = vcmp.eq.s32.totalorder %v4500_v40, %v4844_v39 }
  0xca   : > { %3302 = vmatprep.subr.msk.mxu1 %vm862_vm2, %v4165_v23  ;;  %3269 = vmatprep.subr.msk.mxu0 %vm690_vm4, %v4165_v23  ;;  %vm858_vm3 = vcmp.eq.s32.totalorder %v4500_v40, %v4874_v13  ;;  %vm686_vm0 = vcmp.eq.s32.totalorder %v4503_v41, %v4841_v30  ;;  %3917 = vlog2.f32 %v1673_v37  ;;  %vm857_vm1 = vcmp.eq.s32.totalorder %v4500_v40, %v4898_v26 }
  0xcb   : > { %3303 = vmatpush1.msk.msra.mxu1 %vm861_vm9, %v4165_v23  ;;  %3270 = vmatpush1.msk.msra.mxu0 %vm689_vm12, %v4165_v23  ;;  %vm685_vm2 = vcmp.eq.s32.totalorder %v4503_v41, %v4844_v39  ;;  %vm1339_vm7 = vcmp.lt.s32.totalorder %v1338_v46, 15  ;;  %vm684_vm9 = vcmp.eq.s32.totalorder %v4521_v50, %v4841_v30  ;;  %vm855_vm12 = vcmp.eq.s32.totalorder %v4503_v41, %v4898_v26 }
  0xcc   : > { %3304 = vmatprep.subr.msk.mxu1 %vm860_vm11, %v4165_v23  ;;  %3271 = vmatprep.subr.msk.mxu0 %vm688_vm10, %v4165_v23  ;;  %vm683_vm8 = vcmp.eq.s32.totalorder %v4521_v50, %v4844_v39  ;;  %vm1509_vm4 = vcmp.lt.s32.totalorder %v1508_v31, 15  ;;  %vm854_vm11 = vcmp.eq.s32.totalorder %v4521_v50, %v4874_v13  ;;  %v1010_v18 = vrot.slane %v1002_v20, %v4475_v29 }
  0xcd   : > { %3305 = vmatpush1.msk.msra.mxu1 %vm859_vm15, %v4165_v23  ;;  %3272 = vmatpush1.msk.msra.mxu0 %vm687_vm6, %v4165_v23  ;;  %v1006_v63 = vrot.slane %v1002_v20, %v4472_v28  ;;  %vm1499_vm10 = vcmp.lt.s32.totalorder %v4583_v48, 8  ;;  %vm682_vm15 = vcmp.eq.s32.totalorder %v4449_v17, %v4841_v30  ;;  %vm853_vm6 = vcmp.eq.s32.totalorder %v4521_v50, %v4898_v26 }
  0xce   : > { %3306 = vmatprep.subr.msk.mxu1 %vm858_vm3, %v4165_v23  ;;  %3273 = vmatprep.subr.msk.mxu0 %vm686_vm0, %v4165_v23  ;;  %v1171_v11 = vsel %vm1159_vm5, %v4535_v56, %v1170_v62  ;;  %v1340_v59 = vsel %vm1339_vm7, %v1338_v46, 15  ;;  %v1012_v3 = vsel %vm4587_vm13, %v1010_v18, %v4559_v14  ;;  %v1510_v35 = vsel %vm1509_vm4, %v1508_v31, 15 }
  0xcf   : > { %3307 = vmatpush1.msk.msra.mxu1 %vm857_vm1, %v4165_v23  ;;  %3274 = vmatpush1.msk.msra.mxu0 %vm685_vm2, %v4165_v23  ;;  %v1011_v56 = vsel %vm4591_vm14, %v1006_v63, %v4562_v6  ;;  %v1172_v38 = vadd.s32 %v1171_v11, %v1155_v21  ;;  %vm6653_vm5 = vcmp.eq.s32.totalorder %v4503_v41, %v4874_v13  ;;  %vm6654_vm3 = vcmp.gt.s32.totalorder %v4569_v16, 0 }
  0xd0   : > { %3308 = vmatprep.subr.msk.mxu1 %vm6653_vm5, %v4165_v23  ;;  %3275 = vmatprep.subr.msk.mxu0 %vm684_vm9, %v4165_v23  ;;  %vm681_vm7 = vcmp.eq.s32.totalorder %v4449_v17, %v4844_v39  ;;  %v5080_v25 = vrot.slane %v1012_v3, %v4544_v61  ;;  %v5083_v21 = vrot.slane %v1011_v56, %v4544_v61  ;;  %v1494_v8 = vsel %vm6654_vm3, 1, %v4164_v4 }
  0xd1   : > { %3309 = vmatpush1.msk.msra.mxu1 %vm855_vm12, %v4165_v23  ;;  %3276 = vmatpush1.msk.msra.mxu0 %vm683_vm8, %v4165_v23  ;;  %vm852_vm0 = vcmp.eq.s32.totalorder %v4449_v17, %v4874_v13  ;;  %v1180_v60 = vrot.slane %v1172_v38, %v4475_v29  ;;  %v1176_v16 = vrot.slane %v1172_v38, %v4472_v28  ;;  %v1325_v12 = vmul.u32 16, %v4905_v45 }
  0xd2   : > { %3310 = vmatprep.subr.msk.mxu1 %vm854_vm11, %v4165_v23  ;;  %3277 = vmatprep.subr.msk.mxu0 %vm682_vm15, %v4165_v23  ;;  %vm851_vm8 = vcmp.eq.s32.totalorder %v4449_v17, %v4898_v26  ;;  %vm6655_vm1 = vcmp.lt.s32.totalorder %v4550_v2, 8  ;;  %v1511_v42 = vsel %vm1499_vm10, %v4583_v48, %v1510_v35  ;;  %v1837_v27 = vstv %s4988_s11  ;;  %s5346_s11 = sld [smem:[#allocation3 + %s2175_s16]]  ;;  %s5584_s16 = sand.u32 127, %s2678_s30 }
  0xd3   : > { %v1341_v15 = vsel %vm6655_vm1, %v4550_v2, %v1340_v59  ;;  %3311 = vmatpush1.msk.msra.mxu1 %vm853_vm6, %v4165_v23  ;;  %3278 = vmatpush1.msk.msra.mxu0 %vm681_vm7, %v4165_v23  ;;  %vm1036_vm2 = vcmp.eq.s32.totalorder %v4465_v24, %v5080_v25  ;;  %v1182_v2 = vsel %vm4587_vm13, %v1180_v60, %v4559_v14  ;;  %v1495_v30 = vmul.u32 16, %v1494_v8  ;;  %s2685_s4 = sadd.s32 %s5580_s2, %s5584_s16  ;;  %s3738_s30 = sshll.u32 %s6642_s5, 5 }
  0xd4   : > { %v1181_v48 = vsel %vm4591_vm14, %v1176_v16, %v4562_v6  ;;  %3312 = vmatprep.subr.msk.mxu1 %vm852_vm0, %v4165_v23  ;;  %vm1035_vm4 = vcmp.eq.s32.totalorder %v4465_v24, %v5083_v21  ;;  %v5149_v39 = vrot.slane %v1182_v2, %v4556_v9  ;;  %vm6656_vm9 = vcmask 523264   ;;  %963 = vmatprep.mubr.f32.mxu1 %v4163_v0  ;;  %v5476_v16 = vld [vmem:[%s6658_s8] sm:$0x3]  ;;  %s3035_s8 = sshll.u32 %s6494_s13, 4  ;;  %s3019_s5 = scalar_lea.sflag [#allocation6], %s4387_s3  ;;  %s3036_s8 = int_to_ptr.vmem [resolvable:$true] %s3035_s8 }
  0xd5   : > { %v5152_v44 = vrot.slane %v1181_v48, %v4556_v9  ;;  %3279 = vmatmul.mubr.msk.f32.vlgmr.msra.gmra.mxu0 %vm6656_vm9, %v4823_v10  ;;  %3313 = vmatpush1.msk.msra.mxu1 %vm851_vm8, %v4165_v23  ;;  %vm1034_vm12 = vcmp.eq.s32.totalorder %v4485_v33, %v5080_v25  ;;  %v5164_v47 = vadd.s32 %v1341_v15, %v1325_v12  ;;  %vm6657_vm6 = vmmov %vm6656_vm9  ;;  %v5231_v13 = vsub.s32 6, %v4449_v17 }
  0xd6   : > { %v5167_v5 = vsub.s32 %v4414_v1, %v1837_v27  ;;  %3333 = vmatprep.subr.msk.mxu0 %vm1036_vm2, %v4165_v23  ;;  %vm1206_vm11 = vcmp.eq.s32.totalorder %v4465_v24, %v5149_v39  ;;  %vm1033_vm15 = vcmp.eq.s32.totalorder %v4485_v33, %v5083_v21  ;;  %3314 = vmatmul.mubr.msk.f32.vlgmr.msra.gmra.mxu1 %vm6657_vm6, %v4823_v10  ;;  %v5307_v26 = vsub.s32 7, %v4449_v17 }
  0xd7   : > { %vm1205_vm10 = vcmp.eq.s32.totalorder %v4465_v24, %v5152_v44  ;;  %v3918_v1 = vpop.eup %3917  ;;  %3334 = vmatpush1.msk.msra.mxu0 %vm1035_vm4, %v4165_v23  ;;  %vm1204_vm5 = vcmp.eq.s32.totalorder %v4485_v33, %v5149_v39  ;;  %vm1032_vm7 = vcmp.eq.s32.totalorder %v4488_v34, %v5080_v25  ;;  %v5197_v22 = vadd.s32 %v1511_v42, %v1495_v30 }
  0xd8   : > { %3368 = vmatprep.subr.msk.mxu1 %vm1206_vm11, %v4165_v23  ;;  %3335 = vmatprep.subr.msk.mxu0 %vm1034_vm12, %v4165_v23  ;;  %vm1203_vm3 = vcmp.eq.s32.totalorder %v4485_v33, %v5152_v44  ;;  %vm1031_vm0 = vcmp.eq.s32.totalorder %v4488_v34, %v5083_v21  ;;  %vm1030_vm8 = vcmp.eq.s32.totalorder %v4495_v36, %v5080_v25  ;;  %v1675_v7 = vmul.f32 0.6931472, %v3918_v1 }
  0xd9   : > { %3369 = vmatpush1.msk.msra.mxu1 %vm1205_vm10, %v4165_v23  ;;  %3336 = vmatpush1.msk.msra.mxu0 %vm1033_vm15, %v4165_v23  ;;  %vm1202_vm1 = vcmp.eq.s32.totalorder %v4488_v34, %v5149_v39  ;;  %vm1201_vm2 = vcmp.eq.s32.totalorder %v4488_v34, %v5152_v44  ;;  %vm1029_vm4 = vcmp.eq.s32.totalorder %v4495_v36, %v5083_v21  ;;  %v1843_v43 = vsub.s32 0, %v5167_v5 }
  0xda   : > { %3370 = vmatprep.subr.msk.mxu1 %vm1204_vm5, %v4165_v23  ;;  %3337 = vmatprep.subr.msk.mxu0 %vm1032_vm7, %v4165_v23  ;;  %vm1200_vm9 = vcmp.eq.s32.totalorder %v4495_v36, %v5149_v39  ;;  %vm1028_vm12 = vcmp.eq.s32.totalorder %v4500_v40, %v5080_v25  ;;  %vm1199_vm11 = vcmp.eq.s32.totalorder %v4495_v36, %v5152_v44  ;;  %v1676_v58 = vmul.f32 2.88539, %v1675_v7 }
  0xdb   : > { %3371 = vmatpush1.msk.msra.mxu1 %vm1203_vm3, %v4165_v23  ;;  %3338 = vmatpush1.msk.msra.mxu0 %vm1031_vm0, %v4165_v23  ;;  %vm1027_vm10 = vcmp.eq.s32.totalorder %v4500_v40, %v5083_v21  ;;  %vm1198_vm15 = vcmp.eq.s32.totalorder %v4500_v40, %v5149_v39  ;;  %vm1026_vm6 = vcmp.eq.s32.totalorder %v4503_v41, %v5080_v25  ;;  %v271_v46 = vunpack.c.l.b16 %v5268_v32 }
  0xdc   : > { %3372 = vmatprep.subr.msk.mxu1 %vm1202_vm1, %v4165_v23  ;;  %3339 = vmatprep.subr.msk.mxu0 %vm1030_vm8, %v4165_v23  ;;  %vm1197_vm5 = vcmp.eq.s32.totalorder %v4500_v40, %v5152_v44  ;;  %vm1025_vm7 = vcmp.eq.s32.totalorder %v4503_v41, %v5083_v21  ;;  %vm1196_vm3 = vcmp.eq.s32.totalorder %v4503_v41, %v5149_v39  ;;  %v3761_v19 = vtrunc.f32 %v1676_v58 }
  0xdd   : > { %3373 = vmatpush1.msk.msra.mxu1 %vm1201_vm2, %v4165_v23  ;;  %3340 = vmatpush1.msk.msra.mxu0 %vm1029_vm4, %v4165_v23  ;;  %vm1024_vm0 = vcmp.eq.s32.totalorder %v4521_v50, %v5080_v25  ;;  %vm1195_vm8 = vcmp.eq.s32.totalorder %v4503_v41, %v5152_v44  ;;  %vm1023_vm1 = vcmp.eq.s32.totalorder %v4521_v50, %v5083_v21  ;;  %vm1663_vm4 = vcmp.gt.s32.totalorder %v4596_v57, 0 }
  0xde   : > { %3374 = vmatprep.subr.msk.mxu1 %vm1200_vm9, %v4165_v23  ;;  %3341 = vmatprep.subr.msk.mxu0 %vm1028_vm12, %v4165_v23  ;;  %v1350_v45 = vrot.slane %v5164_v47, %v4475_v29  ;;  %v1346_v52 = vrot.slane %v5164_v47, %v4472_v28  ;;  %v1520_v37 = vrot.slane %v5197_v22, %v4475_v29  ;;  %v3762_v11 = vcvt.f32.s32 %v3761_v19 }
  0xdf   : > { %3375 = vmatpush1.msk.msra.mxu1 %vm1199_vm11, %v4165_v23  ;;  %3342 = vmatpush1.msk.msra.mxu0 %vm1027_vm10, %v4165_v23  ;;  %vm1194_vm2 = vcmp.eq.s32.totalorder %v4521_v50, %v5149_v39  ;;  %v1516_v20 = vrot.slane %v5197_v22, %v4472_v28  ;;  %v5344_v62 = vmin.u32 %v1843_v43, %v5167_v5  ;;  %v272_v53 = vunpack.c.h.b16 %v5268_v32 }
  0xe0   : > { %3376 = vmatprep.subr.msk.mxu1 %vm1198_vm15, %v4165_v23  ;;  %3343 = vmatprep.subr.msk.mxu0 %vm1026_vm6, %v4165_v23  ;;  %v1352_v31 = vsel %vm4587_vm13, %v1350_v45, %v4559_v14  ;;  %v1351_v18 = vsel %vm4591_vm14, %v1346_v52, %v4562_v6  ;;  %v1522_v63 = vsel %vm4587_vm13, %v1520_v37, %v4559_v14  ;;  %v2007_v56 = vstv %s5271_s29  ;;  %s5563_s29 = sld [smem:[#allocation3 + %s2515_s6]] }
  0xe1   : > { %3377 = vmatpush1.msk.msra.mxu1 %vm1197_vm5, %v4165_v23  ;;  %3344 = vmatpush1.msk.msra.mxu0 %vm1025_vm7, %v4165_v23  ;;  %vm1022_vm9 = vcmp.eq.s32.totalorder %v4449_v17, %v5080_v25  ;;  %vm1193_vm12 = vcmp.eq.s32.totalorder %v4521_v50, %v5152_v44  ;;  %v5382_v14 = vrot.slane %v1352_v31, %v5231_v13  ;;  %vm1846_vm11 = vcmp.gt.s32.totalorder %v5344_v62, 1  ;;  %s6677_s6 = sld [smem:[#allocation29_spill]] }
  0xe2   : > { %3378 = vmatprep.subr.msk.mxu1 %vm1196_vm3, %v4165_v23  ;;  %3345 = vmatprep.subr.msk.mxu0 %vm1024_vm0, %v4165_v23  ;;  %vm1021_vm13 = vcmp.eq.s32.totalorder %v4449_v17, %v5083_v21  ;;  %v5398_v59 = vrot.slane %v1351_v18, %v5231_v13  ;;  %v1521_v3 = vsel %vm4591_vm14, %v1516_v20, %v4562_v6  ;;  %v5422_v6 = vsel %vm1663_vm4, 1, %v4164_v4 }
  0xe3   : > { %3379 = vmatpush1.msk.msra.mxu1 %vm1195_vm8, %v4165_v23  ;;  %3346 = vmatpush1.msk.msra.mxu0 %vm1023_vm1, %v4165_v23  ;;  %vm1192_vm10 = vcmp.eq.s32.totalorder %v4449_v17, %v5149_v39  ;;  %v5417_v55 = vrot.slane %v1522_v63, %v5307_v26  ;;  %vm1191_vm14 = vcmp.eq.s32.totalorder %v4449_v17, %v5152_v44  ;;  %v1678_v38 = vadd.s32 8, %v3762_v11 }
  0xe4   : > { %3380 = vmatprep.subr.msk.mxu1 %vm1194_vm2, %v4165_v23  ;;  %3347 = vmatprep.subr.msk.mxu0 %vm1022_vm9, %v4165_v23  ;;  %v5437_v57 = vrot.slane %v1521_v3, %v5307_v26  ;;  %v1847_v35 = vsel %vm1846_vm11, %v5344_v62, 1  ;;  %vm1376_vm15 = vcmp.eq.s32.totalorder %v4465_v24, %v5382_v14  ;;  %v5455_v25 = vadd.s32 4294967295, %v271_v46 }
  0xe5   : > { %3381 = vmatpush1.msk.msra.mxu1 %vm1193_vm12, %v4165_v23  ;;  %3348 = vmatpush1.msk.msra.mxu0 %vm1021_vm13, %v4165_v23  ;;  %v5457_v8 = vadd.s32 4294967295, %v272_v53  ;;  %v1848_v60 = vcvt.s32.f32 %v1847_v35  ;;  %vm1375_vm6 = vcmp.eq.s32.totalorder %v4465_v24, %v5398_v59  ;;  %v1665_v21 = vmul.u32 16, %v5422_v6 }
  0xe6   : > { %1133 = vmatprep.mubr.f32.mxu0 %v4163_v0  ;;  %3382 = vmatprep.subr.msk.mxu1 %vm1192_vm10, %v4165_v23  ;;  %vm1669_vm5 = vcmp.lt.s32.totalorder %v4619_v49, 8  ;;  %v5479_v12 = vsub.s32 %v5476_v16, %v2007_v56  ;;  %vm6659_vm7 = vcmask 523264   ;;  %vm1546_vm3 = vcmp.eq.s32.totalorder %v4465_v24, %v5417_v55 }
  0xe7   : > { %3349 = vmatmul.mubr.msk.f32.vlgmr.msra.gmra.mxu0 %vm6659_vm7, %v4823_v10  ;;  %3383 = vmatpush1.msk.msra.mxu1 %vm1191_vm14, %v4165_v23  ;;  %vm1374_vm0 = vcmp.eq.s32.totalorder %v4485_v33, %v5382_v14  ;;  %v1849_v15 = vmul.f32 0.125, %v1848_v60  ;;  %v2177_v42 = vstv %s5346_s11  ;;  %vm1545_vm8 = vcmp.eq.s32.totalorder %v4465_v24, %v5437_v57  ;;  %vm6662_vm12 = vmmov %vm6659_vm7  ;;  %s5696_s11 = sld [smem:[#allocation3 + %s2685_s4]] }
  0xe8   : > { %1303 = vmatprep.mubr.f32.mxu1 %v4163_v0  ;;  %3403 = vmatprep.subr.msk.mxu0 %vm1376_vm15, %v4165_v23  ;;  %vm1373_vm1 = vcmp.eq.s32.totalorder %v4485_v33, %v5398_v59  ;;  %vm1544_vm2 = vcmp.eq.s32.totalorder %v4485_v33, %v5417_v55  ;;  %vm1679_vm4 = vcmp.lt.s32.totalorder %v1678_v38, 15  ;;  %vm5511_vm9 = vcmp.eq.s32.totalorder %v272_v53, 0 }
  0xe9   : > { %3384 = vmatmul.mubr.msk.f32.vlgmr.msra.gmra.mxu1 %vm6662_vm12, %v4823_v10  ;;  %3404 = vmatpush1.msk.msra.mxu0 %vm1375_vm6, %v4165_v23  ;;  %vm1372_vm13 = vcmp.eq.s32.totalorder %v4488_v34, %v5382_v14  ;;  %vm1543_vm11 = vcmp.eq.s32.totalorder %v4485_v33, %v5437_v57  ;;  %vm1371_vm10 = vcmp.eq.s32.totalorder %v4488_v34, %v5398_v59  ;;  %3919 = vlog2.f32 %v1849_v15 }
  0xea   : > { %3438 = vmatprep.subr.msk.mxu1 %vm1546_vm3, %v4165_v23  ;;  %3405 = vmatprep.subr.msk.mxu0 %vm1374_vm0, %v4165_v23  ;;  %vm1542_vm14 = vcmp.eq.s32.totalorder %v4488_v34, %v5417_v55  ;;  %vm1370_vm15 = vcmp.eq.s32.totalorder %v4495_v36, %v5382_v14  ;;  %vm1541_vm6 = vcmp.eq.s32.totalorder %v4488_v34, %v5437_v57  ;;  %v2013_v2 = vsub.s32 0, %v5479_v12 }
  0xeb   : > { %3439 = vmatpush1.msk.msra.mxu1 %vm1545_vm8, %v4165_v23  ;;  %3406 = vmatpush1.msk.msra.mxu0 %vm1373_vm1, %v4165_v23  ;;  %vm1369_vm7 = vcmp.eq.s32.totalorder %v4495_v36, %v5398_v59  ;;  %vm1540_vm3 = vcmp.eq.s32.totalorder %v4495_v36, %v5417_v55  ;;  %vm1368_vm0 = vcmp.eq.s32.totalorder %v4500_v40, %v5382_v14  ;;  %v1680_v48 = vsel %vm1679_vm4, %v1678_v38, 15 }
  0xec   : > { %3440 = vmatprep.subr.msk.mxu1 %vm1544_vm2, %v4165_v23  ;;  %3407 = vmatprep.subr.msk.mxu0 %vm1372_vm13, %v4165_v23  ;;  %vm1539_vm8 = vcmp.eq.s32.totalorder %v4495_v36, %v5437_v57  ;;  %vm1367_vm1 = vcmp.eq.s32.totalorder %v4500_v40, %v5398_v59  ;;  %v2347_v30 = vstv %s5440_s9  ;;  %vm1366_vm2 = vcmp.eq.s32.totalorder %v4503_v41, %v5382_v14  ;;  %s3739_s9 = sshll.u32 %s6643_s18, 6  ;;  %s4025_s18 = scalar_lea.vmem %s3036_s8, 4096 }
  0xed   : > { %3441 = vmatpush1.msk.msra.mxu1 %vm1543_vm11, %v4165_v23  ;;  %3408 = vmatpush1.msk.msra.mxu0 %vm1371_vm10, %v4165_v23  ;;  %vm1537_vm12 = vcmp.eq.s32.totalorder %v4500_v40, %v5437_v57  ;;  %vm1365_vm13 = vcmp.eq.s32.totalorder %v4503_v41, %v5398_v59  ;;  %vm5602_vm4 = vcmp.eq.s32.totalorder %v271_v46, 0  ;;  %v1681_v44 = vsel %vm1669_vm5, %v4619_v49, %v1680_v48  ;;  %s3031_s15 = sadd.s32 %s3739_s9, %s3738_s30  ;;  %p4026_p10 = scmp.ne.s32.totalorder %s3036_s8, %s4025_s18 }
  0xee   : > { %3442 = vmatprep.subr.msk.mxu1 %vm1542_vm14, %v4165_v23  ;;  %3409 = vmatprep.subr.msk.mxu0 %vm1370_vm15, %v4165_v23  ;;  %v5624_v47 = vadd.s32 32, %v5455_v25  ;;  %v5627_v1 = vmin.u32 %v2013_v2, %v5479_v12  ;;  %v5630_v22 = vsub.s32 %v5476_v16, %v2177_v42  ;;  %vm1536_vm5 = vcmp.eq.s32.totalorder %v4503_v41, %v5417_v55  ;;  %s3740_s28 = sshll.u32 %s3031_s15, 7 }
  0xef   : > { %3443 = vmatpush1.msk.msra.mxu1 %vm1541_vm6, %v4165_v23  ;;  %3410 = vmatpush1.msk.msra.mxu0 %vm1369_vm7, %v4165_v23  ;;  %v1682_v49 = vadd.s32 %v1681_v44, %v1665_v21  ;;  %v5645_v7 = vadd.s32 32, %v5457_v8  ;;  %v5648_v58 = vsub.s32 %v5476_v16, %v2347_v30  ;;  %vm1364_vm11 = vcmp.eq.s32.totalorder %v4521_v50, %v5382_v14  ;;  %s6533_s23 = scalar_lea.hbm %s6677_s6, %s3740_s28  ;;  %p4027_p6 = pnand %p4026_p10, %p6678_p4 }
  0xf0   : > { %3444 = vmatprep.subr.msk.mxu1 %vm1540_vm3, %v4165_v23  ;;  %3411 = vmatprep.subr.msk.mxu0 %vm1368_vm0, %v4165_v23  ;;  %vm1535_vm10 = vcmp.eq.s32.totalorder %v4503_v41, %v5437_v57  ;;  %vm2016_vm14 = vcmp.gt.s32.totalorder %v5627_v1, 1  ;;  %v2183_v32 = vsub.s32 0, %v5630_v22  ;;  %vm1363_vm15 = vcmp.eq.s32.totalorder %v4521_v50, %v5398_v59 }
  0xf1   : > { %3445 = vmatpush1.msk.msra.mxu1 %vm1539_vm8, %v4165_v23  ;;  %3412 = vmatpush1.msk.msra.mxu0 %vm1367_vm1, %v4165_v23  ;;  %v1696_v43 = vrot.slane %v1682_v49, %v4475_v29  ;;  %v1692_v19 = vrot.slane %v1682_v49, %v4472_v28  ;;  %v2017_v45 = vsel %vm2016_vm14, %v5627_v1, 1  ;;  %vm6665_vm6 = vcmp.eq.s32.totalorder %v4500_v40, %v5417_v55  ;;  %p4028_p1 = pneg %p4027_p6 }
  0xf2   : > { %3446 = vmatprep.subr.msk.mxu1 %vm6665_vm6, %v4165_v23  ;;  %3413 = vmatprep.subr.msk.mxu0 %vm1366_vm2, %v4165_v23  ;;  %vm1534_vm7 = vcmp.eq.s32.totalorder %v4521_v50, %v5417_v55  ;;  %vm1362_vm3 = vcmp.eq.s32.totalorder %v4449_v17, %v5382_v14  ;;  %v2018_v52 = vcvt.s32.f32 %v2017_v45  ;;  %v5694_v37 = vmin.u32 %v2183_v32, %v5630_v22 }
  0xf3   : > { %3447 = vmatpush1.msk.msra.mxu1 %vm1537_vm12, %v4165_v23  ;;  %3414 = vmatpush1.msk.msra.mxu0 %vm1365_vm13, %v4165_v23  ;;  %vm1533_vm0 = vcmp.eq.s32.totalorder %v4521_v50, %v5437_v57  ;;  %v1698_v46 = vsel %vm5511_vm9, %v1696_v43, %v5645_v7  ;;  %v1697_v20 = vsel %vm5602_vm4, %v1692_v19, %v5624_v47  ;;  %v2353_v31 = vsub.s32 0, %v5648_v58 }
  0xf4   : > { %3448 = vmatprep.subr.msk.mxu1 %vm1536_vm5, %v4165_v23  ;;  %3415 = vmatprep.subr.msk.mxu0 %vm1364_vm11, %v4165_v23  ;;  %vm1361_vm8 = vcmp.eq.s32.totalorder %v4449_v17, %v5398_v59  ;;  %v5728_v18 = vrot.slane %v1698_v46, %v4472_v28  ;;  %v5731_v63 = vrot.slane %v1697_v20, %v4472_v28  ;;  %v2019_v11 = vmul.f32 0.125, %v2018_v52 }
  0xf5   : > { %3449 = vmatpush1.msk.msra.mxu1 %vm1535_vm10, %v4165_v23  ;;  %3416 = vmatpush1.msk.msra.mxu0 %vm1363_vm15, %v4165_v23  ;;  %vm1532_vm1 = vcmp.eq.s32.totalorder %v4449_v17, %v5417_v55  ;;  %vm2186_vm2 = vcmp.gt.s32.totalorder %v5694_v37, 1  ;;  %v2517_v53 = vstv %s5563_s29  ;;  %vm1531_vm12 = vcmp.eq.s32.totalorder %v4449_v17, %v5437_v57  ;;  %s4029_s29 = sshll.u32 %s4166_s7, 4  ;;  %s4030_s29 = int_to_ptr.vmem [resolvable:$false] %s4029_s29 }
  0xf6   : > { %v3920_v3 = vpop.eup %3919  ;;  %3450 = vmatprep.subr.msk.mxu1 %vm1534_vm7, %v4165_v23  ;;  %3417 = vmatprep.subr.msk.mxu0 %vm1362_vm3, %v4165_v23  ;;  %3921 = vlog2.f32 %v2019_v11  ;;  %vm1722_vm13 = vcmp.eq.s32.totalorder %v4465_v24, %v5728_v18  ;;  %vm1839_vm5 = vcmp.gt.s32.totalorder %v5167_v5, 0  ;;  %v5764_v14 = vmin.u32 %v2353_v31, %v5648_v58  ;;  %s4031_s2 = scalar_lea.vmem %s4030_s29, 8192  ;;  %p4032_p0 = scmp.lt.s32.totalorder %s3036_s8, %s4030_s29 }
  0xf7   : > { %3451 = vmatpush1.msk.msra.mxu1 %vm1533_vm0, %v4165_v23  ;;  %3418 = vmatpush1.msk.msra.mxu0 %vm1361_vm8, %v4165_v23  ;;  %v1851_v59 = vmul.f32 0.6931472, %v3920_v3  ;;  %vm1721_vm11 = vcmp.eq.s32.totalorder %v4465_v24, %v5731_v63  ;;  %v2187_v55 = vsel %vm2186_vm2, %v5694_v37, 1  ;;  %v5774_v6 = vsub.s32 %v5476_v16, %v2517_v53  ;;  %p4033_p5 = scmp.lt.s32.totalorder %s4031_s2, %s4025_s18 }
  0xf8   : > { %1473 = vmatprep.mubr.f32.mxu0 %v4163_v0  ;;  %3452 = vmatprep.subr.msk.mxu1 %vm1532_vm1, %v4165_v23  ;;  %vm6666_vm10 = vcmask 523264   ;;  %vm1720_vm14 = vcmp.eq.s32.totalorder %v4485_v33, %v5728_v18  ;;  %v1840_v56 = vsel %vm1839_vm5, 1, %v4164_v4  ;;  %vm1719_vm15 = vcmp.eq.s32.totalorder %v4485_v33, %v5731_v63 }
  0xf9   : > { %3419 = vmatmul.mubr.msk.f32.vlgmr.msra.gmra.mxu0 %vm6666_vm10, %v4823_v10  ;;  %3453 = vmatpush1.msk.msra.mxu1 %vm1531_vm12, %v4165_v23  ;;  %v1852_v5 = vmul.f32 2.88539, %v1851_v59  ;;  %v2188_v57 = vcvt.s32.f32 %v2187_v55  ;;  %v2687_v38 = vstv %s5696_s11  ;;  %vm6667_vm6 = vmmov %vm6666_vm10  ;;  %vm1718_vm7 = vcmp.eq.s32.totalorder %v4488_v34, %v5728_v18  ;;  %p4034_p8 = por %p4033_p5, %p4032_p0 }
  0xfa   : > { %1643 = vmatprep.mubr.f32.mxu1 %v4163_v0  ;;  %3475 = vmatprep.subr.msk.mxu0 %vm1722_vm13, %v4165_v23  ;;  %vm2356_vm3 = vcmp.gt.s32.totalorder %v5764_v14, 1  ;;  %v2857_v25 = vstv %s5715_s25  ;;  %vm1717_vm0 = vcmp.eq.s32.totalorder %v4488_v34, %v5731_v63  ;;  %v2523_v21 = vsub.s32 0, %v5774_v6 }
  0xfb   : > { %3454 = vmatmul.mubr.msk.f32.vlgmr.msra.gmra.mxu1 %vm6667_vm6, %v4823_v10  ;;  %3476 = vmatpush1.msk.msra.mxu0 %vm1721_vm11, %v4165_v23  ;;  %v3763_v35 = vtrunc.f32 %v1852_v5  ;;  %v2189_v8 = vmul.f32 0.125, %v2188_v57  ;;  %v2357_v60 = vsel %vm2356_vm3, %v5764_v14, 1  ;;  %vm1716_vm8 = vcmp.eq.s32.totalorder %v4495_v36, %v5728_v18  ;;  %p4035_p2 = pnand %p4034_p8, %p4028_p1 }
  0xfc   : > { %3477 = vmatprep.subr.msk.mxu0 %vm1720_vm14, %v4165_v23  ;;  %1819 = vmatprep.mubr.f32.mxu0 %v4163_v0  ;;  %v2358_v42 = vcvt.s32.f32 %v2357_v60  ;;  %v5808_v2 = vsub.s32 %v5476_v16, %v2687_v38  ;;  %vm1715_vm1 = vcmp.eq.s32.totalorder %v4495_v36, %v5731_v63  ;;  %vm1714_vm2 = vcmp.eq.s32.totalorder %v4500_v40, %v5728_v18 }
  0xfd   : > { %v3764_v15 = vcvt.f32.s32 %v3763_v35  ;;  %3478 = vmatpush1.msk.msra.mxu0 %vm1719_vm15, %v4165_v23  ;;  %1989 = vmatprep.mubr.f32.mxu1 %v4163_v0  ;;  %3923 = vlog2.f32 %v2189_v8  ;;  %v5816_v48 = vmin.u32 %v2523_v21, %v5774_v6  ;;  %v5824_v32 = vsub.s32 %v5476_v16, %v2857_v25 }
  0xfe   : > { %3479 = vmatprep.subr.msk.mxu0 %vm1718_vm7, %v4165_v23  ;;  %v2359_v44 = vmul.f32 0.125, %v2358_v42  ;;  %v2693_v49 = vsub.s32 0, %v5808_v2  ;;  %v1841_v43 = vmul.u32 16, %v1840_v56  ;;  %vm1845_vm12 = vcmp.lt.s32.totalorder %v5344_v62, 8 }
  0xff   : > { %v1854_v30 = vadd.s32 8, %v3764_v15  ;;  %3480 = vmatpush1.msk.msra.mxu0 %vm1717_vm0, %v4165_v23  ;;  %vm1713_vm13 = vcmp.eq.s32.totalorder %v4500_v40, %v5731_v63  ;;  %vm2526_vm5 = vcmp.gt.s32.totalorder %v5816_v48, 1  ;;  %vm1712_vm10 = vcmp.eq.s32.totalorder %v4503_v41, %v5728_v18 }
 0x100   : > { %3481 = vmatprep.subr.msk.mxu0 %vm1716_vm8, %v4165_v23  ;;  %3925 = vlog2.f32 %v2359_v44  ;;  %v2527_v16 = vsel %vm2526_vm5, %v5816_v48, 1  ;;  %vm1711_vm14 = vcmp.eq.s32.totalorder %v4503_v41, %v5731_v63  ;;  %v5845_v52 = vmin.u32 %v2693_v49, %v5808_v2 }
 0x101   : > { %vm1855_vm11 = vcmp.lt.s32.totalorder %v1854_v30, 15  ;;  %3482 = vmatpush1.msk.msra.mxu0 %vm1715_vm1, %v4165_v23  ;;  %v2528_v45 = vcvt.s32.f32 %v2527_v16  ;;  %vm1710_vm15 = vcmp.eq.s32.totalorder %v4521_v50, %v5728_v18  ;;  %v2863_v31 = vsub.s32 0, %v5824_v32 }
 0x102   : > { %v1856_v19 = vsel %vm1855_vm11, %v1854_v30, 15  ;;  %3483 = vmatprep.subr.msk.mxu0 %vm1714_vm2, %v4165_v23  ;;  %vm1709_vm6 = vcmp.eq.s32.totalorder %v4521_v50, %v5731_v63  ;;  %vm1708_vm7 = vcmp.eq.s32.totalorder %v4449_v17, %v5728_v18  ;;  %vm1707_vm3 = vcmp.eq.s32.totalorder %v4449_v17, %v5731_v63 }
 0x103   : > { %v3922_v46 = vpop.eup %3921  ;;  %v1857_v20 = vsel %vm1845_vm12, %v5344_v62, %v1856_v19  ;;  %3484 = vmatpush1.msk.msra.mxu0 %vm1713_vm13, %v4165_v23  ;;  %v2529_v3 = vmul.f32 0.125, %v2528_v45  ;;  %vm2696_vm0 = vcmp.gt.s32.totalorder %v5845_v52, 1  ;;  %v5862_v62 = vmin.u32 %v2863_v31, %v5824_v32 }
 0x104   : > { %v1858_v11 = vadd.s32 %v1857_v20, %v1841_v43  ;;  %3485 = vmatprep.subr.msk.mxu0 %vm1712_vm10, %v4165_v23  ;;  %v2021_v53 = vmul.f32 0.6931472, %v3922_v46  ;;  %vm2009_vm8 = vcmp.gt.s32.totalorder %v5479_v12, 0  ;;  %v2697_v18 = vsel %vm2696_vm0, %v5845_v52, 1 }
 0x105   : > { %3486 = vmatpush1.msk.msra.mxu0 %vm1711_vm14, %v4165_v23  ;;  %3927 = vlog2.f32 %v2529_v3  ;;  %vm2866_vm1 = vcmp.gt.s32.totalorder %v5862_v62, 1  ;;  %v2698_v25 = vcvt.s32.f32 %v2697_v18  ;;  %vm6668_vm2 = vcmask 523264  }
 0x106   : > { %v1866_v59 = vrot.slane %v1858_v11, %v4475_v29  ;;  %v1862_v55 = vrot.slane %v1858_v11, %v4472_v28  ;;  %3487 = vmatprep.subr.msk.mxu0 %vm1710_vm15, %v4165_v23  ;;  %v2022_v5 = vmul.f32 2.88539, %v2021_v53  ;;  %v2867_v8 = vsel %vm2866_vm1, %v5862_v62, 1 }
 0x107   : > { %3488 = vmatpush1.msk.msra.mxu0 %vm1709_vm6, %v4165_v23  ;;  %v2010_v60 = vsel %vm2009_vm8, 1, %v4164_v4  ;;  %vm2179_vm14 = vcmp.gt.s32.totalorder %v5630_v22, 0  ;;  %v2699_v15 = vmul.f32 0.125, %v2698_v25  ;;  %vm2015_vm6 = vcmp.lt.s32.totalorder %v5627_v1, 8 }
 0x108   : > { %v1868_v56 = vsel %vm5511_vm9, %v1866_v59, %v5645_v7  ;;  %v1867_v57 = vsel %vm5602_vm4, %v1862_v55, %v5624_v47  ;;  %3489 = vmatprep.subr.msk.mxu0 %vm1708_vm7, %v4165_v23  ;;  %v3765_v38 = vtrunc.f32 %v2022_v5  ;;  %v2011_v30 = vmul.u32 16, %v2010_v60 }
 0x109   : > { %v5879_v35 = vrot.slane %v1868_v56, %v4475_v29  ;;  %v5882_v12 = vrot.slane %v1867_v57, %v4475_v29  ;;  %3490 = vmatpush1.msk.msra.mxu0 %vm1707_vm3, %v4165_v23  ;;  %v2180_v22 = vsel %vm2179_vm14, 1, %v4164_v4  ;;  %3929 = vlog2.f32 %v2699_v15 }
 0x10a   : > { %3491 = vmatmul.mubr.msk.f32.vlgmr.msra.gmra.mxu0 %vm6668_vm2, %v4823_v10  ;;  %v3924_v21 = vpop.eup %3923  ;;  %v3766_v63 = vcvt.f32.s32 %v3765_v38  ;;  %v2868_v10 = vcvt.s32.f32 %v2867_v8  ;;  %v2181_v59 = vmul.u32 16, %v2180_v22  ;;  %vm2185_vm14 = vcmp.lt.s32.totalorder %v5694_v37, 8 }
 0x10b   : > { %vm1892_vm12 = vcmp.eq.s32.totalorder %v4465_v24, %v5879_v35  ;;  %vm1891_vm13 = vcmp.eq.s32.totalorder %v4465_v24, %v5882_v12  ;;  %vm1890_vm5 = vcmp.eq.s32.totalorder %v4485_v33, %v5879_v35  ;;  %2159 = vmatprep.mubr.f32.mxu0 %v4163_v0  ;;  %vm1889_vm11 = vcmp.eq.s32.totalorder %v4485_v33, %v5882_v12 }
 0x10c   : > { %3510 = vmatprep.subr.msk.mxu1 %vm1892_vm12, %v4165_v23  ;;  %vm1888_vm10 = vcmp.eq.s32.totalorder %v4488_v34, %v5879_v35  ;;  %vm1887_vm15 = vcmp.eq.s32.totalorder %v4488_v34, %v5882_v12  ;;  %vm1886_vm7 = vcmp.eq.s32.totalorder %v4495_v36, %v5879_v35  ;;  %v2024_v44 = vadd.s32 8, %v3766_v63 }
 0x10d   : > { %3511 = vmatpush1.msk.msra.mxu1 %vm1891_vm13, %v4165_v23  ;;  %v3926_v42 = vpop.eup %3925  ;;  %v2191_v49 = vmul.f32 0.6931472, %v3924_v21  ;;  %vm1885_vm3 = vcmp.eq.s32.totalorder %v4495_v36, %v5882_v12  ;;  %vm1884_vm0 = vcmp.eq.s32.totalorder %v4500_v40, %v5879_v35  ;;  %v2869_v16 = vmul.f32 0.125, %v2868_v10 }
 0x10e   : > { %3512 = vmatprep.subr.msk.mxu1 %vm1890_vm5, %v4165_v23  ;;  %v2361_v43 = vmul.f32 0.6931472, %v3926_v42  ;;  %vm2025_vm8 = vcmp.lt.s32.totalorder %v2024_v44, 15  ;;  %vm1883_vm1 = vcmp.eq.s32.totalorder %v4500_v40, %v5882_v12  ;;  %vm1882_vm2 = vcmp.eq.s32.totalorder %v4503_v41, %v5879_v35 }
 0x10f   : > { %3513 = vmatpush1.msk.msra.mxu1 %vm1889_vm11, %v4165_v23  ;;  %v2192_v19 = vmul.f32 2.88539, %v2191_v49  ;;  %v2026_v46 = vsel %vm2025_vm8, %v2024_v44, 15  ;;  %3931 = vlog2.f32 %v2869_v16  ;;  %vm1881_vm12 = vcmp.eq.s32.totalorder %v4503_v41, %v5882_v12 }
 0x110   : > { %3514 = vmatprep.subr.msk.mxu1 %vm1888_vm10, %v4165_v23  ;;  %v2362_v45 = vmul.f32 2.88539, %v2361_v43  ;;  %v2027_v31 = vsel %vm2015_vm6, %v5627_v1, %v2026_v46  ;;  %vm1880_vm13 = vcmp.eq.s32.totalorder %v4521_v50, %v5879_v35  ;;  %vm2349_vm5 = vcmp.gt.s32.totalorder %v5648_v58, 0  ;;  %v5980_v58 = vld [vmem:[#allocation9] sm:$0xff] }
 0x111   : > { %3515 = vmatpush1.msk.msra.mxu1 %vm1887_vm15, %v4165_v23  ;;  %v3767_v11 = vtrunc.f32 %v2192_v19  ;;  %v2028_v3 = vadd.s32 %v2027_v31, %v2011_v30  ;;  %vm1879_vm11 = vcmp.eq.s32.totalorder %v4521_v50, %v5882_v12  ;;  %vm1878_vm10 = vcmp.eq.s32.totalorder %v4449_v17, %v5879_v35 }
 0x112   : > { %3516 = vmatprep.subr.msk.mxu1 %vm1886_vm7, %v4165_v23  ;;  %v3928_v20 = vpop.eup %3927  ;;  %v3769_v53 = vtrunc.f32 %v2362_v45  ;;  %vm1877_vm15 = vcmp.eq.s32.totalorder %v4449_v17, %v5882_v12  ;;  %vm2519_vm7 = vcmp.gt.s32.totalorder %v5774_v6, 0  ;;  %v2350_v10 = vsel %vm2349_vm5, 1, %v4164_v4 }
 0x113   : > { %3517 = vmatpush1.msk.msra.mxu1 %vm1885_vm3, %v4165_v23  ;;  %v2531_v55 = vmul.f32 0.6931472, %v3928_v20  ;;  %v3768_v5 = vcvt.f32.s32 %v3767_v11  ;;  %v2036_v18 = vrot.slane %v2028_v3, %v4475_v29  ;;  %v2032_v56 = vrot.slane %v2028_v3, %v4472_v28 }
 0x114   : > { %3518 = vmatprep.subr.msk.mxu1 %vm1884_vm0, %v4165_v23  ;;  %v3770_v1 = vcvt.f32.s32 %v3769_v53  ;;  %v5989_v30 = vsel %vm2519_vm7, 1, %v4164_v4  ;;  %v2351_v44 = vmul.u32 16, %v2350_v10  ;;  %vm2355_vm5 = vcmp.lt.s32.totalorder %v5764_v14, 8 }
 0x115   : > { %3519 = vmatpush1.msk.msra.mxu1 %vm1883_vm1, %v4165_v23  ;;  %v2532_v57 = vmul.f32 2.88539, %v2531_v55  ;;  %v2194_v38 = vadd.s32 8, %v3768_v5  ;;  %v2038_v8 = vsel %vm5511_vm9, %v2036_v18, %v5645_v7  ;;  %v2037_v60 = vsel %vm5602_vm4, %v2032_v56, %v5624_v47 }
 0x116   : > { %3520 = vmatprep.subr.msk.mxu1 %vm1882_vm2, %v4165_v23  ;;  %v2364_v25 = vadd.s32 8, %v3770_v1  ;;  %v5959_v35 = vrot.slane %v2038_v8, %v4524_v51  ;;  %v5962_v63 = vrot.slane %v2037_v60, %v4524_v51  ;;  %vm6669_vm2 = vcmask 523264   ;;  %v3930_v49 = vpop.eup %3929 }
 0x117   : > { %3521 = vmatpush1.msk.msra.mxu1 %vm1881_vm12, %v4165_v23  ;;  %v3771_v21 = vtrunc.f32 %v2532_v57  ;;  %vm2195_vm6 = vcmp.lt.s32.totalorder %v2194_v38, 15  ;;  %v2521_v19 = vmul.u32 16, %v5989_v30 }
 0x118   : > { %3522 = vmatprep.subr.msk.mxu1 %vm1880_vm13, %v4165_v23  ;;  %v2196_v12 = vsel %vm2195_vm6, %v2194_v38, 15  ;;  %vm2365_vm3 = vcmp.lt.s32.totalorder %v2364_v25, 15  ;;  %vm2062_vm0 = vcmp.eq.s32.totalorder %v4465_v24, %v5959_v35  ;;  %vm2061_vm8 = vcmp.eq.s32.totalorder %v4465_v24, %v5962_v63 }
 0x119   : > { %3523 = vmatpush1.msk.msra.mxu1 %vm1879_vm11, %v4165_v23  ;;  %v3772_v15 = vcvt.f32.s32 %v3771_v21  ;;  %v2197_v51 = vsel %vm2185_vm14, %v5694_v37, %v2196_v12  ;;  %vm2060_vm1 = vcmp.eq.s32.totalorder %v4485_v33, %v5959_v35  ;;  %3545 = vmatprep.subr.msk.mxu0 %vm2062_vm0, %v4165_v23  ;;  %vm2059_vm12 = vcmp.eq.s32.totalorder %v4485_v33, %v5962_v63 }
 0x11a   : > { %3524 = vmatprep.subr.msk.mxu1 %vm1878_vm10, %v4165_v23  ;;  %v2198_v42 = vadd.s32 %v2197_v51, %v2181_v59  ;;  %3546 = vmatpush1.msk.msra.mxu0 %vm2061_vm8, %v4165_v23  ;;  %vm2058_vm13 = vcmp.eq.s32.totalorder %v4488_v34, %v5959_v35  ;;  %vm2057_vm11 = vcmp.eq.s32.totalorder %v4488_v34, %v5962_v63  ;;  %v2366_v6 = vsel %vm2365_vm3, %v2364_v25, 15 }
 0x11b   : > { %3525 = vmatpush1.msk.msra.mxu1 %vm1877_vm15, %v4165_v23  ;;  %v2534_v37 = vadd.s32 8, %v3772_v15  ;;  %3547 = vmatprep.subr.msk.mxu0 %vm2060_vm1, %v4165_v23  ;;  %vm2056_vm10 = vcmp.eq.s32.totalorder %v4495_v36, %v5959_v35  ;;  %vm2525_vm14 = vcmp.lt.s32.totalorder %v5816_v48, 8  ;;  %vm2689_vm15 = vcmp.gt.s32.totalorder %v5808_v2, 0 }
 0x11c   : > { %3526 = vmatmul.mubr.msk.f32.vlgmr.msra.gmra.mxu1 %vm6669_vm2, %v5980_v58  ;;  %v2206_v43 = vrot.slane %v2198_v42, %v4475_v29  ;;  %v2202_v22 = vrot.slane %v2198_v42, %v4472_v28  ;;  %v3932_v16 = vpop.eup %3931  ;;  %3548 = vmatpush1.msk.msra.mxu0 %vm2059_vm12, %v4165_v23  ;;  %vm2055_vm6 = vcmp.eq.s32.totalorder %v4495_v36, %v5962_v63  ;;  %v6117_v25 = vsel %vm2689_vm15, 1, %v4164_v4 }
 0x11d   : > { %3549 = vmatprep.subr.msk.mxu0 %vm2058_vm13, %v4165_v23  ;;  %2329 = vmatprep.mubr.f32.mxu1 %v4163_v0  ;;  %vm2535_vm7 = vcmp.lt.s32.totalorder %v2534_v37, 15  ;;  %vm2054_vm3 = vcmp.eq.s32.totalorder %v4500_v40, %v5959_v35  ;;  %v2367_v11 = vsel %vm2355_vm5, %v5764_v14, %v2366_v6  ;;  %vm2053_vm0 = vcmp.eq.s32.totalorder %v4500_v40, %v5962_v63 }
 0x11e   : > { %v2208_v45 = vsel %vm5511_vm9, %v2206_v43, %v5645_v7  ;;  %v2207_v46 = vsel %vm5602_vm4, %v2202_v22, %v5624_v47  ;;  %3550 = vmatpush1.msk.msra.mxu0 %vm2057_vm11, %v4165_v23  ;;  %v2536_v53 = vsel %vm2535_vm7, %v2534_v37, 15  ;;  %v2871_v3 = vmul.f32 0.6931472, %v3932_v16 }
 0x11f   : > { %v6021_v20 = vrot.slane %v2208_v45, %v4531_v54  ;;  %v6024_v31 = vrot.slane %v2207_v46, %v4531_v54  ;;  %3551 = vmatprep.subr.msk.mxu0 %vm2056_vm10, %v4165_v23  ;;  %v2701_v54 = vmul.f32 0.6931472, %v3930_v49  ;;  %vm2052_vm12 = vcmp.eq.s32.totalorder %v4503_v41, %v5959_v35 }
 0x120   : > { %3552 = vmatpush1.msk.msra.mxu0 %vm2055_vm6, %v4165_v23  ;;  %vm2051_vm5 = vcmp.eq.s32.totalorder %v4503_v41, %v5962_v63  ;;  %v2368_v14 = vadd.s32 %v2367_v11, %v2351_v44  ;;  %vm2050_vm10 = vcmp.eq.s32.totalorder %v4521_v50, %v5959_v35  ;;  %v2537_v55 = vsel %vm2525_vm14, %v5816_v48, %v2536_v53 }
 0x121   : > { %vm2232_vm8 = vcmp.eq.s32.totalorder %v4465_v24, %v6021_v20  ;;  %vm2231_vm1 = vcmp.eq.s32.totalorder %v4465_v24, %v6024_v31  ;;  %vm2230_vm2 = vcmp.eq.s32.totalorder %v4485_v33, %v6021_v20  ;;  %vm2229_vm13 = vcmp.eq.s32.totalorder %v4485_v33, %v6024_v31  ;;  %3553 = vmatprep.subr.msk.mxu0 %vm2054_vm3, %v4165_v23 }
 0x122   : > { %3580 = vmatprep.subr.msk.mxu1 %vm2232_vm8, %v4165_v23  ;;  %v2702_v59 = vmul.f32 2.88539, %v2701_v54  ;;  %vm2228_vm11 = vcmp.eq.s32.totalorder %v4488_v34, %v6021_v20  ;;  %3554 = vmatpush1.msk.msra.mxu0 %vm2053_vm0, %v4165_v23  ;;  %v2872_v5 = vmul.f32 2.88539, %v2871_v3  ;;  %vm2227_vm6 = vcmp.eq.s32.totalorder %v4488_v34, %v6024_v31 }
 0x123   : > { %3581 = vmatpush1.msk.msra.mxu1 %vm2231_vm1, %v4165_v23  ;;  %3555 = vmatprep.subr.msk.mxu0 %vm2052_vm12, %v4165_v23  ;;  %vm2049_vm7 = vcmp.eq.s32.totalorder %v4521_v50, %v5962_v63  ;;  %vm2048_vm3 = vcmp.eq.s32.totalorder %v4449_v17, %v5959_v35  ;;  %vm2226_vm14 = vcmp.eq.s32.totalorder %v4495_v36, %v6021_v20  ;;  %vm2859_vm15 = vcmp.gt.s32.totalorder %v5824_v32, 0 }
 0x124   : > { %3582 = vmatprep.subr.msk.mxu1 %vm2230_vm2, %v4165_v23  ;;  %v3773_v1 = vtrunc.f32 %v2702_v59  ;;  %vm2225_vm0 = vcmp.eq.s32.totalorder %v4495_v36, %v6024_v31  ;;  %3556 = vmatpush1.msk.msra.mxu0 %vm2051_vm5, %v4165_v23  ;;  %vm2047_vm8 = vcmp.eq.s32.totalorder %v4449_v17, %v5962_v63  ;;  %v3775_v48 = vtrunc.f32 %v2872_v5 }
 0x125   : > { %3583 = vmatpush1.msk.msra.mxu1 %vm2229_vm13, %v4165_v23  ;;  %3557 = vmatprep.subr.msk.mxu0 %vm2050_vm10, %v4165_v23  ;;  %v2376_v18 = vrot.slane %v2368_v14, %v4475_v29  ;;  %v2372_v56 = vrot.slane %v2368_v14, %v4472_v28  ;;  %v2538_v57 = vadd.s32 %v2537_v55, %v2521_v19  ;;  %v2860_v37 = vsel %vm2859_vm15, 1, %v4164_v4 }
 0x126   : > { %3584 = vmatprep.subr.msk.mxu1 %vm2228_vm11, %v4165_v23  ;;  %v3774_v38 = vcvt.f32.s32 %v3773_v1  ;;  %vm2224_vm1 = vcmp.eq.s32.totalorder %v4500_v40, %v6021_v20  ;;  %vm2223_vm2 = vcmp.eq.s32.totalorder %v4500_v40, %v6024_v31  ;;  %vm2222_vm12 = vcmp.eq.s32.totalorder %v4503_v41, %v6021_v20  ;;  %3558 = vmatpush1.msk.msra.mxu0 %vm2049_vm7, %v4165_v23 }
 0x127   : > { %3585 = vmatpush1.msk.msra.mxu1 %vm2227_vm6, %v4165_v23  ;;  %3559 = vmatprep.subr.msk.mxu0 %vm2048_vm3, %v4165_v23  ;;  %v2378_v8 = vsel %vm5511_vm9, %v2376_v18, %v5645_v7  ;;  %v2377_v2 = vsel %vm5602_vm4, %v2372_v56, %v5624_v47  ;;  %v2546_v60 = vrot.slane %v2538_v57, %v4475_v29  ;;  %v3776_v21 = vcvt.f32.s32 %v3775_v48 }
 0x128   : > { %3586 = vmatprep.subr.msk.mxu1 %vm2226_vm14, %v4165_v23  ;;  %3560 = vmatpush1.msk.msra.mxu0 %vm2047_vm8, %v4165_v23  ;;  %v6143_v35 = vrot.slane %v2378_v8, %v4544_v61  ;;  %v6146_v12 = vrot.slane %v2377_v2, %v4544_v61  ;;  %v2542_v10 = vrot.slane %v2538_v57, %v4472_v28  ;;  %vm6670_vm11 = vcmask 523264  }
 0x129   : > { %3587 = vmatpush1.msk.msra.mxu1 %vm2225_vm0, %v4165_v23  ;;  %vm2221_vm13 = vcmp.eq.s32.totalorder %v4503_v41, %v6024_v31  ;;  %vm2220_vm5 = vcmp.eq.s32.totalorder %v4521_v50, %v6021_v20  ;;  %3561 = vmatmul.mubr.msk.f32.vlgmr.msra.gmra.mxu0 %vm6670_vm11, %v5980_v58  ;;  %v2548_v61 = vsel %vm5511_vm9, %v2546_v60, %v5645_v7  ;;  %v2704_v63 = vadd.s32 8, %v3774_v38 }
 0x12a   : > { %3588 = vmatprep.subr.msk.mxu1 %vm2224_vm1, %v4165_v23  ;;  %vm2402_vm10 = vcmp.eq.s32.totalorder %v4465_v24, %v6143_v35  ;;  %vm2401_vm6 = vcmp.eq.s32.totalorder %v4465_v24, %v6146_v12  ;;  %v6172_v15 = vrot.slane %v2548_v61, %v4556_v9  ;;  %vm2400_vm7 = vcmp.eq.s32.totalorder %v4485_v33, %v6143_v35 }
 0x12b   : > { %3589 = vmatpush1.msk.msra.mxu1 %vm2223_vm2, %v4165_v23  ;;  %vm2219_vm3 = vcmp.eq.s32.totalorder %v4521_v50, %v6024_v31  ;;  %3615 = vmatprep.subr.msk.mxu0 %vm2402_vm10, %v4165_v23  ;;  %v2547_v51 = vsel %vm5602_vm4, %v2542_v10, %v5624_v47  ;;  %vm2399_vm14 = vcmp.eq.s32.totalorder %v4485_v33, %v6146_v12  ;;  %v2874_v42 = vadd.s32 8, %v3776_v21 }
 0x12c   : > { %3590 = vmatprep.subr.msk.mxu1 %vm2222_vm12, %v4165_v23  ;;  %vm2218_vm0 = vcmp.eq.s32.totalorder %v4449_v17, %v6021_v20  ;;  %3616 = vmatpush1.msk.msra.mxu0 %vm2401_vm6, %v4165_v23  ;;  %v6196_v30 = vrot.slane %v2547_v51, %v4556_v9  ;;  %vm2398_vm8 = vcmp.eq.s32.totalorder %v4488_v34, %v6143_v35  ;;  %v2691_v4 = vmul.u32 16, %v6117_v25 }
 0x12d   : > { %3591 = vmatpush1.msk.msra.mxu1 %vm2221_vm13, %v4165_v23  ;;  %vm2217_vm1 = vcmp.eq.s32.totalorder %v4449_v17, %v6024_v31  ;;  %3617 = vmatprep.subr.msk.mxu0 %vm2400_vm7, %v4165_v23  ;;  %vm2397_vm2 = vcmp.eq.s32.totalorder %v4488_v34, %v6146_v12  ;;  %vm2572_vm12 = vcmp.eq.s32.totalorder %v4465_v24, %v6172_v15  ;;  %vm2705_vm15 = vcmp.lt.s32.totalorder %v2704_v63, 15 }
 0x12e   : > { %3592 = vmatprep.subr.msk.mxu1 %vm2220_vm5, %v4165_v23  ;;  %3618 = vmatpush1.msk.msra.mxu0 %vm2399_vm14, %v4165_v23  ;;  %vm2571_vm13 = vcmp.eq.s32.totalorder %v4465_v24, %v6196_v30  ;;  %vm2396_vm5 = vcmp.eq.s32.totalorder %v4495_v36, %v6143_v35  ;;  %v2861_v9 = vmul.u32 16, %v2860_v37  ;;  %vm2875_vm11 = vcmp.lt.s32.totalorder %v2874_v42, 15 }
 0x12f   : > { %3593 = vmatpush1.msk.msra.mxu1 %vm2219_vm3, %v4165_v23  ;;  %3619 = vmatprep.subr.msk.mxu0 %vm2398_vm8, %v4165_v23  ;;  %vm2570_vm10 = vcmp.eq.s32.totalorder %v4485_v33, %v6172_v15  ;;  %vm2395_vm6 = vcmp.eq.s32.totalorder %v4495_v36, %v6146_v12  ;;  %vm2695_vm7 = vcmp.lt.s32.totalorder %v5845_v52, 8  ;;  %vm2865_vm3 = vcmp.lt.s32.totalorder %v5862_v62, 8 }
 0x130   : > { %3594 = vmatprep.subr.msk.mxu1 %vm2218_vm0, %v4165_v23  ;;  %3620 = vmatpush1.msk.msra.mxu0 %vm2397_vm2, %v4165_v23  ;;  %vm6671_vm14 = vcmask 523264   ;;  %vm2569_vm0 = vcmp.eq.s32.totalorder %v4485_v33, %v6196_v30  ;;  %vm2568_vm8 = vcmp.eq.s32.totalorder %v4488_v34, %v6172_v15  ;;  %v2706_v32 = vsel %vm2705_vm15, %v2704_v63, 15 }
 0x131   : > { %3595 = vmatpush1.msk.msra.mxu1 %vm2217_vm1, %v4165_v23  ;;  %vm2394_vm1 = vcmp.eq.s32.totalorder %v4500_v40, %v6143_v35  ;;  %3621 = vmatprep.subr.msk.mxu0 %vm2396_vm5, %v4165_v23  ;;  %vm2567_vm2 = vcmp.eq.s32.totalorder %v4488_v34, %v6196_v30  ;;  %v2876_v44 = vsel %vm2875_vm11, %v2874_v42, 15  ;;  %vm2565_vm15 = vcmp.eq.s32.totalorder %v4495_v36, %v6196_v30 }
 0x132   : > { %3596 = vmatmul.mubr.msk.f32.vlgmr.msra.gmra.mxu1 %vm6671_vm14, %v5980_v58  ;;  %3650 = vmatprep.subr.msk.mxu1 %vm2572_vm12, %v4165_v23  ;;  %vm2566_vm12 = vcmp.eq.s32.totalorder %v4495_v36, %v6172_v15  ;;  %vm2393_vm14 = vcmp.eq.s32.totalorder %v4500_v40, %v6146_v12  ;;  %vm2392_vm5 = vcmp.eq.s32.totalorder %v4503_v41, %v6143_v35 }
 0x133   : > { %3651 = vmatpush1.msk.msra.mxu1 %vm2571_vm13, %v4165_v23  ;;  %3622 = vmatpush1.msk.msra.mxu0 %vm2395_vm6, %v4165_v23  ;;  %vm2564_vm13 = vcmp.eq.s32.totalorder %v4500_v40, %v6172_v15  ;;  %vm2563_vm11 = vcmp.eq.s32.totalorder %v4500_v40, %v6196_v30  ;;  %vm2562_vm6 = vcmp.eq.s32.totalorder %v4503_v41, %v6172_v15 }
 0x134   : > { %3652 = vmatprep.subr.msk.mxu1 %vm2570_vm10, %v4165_v23  ;;  %3623 = vmatprep.subr.msk.mxu0 %vm2394_vm1, %v4165_v23  ;;  %vm2391_vm10 = vcmp.eq.s32.totalorder %v4503_v41, %v6146_v12  ;;  %v2707_v49 = vsel %vm2695_vm7, %v5845_v52, %v2706_v32  ;;  %v2877_v43 = vsel %vm2865_vm3, %v5862_v62, %v2876_v44 }
 0x135   : > { %3653 = vmatpush1.msk.msra.mxu1 %vm2569_vm0, %v4165_v23  ;;  %3624 = vmatpush1.msk.msra.mxu0 %vm2393_vm14, %v4165_v23  ;;  %vm2390_vm0 = vcmp.eq.s32.totalorder %v4521_v50, %v6143_v35  ;;  %v2708_v22 = vadd.s32 %v2707_v49, %v2691_v4  ;;  %v2878_v6 = vadd.s32 %v2877_v43, %v2861_v9  ;;  %vm6672_vm14 = vcmask 523264  }
 0x136   : > { %3654 = vmatprep.subr.msk.mxu1 %vm2568_vm8, %v4165_v23  ;;  %3625 = vmatprep.subr.msk.mxu0 %vm2392_vm5, %v4165_v23  ;;  %vm2389_vm8 = vcmp.eq.s32.totalorder %v4521_v50, %v6146_v12  ;;  %vm2561_vm7 = vcmp.eq.s32.totalorder %v4503_v41, %v6196_v30  ;;  %vm2388_vm3 = vcmp.eq.s32.totalorder %v4449_v17, %v6143_v35 }
 0x137   : > { %3655 = vmatpush1.msk.msra.mxu1 %vm2567_vm2, %v4165_v23  ;;  %3626 = vmatpush1.msk.msra.mxu0 %vm2391_vm10, %v4165_v23  ;;  %vm2387_vm1 = vcmp.eq.s32.totalorder %v4449_v17, %v6146_v12  ;;  %v2716_v52 = vrot.slane %v2708_v22, %v4475_v29  ;;  %v2712_v62 = vrot.slane %v2708_v22, %v4472_v28 }
 0x138   : > { %3656 = vmatprep.subr.msk.mxu1 %vm2566_vm12, %v4165_v23  ;;  %3627 = vmatprep.subr.msk.mxu0 %vm2390_vm0, %v4165_v23  ;;  %v2886_v16 = vrot.slane %v2878_v6, %v4475_v29  ;;  %vm2560_vm2 = vcmp.eq.s32.totalorder %v4521_v50, %v6172_v15  ;;  %vm2559_vm12 = vcmp.eq.s32.totalorder %v4521_v50, %v6196_v30 }
 0x139   : > { %3657 = vmatpush1.msk.msra.mxu1 %vm2565_vm15, %v4165_v23  ;;  %3628 = vmatpush1.msk.msra.mxu0 %vm2389_vm8, %v4165_v23  ;;  %v2882_v19 = vrot.slane %v2878_v6, %v4472_v28  ;;  %v2718_v29 = vsel %vm5511_vm9, %v2716_v52, %v5645_v7  ;;  %v2717_v45 = vsel %vm5602_vm4, %v2712_v62, %v5624_v47  ;;  %vm6673_vm8 = vmmov %vm6672_vm14 }
 0x13a   : > { %3658 = vmatprep.subr.msk.mxu1 %vm2564_vm13, %v4165_v23  ;;  %3629 = vmatprep.subr.msk.mxu0 %vm2388_vm3, %v4165_v23  ;;  %v2888_v46 = vsel %vm5511_vm9, %v2886_v16, %v5645_v7  ;;  %v6353_v28 = vrot.slane %v2718_v29, %v5231_v13  ;;  %v6356_v20 = vrot.slane %v2717_v45, %v5231_v13 }
 0x13b   : > { %3659 = vmatpush1.msk.msra.mxu1 %vm2563_vm11, %v4165_v23  ;;  %3630 = vmatpush1.msk.msra.mxu0 %vm2387_vm1, %v4165_v23  ;;  %v6359_v31 = vrot.slane %v2888_v46, %v5307_v26  ;;  %vm2558_vm9 = vcmp.eq.s32.totalorder %v4449_v17, %v6172_v15  ;;  %v2887_v27 = vsel %vm5602_vm4, %v2882_v19, %v5624_v47 }
 0x13c   : > { %3660 = vmatprep.subr.msk.mxu1 %vm2562_vm6, %v4165_v23  ;;  %2499 = vmatprep.mubr.f32.mxu0 %v4163_v0  ;;  %vm2557_vm15 = vcmp.eq.s32.totalorder %v4449_v17, %v6196_v30  ;;  %vm2742_vm13 = vcmp.eq.s32.totalorder %v4465_v24, %v6353_v28  ;;  %vm2741_vm5 = vcmp.eq.s32.totalorder %v4465_v24, %v6356_v20 }
 0x13d   : > { %3661 = vmatpush1.msk.msra.mxu1 %vm2561_vm7, %v4165_v23  ;;  %3631 = vmatmul.mubr.msk.f32.vlgmr.msra.gmra.mxu0 %vm6672_vm14, %v5980_v58  ;;  %vm2912_vm4 = vcmp.eq.s32.totalorder %v4465_v24, %v6359_v31  ;;  %v6391_v13 = vrot.slane %v2887_v27, %v5307_v26  ;;  %vm2740_vm11 = vcmp.eq.s32.totalorder %v4485_v33, %v6353_v28 }
 0x13e   : > { %3662 = vmatprep.subr.msk.mxu1 %vm2560_vm2, %v4165_v23  ;;  %2669 = vmatprep.mubr.f32.mxu1 %v4163_v0  ;;  %vm2739_vm6 = vcmp.eq.s32.totalorder %v4485_v33, %v6356_v20  ;;  %vm2910_vm0 = vcmp.eq.s32.totalorder %v4485_v33, %v6359_v31  ;;  %vm2738_vm7 = vcmp.eq.s32.totalorder %v4488_v34, %v6353_v28 }
 0x13f   : > { %3663 = vmatpush1.msk.msra.mxu1 %vm2559_vm12, %v4165_v23  ;;  %3685 = vmatprep.subr.msk.mxu0 %vm2742_vm13, %v4165_v23  ;;  %vm2911_vm10 = vcmp.eq.s32.totalorder %v4465_v24, %v6391_v13  ;;  %vm2909_vm3 = vcmp.eq.s32.totalorder %v4485_v33, %v6391_v13  ;;  %vm2737_vm1 = vcmp.eq.s32.totalorder %v4488_v34, %v6356_v20 }
 0x140   : > { %3664 = vmatprep.subr.msk.mxu1 %vm2558_vm9, %v4165_v23  ;;  %3686 = vmatpush1.msk.msra.mxu0 %vm2741_vm5, %v4165_v23  ;;  %vm2908_vm2 = vcmp.eq.s32.totalorder %v4488_v34, %v6359_v31  ;;  %vm2736_vm12 = vcmp.eq.s32.totalorder %v4495_v36, %v6353_v28  ;;  %vm2907_vm9 = vcmp.eq.s32.totalorder %v4488_v34, %v6391_v13 }
 0x141   : > { %3665 = vmatpush1.msk.msra.mxu1 %vm2557_vm15, %v4165_v23  ;;  %3687 = vmatprep.subr.msk.mxu0 %vm2740_vm11, %v4165_v23  ;;  %vm2735_vm14 = vcmp.eq.s32.totalorder %v4495_v36, %v6356_v20  ;;  %vm2906_vm15 = vcmp.eq.s32.totalorder %v4495_v36, %v6359_v31  ;;  %vm2734_vm13 = vcmp.eq.s32.totalorder %v4500_v40, %v6353_v28 }
 0x142   : > { %3666 = vmatmul.mubr.msk.f32.vlgmr.msra.gmra.mxu1 %vm6673_vm8, %v5980_v58  ;;  %3720 = vmatprep.subr.msk.mxu1 %vm2912_vm4, %v4165_v23  ;;  %vm2905_vm5 = vcmp.eq.s32.totalorder %v4495_v36, %v6391_v13  ;;  %vm2733_vm4 = vcmp.eq.s32.totalorder %v4500_v40, %v6356_v20  ;;  %vm2904_vm11 = vcmp.eq.s32.totalorder %v4500_v40, %v6359_v31 }
 0x143   : > { %3721 = vmatpush1.msk.msra.mxu1 %vm2911_vm10, %v4165_v23  ;;  %3688 = vmatpush1.msk.msra.mxu0 %vm2739_vm6, %v4165_v23  ;;  %vm2732_vm10 = vcmp.eq.s32.totalorder %v4503_v41, %v6353_v28  ;;  %vm2903_vm6 = vcmp.eq.s32.totalorder %v4500_v40, %v6391_v13  ;;  %vm2902_vm8 = vcmp.eq.s32.totalorder %v4503_v41, %v6359_v31 }
 0x144   : > { %3722 = vmatprep.subr.msk.mxu1 %vm2910_vm0, %v4165_v23  ;;  %3689 = vmatprep.subr.msk.mxu0 %vm2738_vm7, %v4165_v23  ;;  %vm2731_vm0 = vcmp.eq.s32.totalorder %v4503_v41, %v6356_v20  ;;  %vm2730_vm7 = vcmp.eq.s32.totalorder %v4521_v50, %v6353_v28 }
 0x145   : > { %3723 = vmatpush1.msk.msra.mxu1 %vm2909_vm3, %v4165_v23  ;;  %3690 = vmatpush1.msk.msra.mxu0 %vm2737_vm1, %v4165_v23  ;;  %vm2901_vm3 = vcmp.eq.s32.totalorder %v4503_v41, %v6391_v13  ;;  %vm2729_vm1 = vcmp.eq.s32.totalorder %v4521_v50, %v6356_v20 }
 0x146   : > { %3724 = vmatprep.subr.msk.mxu1 %vm2908_vm2, %v4165_v23  ;;  %3691 = vmatprep.subr.msk.mxu0 %vm2736_vm12, %v4165_v23  ;;  %vm2900_vm2 = vcmp.eq.s32.totalorder %v4521_v50, %v6359_v31  ;;  %vm2728_vm12 = vcmp.eq.s32.totalorder %v4449_v17, %v6353_v28 }
 0x147   : > { %3725 = vmatpush1.msk.msra.mxu1 %vm2907_vm9, %v4165_v23  ;;  %3692 = vmatpush1.msk.msra.mxu0 %vm2735_vm14, %v4165_v23  ;;  %vm2899_vm9 = vcmp.eq.s32.totalorder %v4521_v50, %v6391_v13  ;;  %vm2727_vm14 = vcmp.eq.s32.totalorder %v4449_v17, %v6356_v20 }
 0x148   : > { %3726 = vmatprep.subr.msk.mxu1 %vm2906_vm15, %v4165_v23  ;;  %3693 = vmatprep.subr.msk.mxu0 %vm2734_vm13, %v4165_v23  ;;  %vm2898_vm15 = vcmp.eq.s32.totalorder %v4449_v17, %v6359_v31  ;;  %vm2897_vm13 = vcmp.eq.s32.totalorder %v4449_v17, %v6391_v13 }
 0x149   : > { %3727 = vmatpush1.msk.msra.mxu1 %vm2905_vm5, %v4165_v23  ;;  %3694 = vmatpush1.msk.msra.mxu0 %vm2733_vm4, %v4165_v23  ;;  %vm6674_vm5 = vcmask 523264  }
 0x14a   : > { %3728 = vmatprep.subr.msk.mxu1 %vm2904_vm11, %v4165_v23  ;;  %3695 = vmatprep.subr.msk.mxu0 %vm2732_vm10, %v4165_v23  ;;  %vm6675_vm4 = vmmov %vm6674_vm5 }
 0x14b   : > { %3729 = vmatpush1.msk.msra.mxu1 %vm2903_vm6, %v4165_v23  ;;  %3696 = vmatpush1.msk.msra.mxu0 %vm2731_vm0, %v4165_v23 }
 0x14c   : > { %3730 = vmatprep.subr.msk.mxu1 %vm2902_vm8, %v4165_v23  ;;  %3697 = vmatprep.subr.msk.mxu0 %vm2730_vm7, %v4165_v23 }
 0x14d   : > { %3731 = vmatpush1.msk.msra.mxu1 %vm2901_vm3, %v4165_v23  ;;  %3698 = vmatpush1.msk.msra.mxu0 %vm2729_vm1, %v4165_v23 }
 0x14e   : > { %3732 = vmatprep.subr.msk.mxu1 %vm2900_vm2, %v4165_v23  ;;  %3699 = vmatprep.subr.msk.mxu0 %vm2728_vm12, %v4165_v23 }
 0x14f   : > { %3733 = vmatpush1.msk.msra.mxu1 %vm2899_vm9, %v4165_v23  ;;  %3700 = vmatpush1.msk.msra.mxu0 %vm2727_vm14, %v4165_v23 }
 0x150   : > { %2839 = vmatprep.mubr.f32.mxu0 %v4163_v0  ;;  %3734 = vmatprep.subr.msk.mxu1 %vm2898_vm15, %v4165_v23 }
 0x151   : > { %3701 = vmatmul.mubr.msk.f32.vlgmr.msra.gmra.mxu0 %vm6674_vm5, %v5980_v58  ;;  %3735 = vmatpush1.msk.msra.mxu1 %vm2897_vm13, %v4165_v23 }
 0x152   : > { %3009 = vmatprep.mubr.f32.mxu1 %v4163_v0 }
 0x153   : > { %3736 = vmatmul.mubr.msk.f32.vlgmr.msra.gmra.mxu1 %vm6675_vm4, %v5980_v58 }
 0x182   : > { %v455_v24 = vpop.f32.mrf.mxu0 }
 0x183   : > { %460 = vst [vmem:[%s6494_s13] sm:$0xff] %v455_v24 }
 0x184   : > { %v457_v17 = vpop.f32.mrf.mxu0 }
 0x185   : > { %v625_v33 = vpop.f32.mrf.mxu1  ;;  %461 = vst [vmem:[%s6494_s13 + $0x8] sm:$0xff] %v457_v17 }
 0x186   : > { %630 = vst [vmem:[%s6494_s13 + $0x10] sm:$0xff] %v625_v33 }
 0x187   : > { %v627_v0 = vpop.f32.mrf.mxu1 }
 0x188   : > { %631 = vst [vmem:[%s6494_s13 + $0x18] sm:$0xff] %v627_v0 }
 0x195   : > { %v795_v34 = vpop.f32.mrf.mxu0 }
 0x196   : > { %800 = vst [vmem:[%s6494_s13 + $0x20] sm:$0xff] %v795_v34  ;;  %v965_v36 = vpop.f32.mrf.mxu1 }
 0x197   : > { %v797_v40 = vpop.f32.mrf.mxu0  ;;  %970 = vst [vmem:[%s6494_s13 + $0x30] sm:$0xff] %v965_v36 }
 0x198   : > { %801 = vst [vmem:[%s6494_s13 + $0x28] sm:$0xff] %v797_v40  ;;  %v967_v41 = vpop.f32.mrf.mxu1 }
 0x199   : > { %971 = vst [vmem:[%s6494_s13 + $0x38] sm:$0xff] %v967_v41 }
 0x1a7   : > { %v1135_v50 = vpop.f32.mrf.mxu0 }
 0x1a8   : > { %1140 = vst [vmem:[%s6494_s13 + $0x40] sm:$0xff] %v1135_v50 }
 0x1a9   : > { %v1305_v23 = vpop.f32.mrf.mxu1  ;;  %v1137_v26 = vpop.f32.mrf.mxu0 }
 0x1aa   : > { %1310 = vst [vmem:[%s6494_s13 + $0x50] sm:$0xff] %v1305_v23  ;;  %1141 = vst [vmem:[%s6494_s13 + $0x48] sm:$0xff] %v1137_v26 }
 0x1ab   : > { %v1307_v39 = vpop.f32.mrf.mxu1 }
 0x1ac   : > { %1311 = vst [vmem:[%s6494_s13 + $0x58] sm:$0xff] %v1307_v39 }
 0x1b9   : > { %v1475_v47 = vpop.f32.mrf.mxu0 }
 0x1ba   : > { %1480 = vst [vmem:[%s6494_s13 + $0x60] sm:$0xff] %v1475_v47 }
 0x1bb   : > { %v1645_v7 = vpop.f32.mrf.mxu1  ;;  %v1477_v58 = vpop.f32.mrf.mxu0 }
 0x1bc   : > { %1650 = vst [vmem:[%s6494_s13 + $0x70] sm:$0xff] %v1645_v7  ;;  %1481 = vst [vmem:[%s6494_s13 + $0x68] sm:$0xff] %v1477_v58 }
 0x1bd   : > { %v1647_v11 = vpop.f32.mrf.mxu1 }
 0x1be   : > { %1651 = vst [vmem:[%s6494_s13 + $0x78] sm:$0xff] %v1647_v11 }
 0x1ca   : > { %v1821_v53 = vpop.f32.mrf.mxu0 }
 0x1cb   : > { %1826 = vst [vmem:[%s6494_s13 + $0x80] sm:$0xff] %v1821_v53 }
 0x1cc   : > { %v1823_v54 = vpop.f32.mrf.mxu0 }
 0x1cd   : > { %1827 = vst [vmem:[%s6494_s13 + $0x88] sm:$0xff] %v1823_v54 }
 0x1dc   : > { %v1991_v3 = vpop.f32.mrf.mxu1 }
 0x1dd   : > { %1996 = vst [vmem:[%s6494_s13 + $0x90] sm:$0xff] %v1991_v3 }
 0x1de   : > { %v1993_v14 = vpop.f32.mrf.mxu1 }
 0x1df   : > { %1997 = vst [vmem:[%s6494_s13 + $0x98] sm:$0xff] %v1993_v14 }
 0x1e9   : > { %v2161_v59 = vpop.f32.mrf.mxu0 }
 0x1ea   : > { %2166 = vst [vmem:[%s6494_s13 + $0xa0] sm:$0xff] %v2161_v59 }
 0x1eb   : > { %v2163_v55 = vpop.f32.mrf.mxu0 }
 0x1ec   : > { %2167 = vst [vmem:[%s6494_s13 + $0xa8] sm:$0xff] %v2163_v55 }
 0x1f2   : > { %v2331_v5 = vpop.f32.mrf.mxu1 }
 0x1f3   : > { %2336 = vst [vmem:[%s6494_s13 + $0xb0] sm:$0xff] %v2331_v5 }
 0x1f4   : > { %v2333_v1 = vpop.f32.mrf.mxu1 }
 0x1f5   : > { %2337 = vst [vmem:[%s6494_s13 + $0xb8] sm:$0xff] %v2333_v1 }
 0x1fd   : > { %v2501_v48 = vpop.f32.mrf.mxu0 }
 0x1fe   : > { %2506 = vst [vmem:[%s6494_s13 + $0xc0] sm:$0xff] %v2501_v48 }
 0x1ff   : > { %v2503_v18 = vpop.f32.mrf.mxu0 }
 0x200   : > { %2507 = vst [vmem:[%s6494_s13 + $0xc8] sm:$0xff] %v2503_v18 }
 0x202   : > { %v2671_v56 = vpop.f32.mrf.mxu1 }
 0x203   : > { %2676 = vst [vmem:[%s6494_s13 + $0xd0] sm:$0xff] %v2671_v56 }
 0x204   : > { %v2673_v57 = vpop.f32.mrf.mxu1 }
 0x205   : > { %2677 = vst [vmem:[%s6494_s13 + $0xd8] sm:$0xff] %v2673_v57 }
 0x211   : > { %v2841_v38 = vpop.f32.mrf.mxu0 }
 0x212   : > { %2846 = vst [vmem:[%s6494_s13 + $0xe0] sm:$0xff] %v2841_v38 }
 0x213   : > { %v3011_v25 = vpop.f32.mrf.mxu1  ;;  %v2843_v8 = vpop.f32.mrf.mxu0 }
 0x214   : > { %3016 = vst [vmem:[%s6494_s13 + $0xf0] sm:$0xff] %v3011_v25  ;;  %2847 = vst [vmem:[%s6494_s13 + $0xe8] sm:$0xff] %v2843_v8 }
 0x215   : > { %v3013_v2 = vpop.f32.mrf.mxu1 }
 0x216   : > { %3017 = vst [vmem:[%s6494_s13 + $0xf8] sm:$0xff] %v3013_v2 }
 0x217   : > { %4038 = shalt.err (!%p4035_p2)
}
 0x218   : > { %s4039_s16 = scalar_lea.hbm %s6533_s23, 4096  ;;  %s4043_s26 = scalar_lea.hbm %s6677_s6, 16384 }
 0x219   : > { %p4040_p7 = scmp.ne.s32.totalorder %s6533_s23, %s4039_s16  ;;  %p4044_p12 = scmp.lt.s32.totalorder %s6533_s23, %s6677_s6 }
 0x21a   : > { %p4045_p11 = scmp.lt.s32.totalorder %s4043_s26, %s4039_s16 }
 0x21b   : > { %p4041_p9 = pnand %p4040_p7, %p6678_p4 }
 0x21c   : > { %p4046_p3 = por %p4045_p11, %p4044_p12 }
 0x21d   : > { %p4042_p13 = pneg %p4041_p9 }
 0x21f   : > { %p4047_p10 = pnand %p4046_p3, %p4042_p13 }
 0x221   : > { %4050 = shalt.err (!%p4047_p10)
}
 0x222   : > { %3785 = dma.vmem_to_hbm [thread:$0]  (%p6678_p4), %s3036_s8, 4096, %s6533_s23, %s3019_s5  }
 0x223 PF: > { %s6679_s11 = sld [smem:[#allocation16_spill]]  ;;  %p3805_p6 = scmp.ge.s32.totalorder %s4155_s27, 2 }
 0x224   : > { %s6680_s25 = sld [smem:[#allocation22_spill]] }
 0x229   : > { %s3047_s1 = sand.u32 1, %s6679_s11  }
 0x22a   : > { %p6681_p1 = scmp.ne.s32.totalorder %s6680_s25, 0  ;;  %s3048_s13 = scalar_lea.sflag [#allocation6], %s3047_s1 }
 0x22c   : > { %p3799_p0 = pnand %p3805_p6, %p6681_p1 }
 0x22e   : > { %p3800_p5 = pneg %p3799_p0 }
 0x230   : > { %4110 = dma.done.wait (%p3800_p5), %s3048_s13, 4096  }
 0x231   : > { %4112 = vsyncadd (%p3800_p5), %s3048_s13, 4294963200  ;;  %s27_s27 = sadd.s32 1, %s4155_s27   ;;  %s6682_s30 = sld [smem:[#allocation25_spill]] }
 0x232   : > { %p24_p8 = scmp.ge.s32.totalorder %s27_s27, 6   ;;  %s6683_s23 = sld [smem:[#allocation19_spill]] }
 0x233   : > { %s6684_s24 = sld [smem:[#allocation20_spill]]  ;;  %s6687_s18 = smov %s4119_s19 }
 0x234   : > { %s6685_s25 = sld [smem:[#allocation23_spill]]  ;;  %s6688_s19 = smov %s4123_s20 }
 0x235   : > { %s6686_s26 = sld [smem:[#allocation24_spill]]  ;;  %s6689_s20 = smov %s4338_s12 }
 0x236   : > { %s6690_s21 = smov %s4131_s22  ;;  %s6691_s22 = smov %s4135_s0 }
 0x237   : > { %s6692_s0 = smov %s6682_s30  ;;  %26 = sbr.rel (!%p24_p8) target bundleno = 20 (0x14), region = 94 }
 0x23c   :  { %3053 = vsyncpa [#allocation5], 1 }
 0x23d   :  { %3055 = vsyncpa [#allocation5 + $0x1], 1 }
 0x23e   :  { %3056 = vsyncpa [#allocation8], 1 }
 0x23f   :  { %3058 = vsyncpa [#allocation8 + $0x1], 1 }
 0x240   :  { %3059 = vsyncpa [#allocation6], 1 }
 0x241   :  { %3061 = vsyncpa [#allocation6 + $0x1], 1 }

</bundles_post_ra>
